<compile_context>
chip_gen: v5e
topology: v5e:2x2
jax: 0.10.0
libtpu: 0.0.40
codegen_flags: <defaults>
</compile_context>

<pallas_src>
import jax
import jax.numpy as jnp
from jax.experimental import pallas as pl
from jax.experimental.pallas import tpu as pltpu


def _band_matrices(w_dhwio, H, W):
    """Fold the (kh, kw) taps (and pad=1 zero padding) of a 3x3x3 conv into
    three dense (H*W*Cin, H*W*Cout) matrices (one per depth tap kd) and stack
    them along the contraction axis -> (3*H*W*Cin, H*W*Cout).

    With x rows flattened as (h*W + w)*Cin + ci and outputs as
    (h*W + w)*Cout + co:
        out[d] = [x[d-1] | x[d] | x[d+1]] @ [Wk0; Wk1; Wk2]
    (rows beyond the depth edges contribute zero; handled in-kernel).
    """
    kD, kH, kW, Cin, Cout = w_dhwio.shape
    mats = []
    for kd in range(kD):
        m = jnp.zeros((H * W * Cin, H * W * Cout), jnp.float32)
        for kh in range(kH):
            # S_h[h_in, h_out] = 1  iff  h_in == h_out + kh - 1   (pad=1 baked in)
            s_h = jnp.eye(H, H, k=1 - kh, dtype=jnp.float32)
            for kw in range(kW):
                s_w = jnp.eye(W, W, k=1 - kw, dtype=jnp.float32)
                place = jnp.kron(s_h, s_w)                      # (H*W, H*W)
                m = m + jnp.kron(place, w_dhwio[kd, kh, kw])    # (H*W*Cin, H*W*Cout)
        mats.append(m)
    return jnp.concatenate(mats, axis=0)                        # (3*H*W*Cin, H*W*Cout)


def basic_block3d_kernel(x_ref, w1_ref, w2_ref, s1_ref, b1_ref, s2_ref, b2_ref,
                         out_ref):
    """Fused conv1+bn1+relu -> conv2+bn2+residual+relu for a block of Nb samples.

    x_ref  : (Nb, D, H*W*Cin)            f32
    w*_ref : (3*H*W*Cin, H*W*Cout)       bf16  (kh/kw taps + padding folded; kd stacked on K)
    s*/b*  : (1, H*W*Cout)               f32   (per-channel BN scale/bias tiled over H*W)
    out    : (Nb, D, H*W*Cout)
    """
    f32 = jnp.float32
    x = x_ref[...].astype(f32)                       # residual path stays f32
    Nb, D, _ = x.shape
    HWCo = w1_ref.shape[1]

    def conv3x3x3(inp, w_ref_):
        # inp: (Nb, D, K).  Fold the depth taps into the contraction:
        #   lhs[n, d] = [inp[n, d-1] | inp[n, d] | inp[n, d+1]]  (zeros at depth edges)
        K = inp.shape[2]
        z = jnp.zeros((Nb, 1, K), f32)
        x_dm1 = jnp.concatenate([z, inp[:, :D - 1, :]], axis=1)     # kd = 0 tap: x[d-1]
        x_dp1 = jnp.concatenate([inp[:, 1:, :], z], axis=1)         # kd = 2 tap: x[d+1]
        lhs = jnp.concatenate([x_dm1, inp, x_dp1], axis=2)          # (Nb, D, 3K)
        lhs = lhs.reshape(Nb * D, 3 * K).astype(jnp.bfloat16)       # M = Nb*D rows
        # single MXU push per conv: bf16 operands, f32 accumulation
        return jnp.dot(lhs, w_ref_[...], preferred_element_type=f32)  # (Nb*D, HWCo)

    h = jnp.maximum(conv3x3x3(x, w1_ref) * s1_ref[...] + b1_ref[...], 0.0)
    h = h.reshape(Nb, D, HWCo)
    y = conv3x3x3(h, w2_ref) * s2_ref[...] + b2_ref[...]
    out_ref[...] = jnp.maximum(y.reshape(Nb, D, HWCo) + x, 0.0).astype(out_ref.dtype)


class BasicBlock3DPallas:
    """Pallas equivalent of BasicBlock3D(in_c, out_c, stride=1, downsample=None)."""

    expansion = 1
    eps = 1e-5

    def __init__(self, in_channels, out_channels, key, stride=1):
        assert stride == 1 and in_channels == out_channels, \
            "identity (downsample=None) path only"
        self.in_channels = in_channels
        self.out_channels = out_channels
        ks = jax.random.split(key, 10)
        fan1 = in_channels * 27
        fan2 = out_channels * 27
        # conv weights stored as (kD, kH, kW, Cin, Cout)
        self.w1 = jax.random.normal(ks[0], (3, 3, 3, in_channels, out_channels),
                                    jnp.float32) * (2.0 / fan1) ** 0.5
        self.w2 = jax.random.normal(ks[1], (3, 3, 3, out_channels, out_channels),
                                    jnp.float32) * (2.0 / fan2) ** 0.5
        # BatchNorm params / running stats (deterministic synthetic values)
        self.gamma1 = 1.0 + 0.1 * jax.random.normal(ks[2], (out_channels,), jnp.float32)
        self.beta1 = 0.1 * jax.random.normal(ks[3], (out_channels,), jnp.float32)
        self.mean1 = 0.05 * jax.random.normal(ks[4], (out_channels,), jnp.float32)
        self.var1 = 1.0 + 0.1 * jnp.abs(jax.random.normal(ks[5], (out_channels,), jnp.float32))
        self.gamma2 = 1.0 + 0.1 * jax.random.normal(ks[6], (out_channels,), jnp.float32)
        self.beta2 = 0.1 * jax.random.normal(ks[7], (out_channels,), jnp.float32)
        self.mean2 = 0.05 * jax.random.normal(ks[8], (out_channels,), jnp.float32)
        self.var2 = 1.0 + 0.1 * jnp.abs(jax.random.normal(ks[9], (out_channels,), jnp.float32))

    def _folded_bn(self, gamma, beta, mean, var):
        scale = gamma / jnp.sqrt(var + self.eps)
        bias = beta - mean * scale
        return scale, bias

    def __call__(self, x_ncdhw):
        N, C, D, H, W = x_ncdhw.shape
        Cout = self.out_channels
        HWCi = H * W * C
        HWCo = H * W * Cout

        # NCDHW -> NDHWC -> lane-dense (N, D, H*W*C) slab (512 lanes at test shape)
        x2d = jnp.transpose(x_ncdhw, (0, 2, 3, 4, 1)).reshape(N, D, HWCi)

        s1, b1 = self._folded_bn(self.gamma1, self.beta1, self.mean1, self.var1)
        s2, b2 = self._folded_bn(self.gamma2, self.beta2, self.mean2, self.var2)
        s1t = jnp.tile(s1, H * W).reshape(1, HWCo).astype(jnp.float32)
        b1t = jnp.tile(b1, H * W).reshape(1, HWCo).astype(jnp.float32)
        s2t = jnp.tile(s2, H * W).reshape(1, HWCo).astype(jnp.float32)
        b2t = jnp.tile(b2, H * W).reshape(1, HWCo).astype(jnp.float32)

        # (kh, kw, padding) folded into banded matrices; kd stacked along K; bf16 for MXU.
        w1b = _band_matrices(self.w1, H, W).astype(jnp.bfloat16)   # (3*HWCi, HWCo)
        w2b = _band_matrices(self.w2, H, W).astype(jnp.bfloat16)   # (3*HWCo, HWCo)

        # Samples-per-block: fill the MXU M dimension (target Nb*D >= 128) while
        # keeping N % Nb == 0.  At N=2, D=8 this fuses both samples into one M=16 matmul.
        Nb = min(N, max(1, -(-128 // D)))
        while N % Nb:
            Nb -= 1
        grid = (N // Nb,)

        const = dict(pipeline_mode=pl.Buffered(1))   # grid-invariant operands: single-buffer

        out2d = pl.pallas_call(
            basic_block3d_kernel,
            out_shape=jax.ShapeDtypeStruct((N, D, HWCo), x_ncdhw.dtype),
            grid=grid,
            in_specs=[
                pl.BlockSpec((Nb, D, HWCi), lambda n: (n, 0, 0)),
                pl.BlockSpec((3 * HWCi, HWCo), lambda n: (0, 0), **const),
                pl.BlockSpec((3 * HWCo, HWCo), lambda n: (0, 0), **const),
                pl.BlockSpec((1, HWCo), lambda n: (0, 0), **const),
                pl.BlockSpec((1, HWCo), lambda n: (0, 0), **const),
                pl.BlockSpec((1, HWCo), lambda n: (0, 0), **const),
                pl.BlockSpec((1, HWCo), lambda n: (0, 0), **const),
            ],
            out_specs=pl.BlockSpec((Nb, D, HWCo), lambda n: (n, 0, 0)),
            compiler_params=pltpu.CompilerParams(
                dimension_semantics=("parallel",),
                # 48 MiB is safe on every generation (v7x physical VMEM = 64 MiB)
                # and far above single-buffered weights + double-buffered act blocks.
                vmem_limit_bytes=48 * 1024 * 1024,
            ),
        )(x2d, w1b, w2b, s1t, b1t, s2t, b2t)

        out = out2d.reshape(N, D, H, W, Cout)
        return jnp.transpose(out, (0, 4, 1, 2, 3))          # NDHWC -> NCDHW

    # pure-JAX f32 reference (same math as the PyTorch module) for correctness check
    def reference(self, x_ncdhw):
        x = jnp.transpose(x_ncdhw, (0, 2, 3, 4, 1))

        def conv(inp, w):
            return jax.lax.conv_general_dilated(
                inp, w, window_strides=(1, 1, 1),
                padding=((1, 1), (1, 1), (1, 1)),
                dimension_numbers=("NDHWC", "DHWIO", "NDHWC"),
                precision=jax.lax.Precision.HIGHEST)

        s1, b1 = self._folded_bn(self.gamma1, self.beta1, self.mean1, self.var1)
        s2, b2 = self._folded_bn(self.gamma2, self.beta2, self.mean2, self.var2)
        out = jnp.maximum(conv(x, self.w1) * s1 + b1, 0.0)
        out = jnp.maximum(conv(out, self.w2) * s2 + b2 + x, 0.0)
        return jnp.transpose(out, (0, 4, 1, 2, 3))


if __name__ == "__main__":
    key = jax.random.PRNGKey(0)
    kx, kp = jax.random.split(key)
    N, C, D, H, W = 2, 8, 8, 8, 8   # PyTorch-convention input is NCDHW; H*W*C = 512 (lane-dense)
    x = jax.random.normal(kx, (N, C, D, H, W), jnp.float32)

    block = BasicBlock3DPallas(C, C, kp, stride=1)
    y = block(x)
    y = jax.block_until_ready(y)

    y_ref = block.reference(x)
    assert y.shape == (N, C, D, H, W)
    # Tolerance sized for bf16 MXU operands (f32 accumulation); structural bugs are O(1).
    assert jnp.allclose(y, y_ref, atol=5e-2, rtol=5e-2), \
        f"max abs err = {float(jnp.max(jnp.abs(y - y_ref)))}"
    print("KERNEL_OK")
</pallas_src>

<mosaic_0001>
module attributes {stable_mosaic.version = 11 : i64} {
  func.func @basic_block3d_kernel(%arg0: i32, %arg1: memref<2x8x512xf32, #tpu.memory_space<vmem>>, %arg2: memref<1536x512xbf16, #tpu.memory_space<vmem>>, %arg3: memref<1536x512xbf16, #tpu.memory_space<vmem>>, %arg4: memref<1x512xf32, #tpu.memory_space<vmem>>, %arg5: memref<1x512xf32, #tpu.memory_space<vmem>>, %arg6: memref<1x512xf32, #tpu.memory_space<vmem>>, %arg7: memref<1x512xf32, #tpu.memory_space<vmem>>, %arg8: memref<2x8x512xf32, #tpu.memory_space<vmem>>) attributes {dimension_semantics = [#tpu.dimension_semantics<parallel>], iteration_bounds = array<i64: 1>, scalar_prefetch = 0 : i64, scratch_operands = 0 : i64, tpu.core_type = #tpu.core_type<tc>, window_params = [{transform_indices = @transform_0, window_bounds = array<i64: 2, 8, 512>}, {pipeline_mode = #tpu.pipeline_mode<synchronous>, transform_indices = @transform_1, window_bounds = array<i64: 1536, 512>}, {pipeline_mode = #tpu.pipeline_mode<synchronous>, transform_indices = @transform_2, window_bounds = array<i64: 1536, 512>}, {pipeline_mode = #tpu.pipeline_mode<synchronous>, transform_indices = @transform_3, window_bounds = array<i64: 1, 512>}, {pipeline_mode = #tpu.pipeline_mode<synchronous>, transform_indices = @transform_4, window_bounds = array<i64: 1, 512>}, {pipeline_mode = #tpu.pipeline_mode<synchronous>, transform_indices = @transform_5, window_bounds = array<i64: 1, 512>}, {pipeline_mode = #tpu.pipeline_mode<synchronous>, transform_indices = @transform_6, window_bounds = array<i64: 1, 512>}, {transform_indices = @transform_7, window_bounds = array<i64: 2, 8, 512>}]} {
    %c0 = arith.constant 0 : index
    %c0_0 = arith.constant 0 : index
    %c0_1 = arith.constant 0 : index
    %0 = vector.load %arg1[%c0, %c0_0, %c0_1] : memref<2x8x512xf32, #tpu.memory_space<vmem>>, vector<2x8x512xf32>
    %cst = arith.constant 0.000000e+00 : f32
    %1 = vector.broadcast %cst : f32 to vector<2x1x512xf32>
    %2 = vector.extract_strided_slice %0 {offsets = [0, 0, 0], sizes = [2, 7, 512], strides = [1, 1, 1]} : vector<2x8x512xf32> to vector<2x7x512xf32>
    %3 = tpu.concatenate %1, %2 in 1 : vector<2x1x512xf32>, vector<2x7x512xf32> -> vector<2x8x512xf32>
    %4 = vector.extract_strided_slice %0 {offsets = [0, 1, 0], sizes = [2, 7, 512], strides = [1, 1, 1]} : vector<2x8x512xf32> to vector<2x7x512xf32>
    %5 = tpu.concatenate %4, %1 in 1 : vector<2x7x512xf32>, vector<2x1x512xf32> -> vector<2x8x512xf32>
    %6 = tpu.concatenate %3, %0, %5 in 2 : vector<2x8x512xf32>, vector<2x8x512xf32>, vector<2x8x512xf32> -> vector<2x8x1536xf32>
    %7 = vector.shape_cast %6 : vector<2x8x1536xf32> to vector<16x1536xf32>
    %8 = arith.truncf %7 : vector<16x1536xf32> to vector<16x1536xbf16>
    %c0_2 = arith.constant 0 : index
    %c0_3 = arith.constant 0 : index
    %9 = vector.load %arg2[%c0_2, %c0_3] : memref<1536x512xbf16, #tpu.memory_space<vmem>>, vector<1536x512xbf16>
    %cst_4 = arith.constant dense<0.000000e+00> : vector<16x512xf32>
    %10 = tpu.matmul %8, %9, %cst_4 {dimension_numbers = #tpu.dot_dimension_numbers<[1], [0], [0], [1], [0, 0, 1, 1], [], []>} : vector<16x1536xbf16>, vector<1536x512xbf16>, vector<16x512xf32> -> vector<16x512xf32>
    %c0_5 = arith.constant 0 : index
    %c0_6 = arith.constant 0 : index
    %11 = vector.load %arg4[%c0_5, %c0_6] : memref<1x512xf32, #tpu.memory_space<vmem>>, vector<1x512xf32>
    %12 = vector.broadcast %11 : vector<1x512xf32> to vector<16x512xf32>
    %13 = arith.mulf %10, %12 : vector<16x512xf32>
    %c0_7 = arith.constant 0 : index
    %c0_8 = arith.constant 0 : index
    %14 = vector.load %arg5[%c0_7, %c0_8] : memref<1x512xf32, #tpu.memory_space<vmem>>, vector<1x512xf32>
    %15 = vector.broadcast %14 : vector<1x512xf32> to vector<16x512xf32>
    %16 = arith.addf %13, %15 : vector<16x512xf32>
    %cst_9 = arith.constant 0.000000e+00 : f32
    %17 = vector.broadcast %cst_9 : f32 to vector<16x512xf32>
    %18 = arith.maximumf %16, %17 : vector<16x512xf32>
    %19 = vector.shape_cast %18 : vector<16x512xf32> to vector<2x8x512xf32>
    %cst_10 = arith.constant 0.000000e+00 : f32
    %20 = vector.broadcast %cst_10 : f32 to vector<2x1x512xf32>
    %21 = vector.extract_strided_slice %19 {offsets = [0, 0, 0], sizes = [2, 7, 512], strides = [1, 1, 1]} : vector<2x8x512xf32> to vector<2x7x512xf32>
    %22 = tpu.concatenate %20, %21 in 1 : vector<2x1x512xf32>, vector<2x7x512xf32> -> vector<2x8x512xf32>
    %23 = vector.extract_strided_slice %19 {offsets = [0, 1, 0], sizes = [2, 7, 512], strides = [1, 1, 1]} : vector<2x8x512xf32> to vector<2x7x512xf32>
    %24 = tpu.concatenate %23, %20 in 1 : vector<2x7x512xf32>, vector<2x1x512xf32> -> vector<2x8x512xf32>
    %25 = tpu.concatenate %22, %19, %24 in 2 : vector<2x8x512xf32>, vector<2x8x512xf32>, vector<2x8x512xf32> -> vector<2x8x1536xf32>
    %26 = vector.shape_cast %25 : vector<2x8x1536xf32> to vector<16x1536xf32>
    %27 = arith.truncf %26 : vector<16x1536xf32> to vector<16x1536xbf16>
    %c0_11 = arith.constant 0 : index
    %c0_12 = arith.constant 0 : index
    %28 = vector.load %arg3[%c0_11, %c0_12] : memref<1536x512xbf16, #tpu.memory_space<vmem>>, vector<1536x512xbf16>
    %cst_13 = arith.constant dense<0.000000e+00> : vector<16x512xf32>
    %29 = tpu.matmul %27, %28, %cst_13 {dimension_numbers = #tpu.dot_dimension_numbers<[1], [0], [0], [1], [0, 0, 1, 1], [], []>} : vector<16x1536xbf16>, vector<1536x512xbf16>, vector<16x512xf32> -> vector<16x512xf32>
    %c0_14 = arith.constant 0 : index
    %c0_15 = arith.constant 0 : index
    %30 = vector.load %arg6[%c0_14, %c0_15] : memref<1x512xf32, #tpu.memory_space<vmem>>, vector<1x512xf32>
    %31 = vector.broadcast %30 : vector<1x512xf32> to vector<16x512xf32>
    %32 = arith.mulf %29, %31 : vector<16x512xf32>
    %c0_16 = arith.constant 0 : index
    %c0_17 = arith.constant 0 : index
    %33 = vector.load %arg7[%c0_16, %c0_17] : memref<1x512xf32, #tpu.memory_space<vmem>>, vector<1x512xf32>
    %34 = vector.broadcast %33 : vector<1x512xf32> to vector<16x512xf32>
    %35 = arith.addf %32, %34 : vector<16x512xf32>
    %36 = vector.shape_cast %35 : vector<16x512xf32> to vector<2x8x512xf32>
    %37 = arith.addf %36, %0 : vector<2x8x512xf32>
    %cst_18 = arith.constant 0.000000e+00 : f32
    %38 = vector.broadcast %cst_18 : f32 to vector<2x8x512xf32>
    %39 = arith.maximumf %37, %38 : vector<2x8x512xf32>
    %c0_19 = arith.constant 0 : index
    %c0_20 = arith.constant 0 : index
    %c0_21 = arith.constant 0 : index
    %40 = vector.load %arg8[%c0_19, %c0_20, %c0_21] : memref<2x8x512xf32, #tpu.memory_space<vmem>>, vector<2x8x512xf32>
    tpu.vector_store %arg8[%c0_19, %c0_20, %c0_21], %39 {strides = array<i32>} : memref<2x8x512xf32, #tpu.memory_space<vmem>>, vector<2x8x512xf32>,
    return
  }
  func.func @transform_0(%arg0: i32) -> (i32, i32, i32) {
    %c0_i32 = arith.constant 0 : i32
    %c0_i32_0 = arith.constant 0 : i32
    %c0_i32_1 = arith.constant 0 : i32
    return %arg0, %c0_i32, %c0_i32_0 : i32, i32, i32
  }
  func.func @transform_1(%arg0: i32) -> (i32, i32) {
    %c0_i32 = arith.constant 0 : i32
    %c0_i32_0 = arith.constant 0 : i32
    %c0_i32_1 = arith.constant 0 : i32
    return %c0_i32, %c0_i32_0 : i32, i32
  }
  func.func @transform_2(%arg0: i32) -> (i32, i32) {
    %c0_i32 = arith.constant 0 : i32
    %c0_i32_0 = arith.constant 0 : i32
    %c0_i32_1 = arith.constant 0 : i32
    return %c0_i32, %c0_i32_0 : i32, i32
  }
  func.func @transform_3(%arg0: i32) -> (i32, i32) {
    %c0_i32 = arith.constant 0 : i32
    %c0_i32_0 = arith.constant 0 : i32
    %c0_i32_1 = arith.constant 0 : i32
    return %c0_i32, %c0_i32_0 : i32, i32
  }
  func.func @transform_4(%arg0: i32) -> (i32, i32) {
    %c0_i32 = arith.constant 0 : i32
    %c0_i32_0 = arith.constant 0 : i32
    %c0_i32_1 = arith.constant 0 : i32
    return %c0_i32, %c0_i32_0 : i32, i32
  }
  func.func @transform_5(%arg0: i32) -> (i32, i32) {
    %c0_i32 = arith.constant 0 : i32
    %c0_i32_0 = arith.constant 0 : i32
    %c0_i32_1 = arith.constant 0 : i32
    return %c0_i32, %c0_i32_0 : i32, i32
  }
  func.func @transform_6(%arg0: i32) -> (i32, i32) {
    %c0_i32 = arith.constant 0 : i32
    %c0_i32_0 = arith.constant 0 : i32
    %c0_i32_1 = arith.constant 0 : i32
    return %c0_i32, %c0_i32_0 : i32, i32
  }
  func.func @transform_7(%arg0: i32) -> (i32, i32, i32) {
    %c0_i32 = arith.constant 0 : i32
    %c0_i32_0 = arith.constant 0 : i32
    %c0_i32_1 = arith.constant 0 : i32
    return %arg0, %c0_i32, %c0_i32_0 : i32, i32, i32
  }
}

</mosaic_0001>

<bundles_post_ra>
// kernel: tpu_custom_call.1
= control target key start
LH: loop header
LB: loop body
LE: loop exit
PB: predicated region body
PF: predicated region fallthrough
CT: control target
= control target key end

     0   :  { %12 = vsyncpa [#allocation3], 0  ;;  %s11321_s0 = inlined_call_operand.hbm [shape: f32[2,8,512], index: 0, kind: input, shape index: {}]   ;;  %s11322_s1 = inlined_call_operand.hbm [shape: bf16[1536,512], index: 1, kind: input, shape index: {}]   ;;  %s11323_s2 = inlined_call_operand.hbm [shape: bf16[1536,512], index: 2, kind: input, shape index: {}]   ;;  %s11324_s3 = inlined_call_operand.hbm [shape: f32[1,512], index: 3, kind: input, shape index: {}]   ;;  %s11325_s4 = inlined_call_operand.hbm [shape: f32[1,512], index: 4, kind: input, shape index: {}]   ;;  %s11326_s5 = inlined_call_operand.hbm [shape: f32[1,512], index: 5, kind: input, shape index: {}]   ;;  %s11327_s6 = inlined_call_operand.hbm [shape: f32[1,512], index: 6, kind: input, shape index: {}]   ;;  %s11328_s7 = inlined_call_operand.hbm [shape: f32[2,8,512], index: 7, kind: output, shape index: {}]  }
   0x1   :  { %13 = vsyncpa [#allocation6], 0 }
   0x2   :  { %14 = vsyncpa [#allocation9], 0 }
   0x3   :  { %15 = vsyncpa [#allocation12], 0  ;;  %s34_s26 = sshll.u32 %s11322_s1, 4  ;;  %s35_s26 = int_to_ptr.hbm [resolvable:$true] %s34_s26 }
   0x4   :  { %16 = vsyncpa [#allocation4], 0  ;;  %s10672_s27 = smov [#allocation5]   ;;  %s61_s8 = sshll.u32 %s11324_s3, 4  ;;  %s62_s8 = int_to_ptr.hbm [resolvable:$true] %s61_s8 }
   0x5   :  { %s36_s28 = sshll.u32 %s10672_s27, 4  ;;  %s10673_s9 = smov 256   ;;  %s37_s28 = int_to_ptr.vmem [resolvable:$true] %s36_s28 }
   0x6   :  { %s10674_s10 = smov 16   ;;  %s10675_s11 = smov [#allocation8]  }
   0x7   :  { %42 = dma.hbm_to_vmem [thread:$0]  %s35_s26, 49152, %s37_s28, [#allocation6], %s10673_s9, %s10673_s9, %s10674_s10  }
   0x8   :  { %s63_s12 = sshll.u32 %s10675_s11, 4  ;;  %s83_s14 = sshll.u32 %s11326_s5, 4  ;;  %s64_s12 = int_to_ptr.vmem [resolvable:$true] %s63_s12  ;;  %s84_s14 = int_to_ptr.hbm [resolvable:$true] %s83_s14 }
   0x9   :  { %66 = dma.hbm_to_vmem [thread:$0]  %s62_s8, 64, %s64_s12, [#allocation9]  }
   0xa   :  { %s21_s3 = sshll.u32 %s11321_s0, 4  ;;  %s10676_s17 = smov [#allocation11]   ;;  %s22_s3 = int_to_ptr.hbm [resolvable:$true] %s21_s3 }
   0xb   :  { %s85_s18 = sshll.u32 %s10676_s17, 4  ;;  %s10677_s19 = smov [#allocation2]   ;;  %s86_s18 = int_to_ptr.vmem [resolvable:$true] %s85_s18 }
   0xc   :  { %88 = dma.hbm_to_vmem [thread:$0]  %s84_s14, 64, %s86_s18, [#allocation12]  }
   0xd   :  { %s23_s20 = sshll.u32 %s10677_s19, 4  ;;  %s10678_s21 = smov 512   ;;  %s24_s20 = int_to_ptr.vmem [resolvable:$true] %s23_s20 }
   0xe   :  { %s10679_s22 = smov 32   ;;  %s47_s24 = sshll.u32 %s11323_s2, 4  ;;  %s48_s24 = int_to_ptr.hbm [resolvable:$true] %s47_s24 }
   0xf   :  { %29 = dma.hbm_to_vmem [thread:$0]  %s22_s3, 1024, %s24_s20, [#allocation3], %s10678_s21, %s10678_s21, %s10679_s22  }
  0x10   :  { %s10680_s0 = smov [#allocation7]   ;;  %s72_s28 = sshll.u32 %s11325_s4, 4  ;;  %s73_s28 = int_to_ptr.hbm [resolvable:$true] %s72_s28 }
  0x11   :  { %s49_s25 = sshll.u32 %s10680_s0, 4  ;;  %s10681_s29 = smov [#allocation10]   ;;  %s50_s25 = int_to_ptr.vmem [resolvable:$true] %s49_s25 }
  0x12   :  { %55 = dma.hbm_to_vmem [thread:$0]  %s48_s24, 49152, %s50_s25, [#allocation6], %s10673_s9, %s10673_s9, %s10674_s10  }
  0x13   :  { %s74_s30 = sshll.u32 %s10681_s29, 4  ;;  %s94_s12 = sshll.u32 %s11327_s6, 4  ;;  %s75_s30 = int_to_ptr.vmem [resolvable:$true] %s74_s30  ;;  %s95_s12 = int_to_ptr.hbm [resolvable:$true] %s94_s12 }
  0x14   :  { %77 = dma.hbm_to_vmem [thread:$0]  %s73_s28, 64, %s75_s30, [#allocation9]  }
  0x15   :  { %s10682_s2 = smov [#allocation13]  }
  0x16   :  { %s96_s13 = sshll.u32 %s10682_s2, 4  ;;  %s97_s13 = int_to_ptr.vmem [resolvable:$true] %s96_s13 }
  0x17   :  { %99 = dma.hbm_to_vmem [thread:$0]  %s95_s12, 64, %s97_s13, [#allocation12]  }
  0x18   :  { %10662 = dma.done.wait [#allocation3], 1024  }
  0x19   :  { %10663 = vsyncadd [#allocation3], 4294966272 }
  0x1a   :  { %10664 = dma.done.wait [#allocation6], 98304  }
  0x1b   :  { %10665 = vsyncadd [#allocation6], 4294868992 }
  0x1c   :  { %10666 = dma.done.wait [#allocation9], 128  }
  0x1d   :  { %10667 = vsyncadd [#allocation9], 4294967168 }
  0x1e   :  { %10668 = dma.done.wait [#allocation12], 128  }
  0x1f   :  { %10669 = vsyncadd [#allocation12], 4294967168  ;;  %v6466_v0 = vld [vmem:[#allocation5 + $0xe0] sm:$0xf]  ;;  %v9710_v1 = vld [vmem:[#allocation5 + $0xec] sm:$0xf0] }
  0x20   :  { %v6594_v2 = vld [vmem:[#allocation5 + $0x1e0] sm:$0xf]  ;;  %v6467_v3 = vor.u32 %v9710_v1, %v6466_v0  ;;  %v9742_v4 = vld [vmem:[#allocation5 + $0x1ec] sm:$0xf0]  ;;  %vm160_vm0 = vcmask 1040384   ;;  %vm185_vm3 = vcmask 1046528  }
  0x21   :  { %v6722_v5 = vld [vmem:[#allocation5 + $0x2e0] sm:$0xf]  ;;  %v9774_v6 = vld [vmem:[#allocation5 + $0x2ec] sm:$0xf0]  ;;  %v6595_v7 = vor.u32 %v9742_v4, %v6594_v2  ;;  %vm10762_vm1 = vmneg %vm160_vm0  ;;  %s10683_s4 = smov [#allocation14]   ;;  %s6336_s1 = sshll.u32 %s11328_s7, 4  ;;  %s6337_s1 = int_to_ptr.hbm [resolvable:$true] %s6336_s1 }
  0x22   :  { %v6723_v8 = vor.u32 %v9774_v6, %v6722_v5  ;;  %v6850_v9 = vld [vmem:[#allocation5 + $0x3e0] sm:$0xf]  ;;  %v9806_v10 = vld [vmem:[#allocation5 + $0x3ec] sm:$0xf0]  ;;  %2510 = vmatpush.bf16.msra.mxu0 %v6467_v3  ;;  %vm10775_vm2 = vmpackc.low %vm10762_vm1, %vm10762_vm1  ;;  %s6334_s6 = sshll.u32 %s10683_s4, 4  ;;  %s6335_s6 = int_to_ptr.vmem [resolvable:$true] %s6334_s6 }
  0x23   :  { %v6450_v11 = vld [vmem:[#allocation5 + $0xc0] sm:$0xf]  ;;  %v6851_v12 = vor.u32 %v9806_v10, %v6850_v9  ;;  %v9706_v13 = vld [vmem:[#allocation5 + $0xcc] sm:$0xf0]  ;;  %2524 = vmatpush.bf16.msra.mxu1 %v6595_v7  ;;  %vm10841_vm4 = vmpackc.low %vm185_vm3, %vm185_vm3 }
  0x24   :  { %v6578_v14 = vld [vmem:[#allocation5 + $0x1c0] sm:$0xf]  ;;  %v9738_v15 = vld [vmem:[#allocation5 + $0x1cc] sm:$0xf0]  ;;  %2538 = vmatpush.bf16.msra.mxu2 %v6723_v8  ;;  %v6451_v16 = vor.u32 %v9706_v13, %v6450_v11 }
  0x25   :  { %v6579_v17 = vor.u32 %v9738_v15, %v6578_v14  ;;  %v6706_v18 = vld [vmem:[#allocation5 + $0x2c0] sm:$0xf]  ;;  %v9770_v19 = vld [vmem:[#allocation5 + $0x2cc] sm:$0xf0]  ;;  %2552 = vmatpush.bf16.msra.mxu3 %v6851_v12 }
  0x26   :  { %v6834_v20 = vld [vmem:[#allocation5 + $0x3c0] sm:$0xf]  ;;  %v6707_v21 = vor.u32 %v9770_v19, %v6706_v18  ;;  %v9802_v22 = vld [vmem:[#allocation5 + $0x3cc] sm:$0xf0]  ;;  %2511 = vmatpush.bf16.msra.mxu0 %v6451_v16 }
  0x27   :  { %v6434_v23 = vld [vmem:[#allocation5 + $0xa0] sm:$0xf]  ;;  %v9702_v24 = vld [vmem:[#allocation5 + $0xac] sm:$0xf0]  ;;  %v6835_v25 = vor.u32 %v9802_v22, %v6834_v20  ;;  %2525 = vmatpush.bf16.msra.mxu1 %v6579_v17 }
  0x28   :  { %v6562_v26 = vld [vmem:[#allocation5 + $0x1a0] sm:$0xf]  ;;  %v9734_v27 = vld [vmem:[#allocation5 + $0x1ac] sm:$0xf0]  ;;  %v6435_v29 = vor.u32 %v9702_v24, %v6434_v23  ;;  %2539 = vmatpush.bf16.msra.mxu2 %v6707_v21 }
  0x29   :  { %v6690_v28 = vld [vmem:[#allocation5 + $0x2a0] sm:$0xf]  ;;  %v9766_v30 = vld [vmem:[#allocation5 + $0x2ac] sm:$0xf0]  ;;  %v6563_v33 = vor.u32 %v9734_v27, %v6562_v26  ;;  %2553 = vmatpush.bf16.msra.mxu3 %v6835_v25 }
  0x2a   :  { %v6818_v31 = vld [vmem:[#allocation5 + $0x3a0] sm:$0xf]  ;;  %v9798_v32 = vld [vmem:[#allocation5 + $0x3ac] sm:$0xf0]  ;;  %v6691_v34 = vor.u32 %v9766_v30, %v6690_v28  ;;  %2512 = vmatpush.bf16.msra.mxu0 %v6435_v29 }
  0x2b   :  { %v6418_v35 = vld [vmem:[#allocation5 + $0x80] sm:$0xf]  ;;  %v9698_v36 = vld [vmem:[#allocation5 + $0x8c] sm:$0xf0]  ;;  %v6819_v38 = vor.u32 %v9798_v32, %v6818_v31  ;;  %2526 = vmatpush.bf16.msra.mxu1 %v6563_v33 }
  0x2c   :  { %v6546_v37 = vld [vmem:[#allocation5 + $0x180] sm:$0xf]  ;;  %v9730_v39 = vld [vmem:[#allocation5 + $0x18c] sm:$0xf0]  ;;  %v6419_v44 = vor.u32 %v9698_v36, %v6418_v35  ;;  %2540 = vmatpush.bf16.msra.mxu2 %v6691_v34 }
  0x2d   :  { %v6674_v40 = vld [vmem:[#allocation5 + $0x280] sm:$0xf]  ;;  %v9762_v41 = vld [vmem:[#allocation5 + $0x28c] sm:$0xf0]  ;;  %v6547_v45 = vor.u32 %v9730_v39, %v6546_v37  ;;  %2554 = vmatpush.bf16.msra.mxu3 %v6819_v38 }
  0x2e   :  { %v6802_v42 = vld [vmem:[#allocation5 + $0x380] sm:$0xf]  ;;  %v9794_v43 = vld [vmem:[#allocation5 + $0x38c] sm:$0xf0]  ;;  %v6675_v46 = vor.u32 %v9762_v41, %v6674_v40  ;;  %2513 = vmatpush.bf16.msra.mxu0 %v6419_v44 }
  0x2f   :  { %v6402_v47 = vld [vmem:[#allocation5 + $0x60] sm:$0xf]  ;;  %v9694_v48 = vld [vmem:[#allocation5 + $0x6c] sm:$0xf0]  ;;  %v6803_v50 = vor.u32 %v9794_v43, %v6802_v42  ;;  %2527 = vmatpush.bf16.msra.mxu1 %v6547_v45 }
  0x30   :  { %v6530_v49 = vld [vmem:[#allocation5 + $0x160] sm:$0xf]  ;;  %v9726_v51 = vld [vmem:[#allocation5 + $0x16c] sm:$0xf0]  ;;  %v6403_v56 = vor.u32 %v9694_v48, %v6402_v47  ;;  %2541 = vmatpush.bf16.msra.mxu2 %v6675_v46 }
  0x31   :  { %v6658_v52 = vld [vmem:[#allocation5 + $0x260] sm:$0xf]  ;;  %v9758_v53 = vld [vmem:[#allocation5 + $0x26c] sm:$0xf0]  ;;  %v6531_v57 = vor.u32 %v9726_v51, %v6530_v49  ;;  %2555 = vmatpush.bf16.msra.mxu3 %v6803_v50 }
  0x32   :  { %v6786_v54 = vld [vmem:[#allocation5 + $0x360] sm:$0xf]  ;;  %v9790_v55 = vld [vmem:[#allocation5 + $0x36c] sm:$0xf0]  ;;  %v6659_v58 = vor.u32 %v9758_v53, %v6658_v52  ;;  %2514 = vmatpush.bf16.msra.mxu0 %v6403_v56 }
  0x33   :  { %v6386_v59 = vld [vmem:[#allocation5 + $0x40] sm:$0xf]  ;;  %v9690_v60 = vld [vmem:[#allocation5 + $0x4c] sm:$0xf0]  ;;  %v6787_v62 = vor.u32 %v9790_v55, %v6786_v54  ;;  %2528 = vmatpush.bf16.msra.mxu1 %v6531_v57 }
  0x34   :  { %v6514_v61 = vld [vmem:[#allocation5 + $0x140] sm:$0xf]  ;;  %v9722_v63 = vld [vmem:[#allocation5 + $0x14c] sm:$0xf0]  ;;  %v6387_v4 = vor.u32 %v9690_v60, %v6386_v59  ;;  %2542 = vmatpush.bf16.msra.mxu2 %v6659_v58 }
  0x35   :  { %v6642_v0 = vld [vmem:[#allocation5 + $0x240] sm:$0xf]  ;;  %v9754_v1 = vld [vmem:[#allocation5 + $0x24c] sm:$0xf0]  ;;  %v6515_v5 = vor.u32 %v9722_v63, %v6514_v61  ;;  %2556 = vmatpush.bf16.msra.mxu3 %v6787_v62 }
  0x36   :  { %v6770_v2 = vld [vmem:[#allocation5 + $0x340] sm:$0xf]  ;;  %v9786_v3 = vld [vmem:[#allocation5 + $0x34c] sm:$0xf0]  ;;  %v6643_v6 = vor.u32 %v9754_v1, %v6642_v0  ;;  %2515 = vmatpush.bf16.msra.mxu0 %v6387_v4 }
  0x37   :  { %v6370_v7 = vld [vmem:[#allocation5 + $0x20] sm:$0xf]  ;;  %v9686_v8 = vld [vmem:[#allocation5 + $0x2c] sm:$0xf0]  ;;  %v6771_v10 = vor.u32 %v9786_v3, %v6770_v2  ;;  %2529 = vmatpush.bf16.msra.mxu1 %v6515_v5 }
  0x38   :  { %v6498_v9 = vld [vmem:[#allocation5 + $0x120] sm:$0xf]  ;;  %v9718_v11 = vld [vmem:[#allocation5 + $0x12c] sm:$0xf0]  ;;  %v6371_v16 = vor.u32 %v9686_v8, %v6370_v7  ;;  %2543 = vmatpush.bf16.msra.mxu2 %v6643_v6 }
  0x39   :  { %v6626_v12 = vld [vmem:[#allocation5 + $0x220] sm:$0xf]  ;;  %v9750_v13 = vld [vmem:[#allocation5 + $0x22c] sm:$0xf0]  ;;  %v6499_v19 = vor.u32 %v9718_v11, %v6498_v9  ;;  %2557 = vmatpush.bf16.msra.mxu3 %v6771_v10 }
  0x3a   :  { %v6754_v14 = vld [vmem:[#allocation5 + $0x320] sm:$0xf]  ;;  %v9782_v15 = vld [vmem:[#allocation5 + $0x32c] sm:$0xf0]  ;;  %v6627_v20 = vor.u32 %v9750_v13, %v6626_v12  ;;  %2516 = vmatpush.bf16.msra.mxu0 %v6371_v16 }
  0x3b   :  { %v6354_v17 = vld [vmem:[#allocation5] sm:$0xf]  ;;  %v9682_v18 = vld [vmem:[#allocation5 + $0xc] sm:$0xf0]  ;;  %v6755_v24 = vor.u32 %v9782_v15, %v6754_v14  ;;  %2530 = vmatpush.bf16.msra.mxu1 %v6499_v19  ;;  %v10781_v14 = vld [vmem:[#allocation2 + $0x8] sm:$0xff] }
  0x3c   :  { %v6482_v21 = vld [vmem:[#allocation5 + $0x100] sm:$0xf]  ;;  %v9714_v22 = vld [vmem:[#allocation5 + $0x10c] sm:$0xf0]  ;;  %v6355_v31 = vor.u32 %v9682_v18, %v6354_v17  ;;  %2544 = vmatpush.bf16.msra.mxu2 %v6627_v20  ;;  %v10783_v17 = vld [vmem:[#allocation2 + $0x28] sm:$0xff]  ;;  %v145_v18 = vrot.slane %v10781_v14, 7 }
  0x3d   :  { %v6610_v23 = vld [vmem:[#allocation5 + $0x200] sm:$0xf]  ;;  %v9746_v25 = vld [vmem:[#allocation5 + $0x20c] sm:$0xf0]  ;;  %v6483_v35 = vor.u32 %v9714_v22, %v6482_v21  ;;  %2558 = vmatpush.bf16.msra.mxu3 %v6755_v24  ;;  %v10786_v19 = vld [vmem:[#allocation2 + $0x18] sm:$0xff] }
  0x3e   :  { %v6738_v26 = vld [vmem:[#allocation5 + $0x300] sm:$0xf]  ;;  %v9778_v27 = vld [vmem:[#allocation5 + $0x30c] sm:$0xf0]  ;;  %v6611_v36 = vor.u32 %v9746_v25, %v6610_v23  ;;  %2517 = vmatpush.bf16.msra.mxu0 %v6355_v31  ;;  %v10788_v20 = vld [vmem:[#allocation2 + $0x38] sm:$0xff]  ;;  %v149_v23 = vrot.slane %v10783_v17, 7 }
  0x3f   :  { %v6978_v28 = vld [vmem:[#allocation5 + $0x4e0] sm:$0xf]  ;;  %v9838_v29 = vld [vmem:[#allocation5 + $0x4ec] sm:$0xf0]  ;;  %v6739_v39 = vor.u32 %v9778_v27, %v6738_v26  ;;  %2531 = vmatpush.bf16.msra.mxu1 %v6483_v35  ;;  %v147_v24 = vrot.slane %v10786_v19, 7  ;;  %v151_v25 = vrot.slane %v10788_v20, 7 }
  0x40   :  { %v7106_v30 = vld [vmem:[#allocation5 + $0x5e0] sm:$0xf]  ;;  %v9870_v32 = vld [vmem:[#allocation5 + $0x5ec] sm:$0xf0]  ;;  %v6979_v40 = vor.u32 %v9838_v29, %v6978_v28  ;;  %2545 = vmatpush.bf16.msra.mxu2 %v6611_v36 }
  0x41   :  { %v7234_v33 = vld [vmem:[#allocation5 + $0x6e0] sm:$0xf]  ;;  %v9902_v34 = vld [vmem:[#allocation5 + $0x6ec] sm:$0xf0]  ;;  %v7107_v43 = vor.u32 %v9870_v32, %v7106_v30  ;;  %2559 = vmatpush.bf16.msra.mxu3 %v6739_v39  ;;  %v10799_v32 = vpack.c.bf16 %v149_v23, %v145_v18 }
  0x42   :  { %v7362_v37 = vld [vmem:[#allocation5 + $0x7e0] sm:$0xf]  ;;  %v9934_v38 = vld [vmem:[#allocation5 + $0x7ec] sm:$0xf0]  ;;  %v7235_v44 = vor.u32 %v9902_v34, %v7234_v33  ;;  %2566 = vmatpush.bf16.msrb.mxu0 %v6979_v40  ;;  %v10801_v33 = vpack.c.bf16 %v151_v25, %v147_v24 }
  0x43   :  { %v6962_v41 = vld [vmem:[#allocation5 + $0x4c0] sm:$0xf]  ;;  %v9834_v42 = vld [vmem:[#allocation5 + $0x4cc] sm:$0xf0]  ;;  %v7363_v48 = vor.u32 %v9934_v38, %v7362_v37  ;;  %2580 = vmatpush.bf16.msrb.mxu1 %v7107_v43 }
  0x44   :  { %v7090_v45 = vld [vmem:[#allocation5 + $0x5c0] sm:$0xf]  ;;  %v9866_v46 = vld [vmem:[#allocation5 + $0x5cc] sm:$0xf0]  ;;  %v6963_v57 = vor.u32 %v9834_v42, %v6962_v41  ;;  %2594 = vmatpush.bf16.msrb.mxu2 %v7235_v44  ;;  %7897 = vmatmul.msk.bf16.vlgmr.msra.gmra.mxu1 %vm10775_vm2, %v10799_v32 }
  0x45   :  { %v7218_v47 = vld [vmem:[#allocation5 + $0x6c0] sm:$0xf]  ;;  %v9898_v49 = vld [vmem:[#allocation5 + $0x6cc] sm:$0xf0]  ;;  %v7091_v0 = vor.u32 %v9866_v46, %v7090_v45  ;;  %2608 = vmatpush.bf16.msrb.mxu3 %v7363_v48 }
  0x46   :  { %v7346_v50 = vld [vmem:[#allocation5 + $0x7c0] sm:$0xf]  ;;  %v9930_v51 = vld [vmem:[#allocation5 + $0x7cc] sm:$0xf0]  ;;  %v7219_v1 = vor.u32 %v9898_v49, %v7218_v47  ;;  %2567 = vmatpush.bf16.msrb.mxu0 %v6963_v57  ;;  %7907 = vmatmul.msk.bf16.vlgmr.msra.gmra.mxu3 %vm10775_vm2, %v10801_v33 }
  0x47   :  { %v6946_v52 = vld [vmem:[#allocation5 + $0x4a0] sm:$0xf]  ;;  %v9830_v53 = vld [vmem:[#allocation5 + $0x4ac] sm:$0xf0]  ;;  %v7347_v5 = vor.u32 %v9930_v51, %v7346_v50  ;;  %2581 = vmatpush.bf16.msrb.mxu1 %v7091_v0 }
  0x48   :  { %v10754_v54 = vld [vmem:[#allocation2] sm:$0xff]  ;;  %v10758_v56 = vld [vmem:[#allocation2 + $0x10] sm:$0xff]  ;;  %v6947_v15 = vor.u32 %v9830_v53, %v6946_v52  ;;  %2595 = vmatpush.bf16.msrb.mxu2 %v7219_v1 }
  0x49   :  { %v10756_v55 = vld [vmem:[#allocation2 + $0x20] sm:$0xff]  ;;  %v144_v59 = vrot.slane %v10754_v54, 7  ;;  %v10766_v62 = vld [vmem:[#allocation2 + $0x30] sm:$0xff]  ;;  %v146_v63 = vrot.slane %v10758_v56, 7  ;;  %2609 = vmatpush.bf16.msrb.mxu3 %v7347_v5 }
  0x4a   :  { %v7074_v58 = vld [vmem:[#allocation5 + $0x5a0] sm:$0xf]  ;;  %v148_v60 = vrot.slane %v10756_v55, 7  ;;  %v9862_v2 = vld [vmem:[#allocation5 + $0x5ac] sm:$0xf0]  ;;  %v150_v4 = vrot.slane %v10766_v62, 7  ;;  %2568 = vmatpush.bf16.msrb.mxu0 %v6947_v15 }
  0x4b   :  { %v7202_v3 = vld [vmem:[#allocation5 + $0x6a0] sm:$0xf]  ;;  %v9894_v6 = vld [vmem:[#allocation5 + $0x6ac] sm:$0xf0]  ;;  %v7075_v16 = vor.u32 %v9862_v2, %v7074_v58 }
  0x4c   :  { %v7330_v7 = vld [vmem:[#allocation5 + $0x7a0] sm:$0xf]  ;;  %v9926_v8 = vld [vmem:[#allocation5 + $0x7ac] sm:$0xf0]  ;;  %v10770_v9 = vpack.c.bf16 %v148_v60, %v144_v59  ;;  %v10779_v13 = vpack.c.bf16 %v150_v4, %v146_v63  ;;  %v7203_v21 = vor.u32 %v9894_v6, %v7202_v3 }
  0x4d   :  { %v6930_v10 = vld [vmem:[#allocation5 + $0x480] sm:$0xf]  ;;  %v9826_v11 = vld [vmem:[#allocation5 + $0x48c] sm:$0xf0]  ;;  %v7331_v26 = vor.u32 %v9926_v8, %v7330_v7  ;;  %2582 = vmatpush.bf16.msrb.mxu1 %v7075_v16 }
  0x4e   :  { %v7058_v22 = vld [vmem:[#allocation5 + $0x580] sm:$0xf]  ;;  %v9858_v27 = vld [vmem:[#allocation5 + $0x58c] sm:$0xf0]  ;;  %7892 = vmatmul.msk.bf16.vlgmr.msra.gmra.mxu0 %vm10775_vm2, %v10770_v9  ;;  %7902 = vmatmul.msk.bf16.vlgmr.msra.gmra.mxu2 %vm10775_vm2, %v10779_v13  ;;  %v6931_v34 = vor.u32 %v9826_v11, %v6930_v10 }
  0x4f   :  { %v7186_v28 = vld [vmem:[#allocation5 + $0x680] sm:$0xf]  ;;  %v9890_v29 = vld [vmem:[#allocation5 + $0x68c] sm:$0xf0]  ;;  %2596 = vmatpush.bf16.msrb.mxu2 %v7203_v21  ;;  %v7059_v35 = vor.u32 %v9858_v27, %v7058_v22  ;;  %2610 = vmatpush.bf16.msrb.mxu3 %v7331_v26 }
  0x50   :  { %v7314_v30 = vld [vmem:[#allocation5 + $0x780] sm:$0xf]  ;;  %v9922_v31 = vld [vmem:[#allocation5 + $0x78c] sm:$0xf0]  ;;  %v7187_v36 = vor.u32 %v9890_v29, %v7186_v28  ;;  %2569 = vmatpush.bf16.msrb.mxu0 %v6931_v34 }
  0x51   :  { %v6914_v37 = vld [vmem:[#allocation5 + $0x460] sm:$0xf]  ;;  %v9822_v38 = vld [vmem:[#allocation5 + $0x46c] sm:$0xf0]  ;;  %v7315_v40 = vor.u32 %v9922_v31, %v7314_v30  ;;  %2583 = vmatpush.bf16.msrb.mxu1 %v7059_v35 }
  0x52   :  { %v7042_v39 = vld [vmem:[#allocation5 + $0x560] sm:$0xf]  ;;  %v9854_v41 = vld [vmem:[#allocation5 + $0x56c] sm:$0xf0]  ;;  %v6915_v46 = vor.u32 %v9822_v38, %v6914_v37 }
  0x53   :  { %v7170_v42 = vld [vmem:[#allocation5 + $0x660] sm:$0xf]  ;;  %v9886_v43 = vld [vmem:[#allocation5 + $0x66c] sm:$0xf0]  ;;  %2597 = vmatpush.bf16.msrb.mxu2 %v7187_v36  ;;  %v7043_v47 = vor.u32 %v9854_v41, %v7042_v39  ;;  %2611 = vmatpush.bf16.msrb.mxu3 %v7315_v40 }
  0x54   :  { %v7298_v44 = vld [vmem:[#allocation5 + $0x760] sm:$0xf]  ;;  %v9918_v45 = vld [vmem:[#allocation5 + $0x76c] sm:$0xf0]  ;;  %v7171_v48 = vor.u32 %v9886_v43, %v7170_v42  ;;  %2570 = vmatpush.bf16.msrb.mxu0 %v6915_v46 }
  0x55   :  { %v6898_v49 = vld [vmem:[#allocation5 + $0x440] sm:$0xf]  ;;  %v9818_v50 = vld [vmem:[#allocation5 + $0x44c] sm:$0xf0]  ;;  %v7299_v52 = vor.u32 %v9918_v45, %v7298_v44  ;;  %2584 = vmatpush.bf16.msrb.mxu1 %v7043_v47 }
  0x56   :  { %v7026_v51 = vld [vmem:[#allocation5 + $0x540] sm:$0xf]  ;;  %v9850_v53 = vld [vmem:[#allocation5 + $0x54c] sm:$0xf0]  ;;  %v6899_v61 = vor.u32 %v9818_v50, %v6898_v49  ;;  %v10811_v50 = vpack.c.bf16 %v10756_v55, %v10754_v54 }
  0x57   :  { %v7154_v57 = vld [vmem:[#allocation5 + $0x640] sm:$0xf]  ;;  %v9882_v58 = vld [vmem:[#allocation5 + $0x64c] sm:$0xf0]  ;;  %2598 = vmatpush.bf16.msrb.mxu2 %v7171_v48  ;;  %v7027_v63 = vor.u32 %v9850_v53, %v7026_v51  ;;  %2612 = vmatpush.bf16.msrb.mxu3 %v7299_v52 }
  0x58   :  { %v7282_v59 = vld [vmem:[#allocation5 + $0x740] sm:$0xf]  ;;  %v9914_v60 = vld [vmem:[#allocation5 + $0x74c] sm:$0xf0]  ;;  %v7155_v0 = vor.u32 %v9882_v58, %v7154_v57  ;;  %2571 = vmatpush.bf16.msrb.mxu0 %v6899_v61  ;;  %v10815_v57 = vpack.c.bf16 %v10766_v62, %v10758_v56  ;;  %v10819_v58 = vpack.c.bf16 %v10783_v17, %v10781_v14  ;;  %v10823_v61 = vpack.c.bf16 %v10788_v20, %v10786_v19 }
  0x59   :  { %v6882_v1 = vld [vmem:[#allocation5 + $0x420] sm:$0xf]  ;;  %v9814_v2 = vld [vmem:[#allocation5 + $0x42c] sm:$0xf0]  ;;  %v7283_v4 = vor.u32 %v9914_v60, %v7282_v59  ;;  %2585 = vmatpush.bf16.msrb.mxu1 %v7027_v63 }
  0x5a   :  { %v7010_v3 = vld [vmem:[#allocation5 + $0x520] sm:$0xf]  ;;  %v9846_v5 = vld [vmem:[#allocation5 + $0x52c] sm:$0xf0]  ;;  %v6883_v11 = vor.u32 %v9814_v2, %v6882_v1 }
  0x5b   :  { %v7138_v6 = vld [vmem:[#allocation5 + $0x620] sm:$0xf]  ;;  %v9878_v7 = vld [vmem:[#allocation5 + $0x62c] sm:$0xf0]  ;;  %2599 = vmatpush.bf16.msrb.mxu2 %v7155_v0  ;;  %v7011_v18 = vor.u32 %v9846_v5, %v7010_v3  ;;  %2613 = vmatpush.bf16.msrb.mxu3 %v7283_v4 }
  0x5c   :  { %v7266_v8 = vld [vmem:[#allocation5 + $0x720] sm:$0xf]  ;;  %v9910_v10 = vld [vmem:[#allocation5 + $0x72c] sm:$0xf0]  ;;  %v7139_v21 = vor.u32 %v9878_v7, %v7138_v6  ;;  %2572 = vmatpush.bf16.msrb.mxu0 %v6883_v11 }
  0x5d   :  { %v6866_v15 = vld [vmem:[#allocation5 + $0x400] sm:$0xf]  ;;  %v9810_v16 = vld [vmem:[#allocation5 + $0x40c] sm:$0xf0]  ;;  %v7267_v25 = vor.u32 %v9910_v10, %v7266_v8  ;;  %2586 = vmatpush.bf16.msrb.mxu1 %v7011_v18 }
  0x5e   :  { %v6994_v22 = vld [vmem:[#allocation5 + $0x500] sm:$0xf]  ;;  %v9842_v23 = vld [vmem:[#allocation5 + $0x50c] sm:$0xf0]  ;;  %v6867_v34 = vor.u32 %v9810_v16, %v6866_v15 }
  0x5f   :  { %v7122_v24 = vld [vmem:[#allocation5 + $0x600] sm:$0xf]  ;;  %v9874_v26 = vld [vmem:[#allocation5 + $0x60c] sm:$0xf0]  ;;  %2600 = vmatpush.bf16.msrb.mxu2 %v7139_v21  ;;  %v6995_v38 = vor.u32 %v9842_v23, %v6994_v22  ;;  %2614 = vmatpush.bf16.msrb.mxu3 %v7267_v25 }
  0x60   :  { %v7250_v27 = vld [vmem:[#allocation5 + $0x700] sm:$0xf]  ;;  %v9906_v28 = vld [vmem:[#allocation5 + $0x70c] sm:$0xf0]  ;;  %v7123_v39 = vor.u32 %v9874_v26, %v7122_v24  ;;  %2573 = vmatpush.bf16.msrb.mxu0 %v6867_v34 }
  0x61   :  { %v7490_v29 = vld [vmem:[#allocation5 + $0x8e0] sm:$0xf]  ;;  %v9966_v30 = vld [vmem:[#allocation5 + $0x8ec] sm:$0xf0]  ;;  %v7251_v42 = vor.u32 %v9906_v28, %v7250_v27  ;;  %2587 = vmatpush.bf16.msrb.mxu1 %v6995_v38 }
  0x62   :  { %v7618_v31 = vld [vmem:[#allocation5 + $0x9e0] sm:$0xf]  ;;  %v9998_v35 = vld [vmem:[#allocation5 + $0x9ec] sm:$0xf0]  ;;  %v7491_v43 = vor.u32 %v9966_v30, %v7490_v29 }
  0x63   :  { %v7746_v36 = vld [vmem:[#allocation5 + $0xae0] sm:$0xf]  ;;  %v10030_v37 = vld [vmem:[#allocation5 + $0xaec] sm:$0xf0]  ;;  %v7619_v44 = vor.u32 %v9998_v35, %v7618_v31  ;;  %2601 = vmatpush.bf16.msrb.mxu2 %v7123_v39  ;;  %2615 = vmatpush.bf16.msrb.mxu3 %v7251_v42 }
  0x64   :  { %v7874_v40 = vld [vmem:[#allocation5 + $0xbe0] sm:$0xf]  ;;  %v10062_v41 = vld [vmem:[#allocation5 + $0xbec] sm:$0xf0]  ;;  %v7747_v45 = vor.u32 %v10030_v37, %v7746_v36  ;;  %2622 = vmatpush.bf16.msra.mxu0 %v7491_v43  ;;  %2588 = vmatmul.bf16.vlgmr.msrb.gmra.mxu1 %v10819_v58 }
  0x65   :  { %v7474_v46 = vld [vmem:[#allocation5 + $0x8c0] sm:$0xf]  ;;  %v9962_v47 = vld [vmem:[#allocation5 + $0x8cc] sm:$0xf0]  ;;  %v7875_v49 = vor.u32 %v10062_v41, %v7874_v40  ;;  %2636 = vmatpush.bf16.msra.mxu1 %v7619_v44  ;;  %2574 = vmatmul.bf16.vlgmr.msrb.gmra.mxu0 %v10811_v50 }
  0x66   :  { %v7602_v48 = vld [vmem:[#allocation5 + $0x9c0] sm:$0xf]  ;;  %v9994_v51 = vld [vmem:[#allocation5 + $0x9cc] sm:$0xf0]  ;;  %v7475_v63 = vor.u32 %v9962_v47, %v7474_v46  ;;  %2602 = vmatmul.bf16.vlgmr.msrb.gmra.mxu2 %v10815_v57  ;;  %2616 = vmatmul.bf16.vlgmr.msrb.gmra.mxu3 %v10823_v61 }
  0x67   :  { %v7730_v52 = vld [vmem:[#allocation5 + $0xac0] sm:$0xf]  ;;  %v10026_v53 = vld [vmem:[#allocation5 + $0xacc] sm:$0xf0]  ;;  %2650 = vmatpush.bf16.msra.mxu2 %v7747_v45  ;;  %v7603_v0 = vor.u32 %v9994_v51, %v7602_v48  ;;  %2664 = vmatpush.bf16.msra.mxu3 %v7875_v49 }
  0x68   :  { %v7858_v59 = vld [vmem:[#allocation5 + $0xbc0] sm:$0xf]  ;;  %v10058_v60 = vld [vmem:[#allocation5 + $0xbcc] sm:$0xf0]  ;;  %v7731_v1 = vor.u32 %v10026_v53, %v7730_v52  ;;  %2623 = vmatpush.bf16.msra.mxu0 %v7475_v63 }
  0x69   :  { %v7458_v2 = vld [vmem:[#allocation5 + $0x8a0] sm:$0xf]  ;;  %v9958_v3 = vld [vmem:[#allocation5 + $0x8ac] sm:$0xf0]  ;;  %v7859_v5 = vor.u32 %v10058_v60, %v7858_v59  ;;  %2637 = vmatpush.bf16.msra.mxu1 %v7603_v0 }
  0x6a   :  { %v7586_v4 = vld [vmem:[#allocation5 + $0x9a0] sm:$0xf]  ;;  %v9990_v6 = vld [vmem:[#allocation5 + $0x9ac] sm:$0xf0]  ;;  %v7459_v15 = vor.u32 %v9958_v3, %v7458_v2 }
  0x6b   :  { %v7714_v7 = vld [vmem:[#allocation5 + $0xaa0] sm:$0xf]  ;;  %v10022_v8 = vld [vmem:[#allocation5 + $0xaac] sm:$0xf0]  ;;  %2651 = vmatpush.bf16.msra.mxu2 %v7731_v1  ;;  %v7587_v16 = vor.u32 %v9990_v6, %v7586_v4  ;;  %2665 = vmatpush.bf16.msra.mxu3 %v7859_v5 }
  0x6c   :  { %v7842_v10 = vld [vmem:[#allocation5 + $0xba0] sm:$0xf]  ;;  %v10054_v11 = vld [vmem:[#allocation5 + $0xbac] sm:$0xf0]  ;;  %v7715_v18 = vor.u32 %v10022_v8, %v7714_v7  ;;  %2624 = vmatpush.bf16.msra.mxu0 %v7459_v15 }
  0x6d   :  { %v7442_v21 = vld [vmem:[#allocation5 + $0x880] sm:$0xf]  ;;  %v9954_v22 = vld [vmem:[#allocation5 + $0x88c] sm:$0xf0]  ;;  %v7843_v24 = vor.u32 %v10054_v11, %v7842_v10  ;;  %2638 = vmatpush.bf16.msra.mxu1 %v7587_v16 }
  0x6e   :  { %v7570_v23 = vld [vmem:[#allocation5 + $0x980] sm:$0xf]  ;;  %v9986_v25 = vld [vmem:[#allocation5 + $0x98c] sm:$0xf0]  ;;  %v7443_v30 = vor.u32 %v9954_v22, %v7442_v21 }
  0x6f   :  { %v7698_v26 = vld [vmem:[#allocation5 + $0xa80] sm:$0xf]  ;;  %v10018_v27 = vld [vmem:[#allocation5 + $0xa8c] sm:$0xf0]  ;;  %2652 = vmatpush.bf16.msra.mxu2 %v7715_v18  ;;  %v7571_v31 = vor.u32 %v9986_v25, %v7570_v23  ;;  %2666 = vmatpush.bf16.msra.mxu3 %v7843_v24 }
  0x70   :  { %v7826_v28 = vld [vmem:[#allocation5 + $0xb80] sm:$0xf]  ;;  %v10050_v29 = vld [vmem:[#allocation5 + $0xb8c] sm:$0xf0]  ;;  %v7699_v34 = vor.u32 %v10018_v27, %v7698_v26  ;;  %2625 = vmatpush.bf16.msra.mxu0 %v7443_v30 }
  0x71   :  { %v7426_v35 = vld [vmem:[#allocation5 + $0x860] sm:$0xf]  ;;  %v9950_v36 = vld [vmem:[#allocation5 + $0x86c] sm:$0xf0]  ;;  %v7827_v38 = vor.u32 %v10050_v29, %v7826_v28  ;;  %2639 = vmatpush.bf16.msra.mxu1 %v7571_v31  ;;  %v9708_v31 = vld [vmem:[#allocation5 + $0xe4] sm:$0xf] }
  0x72   :  { %v7554_v37 = vld [vmem:[#allocation5 + $0x960] sm:$0xf]  ;;  %v9982_v39 = vld [vmem:[#allocation5 + $0x96c] sm:$0xf0]  ;;  %v7427_v44 = vor.u32 %v9950_v36, %v7426_v35 }
  0x73   :  { %v7682_v40 = vld [vmem:[#allocation5 + $0xa60] sm:$0xf]  ;;  %v10014_v41 = vld [vmem:[#allocation5 + $0xa6c] sm:$0xf0]  ;;  %2653 = vmatpush.bf16.msra.mxu2 %v7699_v34  ;;  %v7555_v45 = vor.u32 %v9982_v39, %v7554_v37  ;;  %2667 = vmatpush.bf16.msra.mxu3 %v7827_v38  ;;  %v6468_v34 = vld [vmem:[#allocation5 + $0xf0] sm:$0xf0] }
  0x74   :  { %v7810_v42 = vld [vmem:[#allocation5 + $0xb60] sm:$0xf]  ;;  %v10046_v43 = vld [vmem:[#allocation5 + $0xb6c] sm:$0xf0]  ;;  %v7683_v46 = vor.u32 %v10014_v41, %v7682_v40  ;;  %2626 = vmatpush.bf16.msra.mxu0 %v7427_v44  ;;  %v9740_v37 = vld [vmem:[#allocation5 + $0x1e4] sm:$0xf] }
  0x75   :  { %v7410_v47 = vld [vmem:[#allocation5 + $0x840] sm:$0xf]  ;;  %v9946_v48 = vld [vmem:[#allocation5 + $0x84c] sm:$0xf0]  ;;  %v7811_v51 = vor.u32 %v10046_v43, %v7810_v42  ;;  %2640 = vmatpush.bf16.msra.mxu1 %v7555_v45  ;;  %v6596_v38 = vld [vmem:[#allocation5 + $0x1f0] sm:$0xf0] }
  0x76   :  { %v7538_v49 = vld [vmem:[#allocation5 + $0x940] sm:$0xf]  ;;  %v9978_v52 = vld [vmem:[#allocation5 + $0x94c] sm:$0xf0]  ;;  %v7411_v0 = vor.u32 %v9946_v48, %v7410_v47  ;;  %v9772_v39 = vld [vmem:[#allocation5 + $0x2e4] sm:$0xf] }
  0x77   :  { %v7666_v53 = vld [vmem:[#allocation5 + $0xa40] sm:$0xf]  ;;  %v10010_v59 = vld [vmem:[#allocation5 + $0xa4c] sm:$0xf0]  ;;  %2654 = vmatpush.bf16.msra.mxu2 %v7683_v46  ;;  %v7539_v2 = vor.u32 %v9978_v52, %v7538_v49  ;;  %2668 = vmatpush.bf16.msra.mxu3 %v7811_v51  ;;  %v6724_v42 = vld [vmem:[#allocation5 + $0x2f0] sm:$0xf0]  ;;  %v6471_v52 = vor.u32 %v9708_v31, %v6468_v34 }
  0x78   :  { %v7794_v60 = vld [vmem:[#allocation5 + $0xb40] sm:$0xf]  ;;  %v10042_v63 = vld [vmem:[#allocation5 + $0xb4c] sm:$0xf0]  ;;  %v7667_v3 = vor.u32 %v10010_v59, %v7666_v53  ;;  %2627 = vmatpush.bf16.msra.mxu0 %v7411_v0  ;;  %v9804_v43 = vld [vmem:[#allocation5 + $0x3e4] sm:$0xf]  ;;  %v6599_v59 = vor.u32 %v9740_v37, %v6596_v38 }
  0x79   :  { %v7394_v1 = vld [vmem:[#allocation5 + $0x820] sm:$0xf]  ;;  %v9942_v4 = vld [vmem:[#allocation5 + $0x82c] sm:$0xf0]  ;;  %v7795_v7 = vor.u32 %v10042_v63, %v7794_v60  ;;  %2641 = vmatpush.bf16.msra.mxu1 %v7539_v2  ;;  %v169_v44 = vrot.slane %v10754_v54, 1  ;;  %v173_v45 = vrot.slane %v10756_v55, 1  ;;  %v6727_v55 = vor.u32 %v9772_v39, %v6724_v42 }
  0x7a   :  { %v7522_v5 = vld [vmem:[#allocation5 + $0x920] sm:$0xf]  ;;  %v9974_v6 = vld [vmem:[#allocation5 + $0x92c] sm:$0xf0]  ;;  %v7395_v21 = vor.u32 %v9942_v4, %v7394_v1  ;;  %v6852_v46 = vld [vmem:[#allocation5 + $0x3f0] sm:$0xf0] }
  0x7b   :  { %v7650_v8 = vld [vmem:[#allocation5 + $0xa20] sm:$0xf]  ;;  %v10006_v10 = vld [vmem:[#allocation5 + $0xa2c] sm:$0xf0]  ;;  %2655 = vmatpush.bf16.msra.mxu2 %v7667_v3  ;;  %v7523_v25 = vor.u32 %v9974_v6, %v7522_v5  ;;  %2669 = vmatpush.bf16.msra.mxu3 %v7795_v7  ;;  %v171_v47 = vrot.slane %v10758_v56, 1  ;;  %v175_v48 = vrot.slane %v10766_v62, 1  ;;  %v6855_v56 = vor.u32 %v9804_v43, %v6852_v46 }
  0x7c   :  { %v7778_v11 = vld [vmem:[#allocation5 + $0xb20] sm:$0xf]  ;;  %v10038_v15 = vld [vmem:[#allocation5 + $0xb2c] sm:$0xf0]  ;;  %v7651_v26 = vor.u32 %v10006_v10, %v7650_v8  ;;  %2628 = vmatpush.bf16.msra.mxu0 %v7395_v21  ;;  %v170_v49 = vrot.slane %v10781_v14, 1  ;;  %v174_v51 = vrot.slane %v10783_v17, 1  ;;  %v10837_v1 = vpack.c.bf16 %v173_v45, %v169_v44 }
  0x7d   :  { %v7378_v16 = vld [vmem:[#allocation5 + $0x800] sm:$0xf]  ;;  %v9938_v18 = vld [vmem:[#allocation5 + $0x80c] sm:$0xf0]  ;;  %v7779_v30 = vor.u32 %v10038_v15, %v7778_v11  ;;  %2642 = vmatpush.bf16.msra.mxu1 %v7523_v25  ;;  %v172_v53 = vrot.slane %v10786_v19, 1  ;;  %v176_v54 = vrot.slane %v10788_v20, 1  ;;  %v10845_v19 = vpack.c.bf16 %v175_v48, %v171_v47 }
  0x7e   :  { %v7506_v22 = vld [vmem:[#allocation5 + $0x900] sm:$0xf]  ;;  %v9970_v23 = vld [vmem:[#allocation5 + $0x90c] sm:$0xf0]  ;;  %v7379_v35 = vor.u32 %v9938_v18, %v7378_v16  ;;  %v9704_v60 = vld [vmem:[#allocation5 + $0xc4] sm:$0xf]  ;;  %v10847_v20 = vpack.c.bf16 %v174_v51, %v170_v49 }
  0x7f   :  { %v7634_v24 = vld [vmem:[#allocation5 + $0xa00] sm:$0xf]  ;;  %v10002_v27 = vld [vmem:[#allocation5 + $0xa0c] sm:$0xf0]  ;;  %v7507_v36 = vor.u32 %v9970_v23, %v7506_v22  ;;  %2656 = vmatpush.bf16.msra.mxu2 %v7651_v26  ;;  %2670 = vmatpush.bf16.msra.mxu3 %v7779_v30  ;;  %v6452_v63 = vld [vmem:[#allocation5 + $0xd0] sm:$0xf0]  ;;  %v10849_v5 = vpack.c.bf16 %v176_v54, %v172_v53 }
  0x80   :  { %v7762_v28 = vld [vmem:[#allocation5 + $0xb00] sm:$0xf]  ;;  %v10034_v29 = vld [vmem:[#allocation5 + $0xb0c] sm:$0xf0]  ;;  %v7635_v40 = vor.u32 %v10002_v27, %v7634_v24  ;;  %v9736_v0 = vld [vmem:[#allocation5 + $0x1c4] sm:$0xf]  ;;  %2629 = vmatpush.bf16.msra.mxu0 %v7379_v35  ;;  %v6455_v6 = vor.u32 %v9704_v60, %v6452_v63 }
  0x81   :  { %v7763_v41 = vor.u32 %v10034_v29, %v7762_v28  ;;  %v6580_v62 = vld [vmem:[#allocation5 + $0x1d0] sm:$0xf0]  ;;  %v9768_v14 = vld [vmem:[#allocation5 + $0x2c4] sm:$0xf]  ;;  %2643 = vmatpush.bf16.msra.mxu1 %v7507_v36 }
  0x82   :  { %v6708_v2 = vld [vmem:[#allocation5 + $0x2d0] sm:$0xf0]  ;;  %v9800_v3 = vld [vmem:[#allocation5 + $0x3c4] sm:$0xf]  ;;  %v6583_v7 = vor.u32 %v9736_v0, %v6580_v62 }
  0x83   :  { %2657 = vmatpush.bf16.msra.mxu2 %v7635_v40  ;;  %v6836_v4 = vld [vmem:[#allocation5 + $0x3d0] sm:$0xf0]  ;;  %2671 = vmatpush.bf16.msra.mxu3 %v7763_v41  ;;  %v6711_v8 = vor.u32 %v9768_v14, %v6708_v2  ;;  %v9700_v10 = vld [vmem:[#allocation5 + $0xa4] sm:$0xf] }
  0x84   :  { %2678 = vmatpush.bf16.msrb.mxu0 %v6471_v52  ;;  %v6436_v11 = vld [vmem:[#allocation5 + $0xb0] sm:$0xf0]  ;;  %v9732_v15 = vld [vmem:[#allocation5 + $0x1a4] sm:$0xf]  ;;  %v6839_v16 = vor.u32 %v9800_v3, %v6836_v4  ;;  %7913 = vmatmul.msk.bf16.vlgmr.msra.gmra.mxu1 %vm10841_vm4, %v10847_v20 }
  0x85   :  { %2692 = vmatpush.bf16.msrb.mxu1 %v6599_v59  ;;  %7910 = vmatmul.msk.bf16.vlgmr.msra.gmra.mxu0 %vm10841_vm4, %v10837_v1  ;;  %v6564_v18 = vld [vmem:[#allocation5 + $0x1b0] sm:$0xf0]  ;;  %v9764_v21 = vld [vmem:[#allocation5 + $0x2a4] sm:$0xf]  ;;  %v6439_v25 = vor.u32 %v9700_v10, %v6436_v11 }
  0x86   :  { %v6692_v22 = vld [vmem:[#allocation5 + $0x2b0] sm:$0xf0]  ;;  %7916 = vmatmul.msk.bf16.vlgmr.msra.gmra.mxu2 %vm10841_vm4, %v10845_v19  ;;  %v9796_v23 = vld [vmem:[#allocation5 + $0x3a4] sm:$0xf]  ;;  %7919 = vmatmul.msk.bf16.vlgmr.msra.gmra.mxu3 %vm10841_vm4, %v10849_v5  ;;  %v6567_v26 = vor.u32 %v9732_v15, %v6564_v18 }
  0x87   :  { %2706 = vmatpush.bf16.msrb.mxu2 %v6727_v55  ;;  %2720 = vmatpush.bf16.msrb.mxu3 %v6855_v56  ;;  %v6820_v24 = vld [vmem:[#allocation5 + $0x3b0] sm:$0xf0]  ;;  %v6695_v27 = vor.u32 %v9764_v21, %v6692_v22  ;;  %v9696_v28 = vld [vmem:[#allocation5 + $0x84] sm:$0xf] }
  0x88   :  { %2679 = vmatpush.bf16.msrb.mxu0 %v6455_v6  ;;  %v6420_v29 = vld [vmem:[#allocation5 + $0x90] sm:$0xf0]  ;;  %v9728_v30 = vld [vmem:[#allocation5 + $0x184] sm:$0xf]  ;;  %v6823_v31 = vor.u32 %v9796_v23, %v6820_v24 }
  0x89   :  { %2693 = vmatpush.bf16.msrb.mxu1 %v6583_v7  ;;  %v6548_v34 = vld [vmem:[#allocation5 + $0x190] sm:$0xf0]  ;;  %v9760_v35 = vld [vmem:[#allocation5 + $0x284] sm:$0xf]  ;;  %v6423_v39 = vor.u32 %v9696_v28, %v6420_v29 }
  0x8a   :  { %v6676_v36 = vld [vmem:[#allocation5 + $0x290] sm:$0xf0]  ;;  %v9792_v37 = vld [vmem:[#allocation5 + $0x384] sm:$0xf]  ;;  %v6551_v40 = vor.u32 %v9728_v30, %v6548_v34 }
  0x8b   :  { %2707 = vmatpush.bf16.msrb.mxu2 %v6711_v8  ;;  %2721 = vmatpush.bf16.msrb.mxu3 %v6839_v16  ;;  %v6804_v38 = vld [vmem:[#allocation5 + $0x390] sm:$0xf0]  ;;  %v6679_v41 = vor.u32 %v9760_v35, %v6676_v36  ;;  %v9692_v42 = vld [vmem:[#allocation5 + $0x64] sm:$0xf] }
  0x8c   :  { %2680 = vmatpush.bf16.msrb.mxu0 %v6439_v25  ;;  %v6404_v43 = vld [vmem:[#allocation5 + $0x70] sm:$0xf0]  ;;  %v9724_v44 = vld [vmem:[#allocation5 + $0x164] sm:$0xf]  ;;  %v6807_v45 = vor.u32 %v9792_v37, %v6804_v38 }
  0x8d   :  { %2694 = vmatpush.bf16.msrb.mxu1 %v6567_v26  ;;  %v6532_v46 = vld [vmem:[#allocation5 + $0x170] sm:$0xf0]  ;;  %v9756_v47 = vld [vmem:[#allocation5 + $0x264] sm:$0xf]  ;;  %v6407_v52 = vor.u32 %v9692_v42, %v6404_v43 }
  0x8e   :  { %v6660_v48 = vld [vmem:[#allocation5 + $0x270] sm:$0xf0]  ;;  %v9788_v49 = vld [vmem:[#allocation5 + $0x364] sm:$0xf]  ;;  %v6535_v53 = vor.u32 %v9724_v44, %v6532_v46 }
  0x8f   :  { %2708 = vmatpush.bf16.msrb.mxu2 %v6695_v27  ;;  %2722 = vmatpush.bf16.msrb.mxu3 %v6823_v31  ;;  %v6788_v51 = vld [vmem:[#allocation5 + $0x370] sm:$0xf0]  ;;  %v6663_v54 = vor.u32 %v9756_v47, %v6660_v48  ;;  %v9688_v59 = vld [vmem:[#allocation5 + $0x44] sm:$0xf] }
  0x90   :  { %2681 = vmatpush.bf16.msrb.mxu0 %v6423_v39  ;;  %v6388_v55 = vld [vmem:[#allocation5 + $0x50] sm:$0xf0]  ;;  %v9720_v60 = vld [vmem:[#allocation5 + $0x144] sm:$0xf]  ;;  %v6791_v63 = vor.u32 %v9788_v49, %v6788_v51 }
  0x91   :  { %2695 = vmatpush.bf16.msrb.mxu1 %v6551_v40  ;;  %v6516_v0 = vld [vmem:[#allocation5 + $0x150] sm:$0xf0]  ;;  %v9752_v56 = vld [vmem:[#allocation5 + $0x244] sm:$0xf]  ;;  %v6391_v3 = vor.u32 %v9688_v59, %v6388_v55 }
  0x92   :  { %v6644_v62 = vld [vmem:[#allocation5 + $0x250] sm:$0xf0]  ;;  %v9784_v14 = vld [vmem:[#allocation5 + $0x344] sm:$0xf]  ;;  %v6519_v4 = vor.u32 %v9720_v60, %v6516_v0 }
  0x93   :  { %2709 = vmatpush.bf16.msrb.mxu2 %v6679_v41  ;;  %2723 = vmatpush.bf16.msrb.mxu3 %v6807_v45  ;;  %v6772_v2 = vld [vmem:[#allocation5 + $0x350] sm:$0xf0]  ;;  %v6647_v6 = vor.u32 %v9752_v56, %v6644_v62  ;;  %v9684_v7 = vld [vmem:[#allocation5 + $0x24] sm:$0xf] }
  0x94   :  { %2682 = vmatpush.bf16.msrb.mxu0 %v6407_v52  ;;  %v6372_v8 = vld [vmem:[#allocation5 + $0x30] sm:$0xf0]  ;;  %v9716_v10 = vld [vmem:[#allocation5 + $0x124] sm:$0xf]  ;;  %v6775_v11 = vor.u32 %v9784_v14, %v6772_v2 }
  0x95   :  { %2696 = vmatpush.bf16.msrb.mxu1 %v6535_v53  ;;  %v6500_v15 = vld [vmem:[#allocation5 + $0x130] sm:$0xf0]  ;;  %v9748_v16 = vld [vmem:[#allocation5 + $0x224] sm:$0xf]  ;;  %v6375_v23 = vor.u32 %v9684_v7, %v6372_v8 }
  0x96   :  { %v6628_v18 = vld [vmem:[#allocation5 + $0x230] sm:$0xf0]  ;;  %v9780_v21 = vld [vmem:[#allocation5 + $0x324] sm:$0xf]  ;;  %v6503_v26 = vor.u32 %v9716_v10, %v6500_v15 }
  0x97   :  { %2710 = vmatpush.bf16.msrb.mxu2 %v6663_v54  ;;  %2724 = vmatpush.bf16.msrb.mxu3 %v6791_v63  ;;  %v6756_v22 = vld [vmem:[#allocation5 + $0x330] sm:$0xf0]  ;;  %v9680_v24 = vld [vmem:[#allocation5 + $0x4] sm:$0xf]  ;;  %v6631_v27 = vor.u32 %v9748_v16, %v6628_v18 }
  0x98   :  { %2683 = vmatpush.bf16.msrb.mxu0 %v6391_v3  ;;  %v6356_v25 = vld [vmem:[#allocation5 + $0x10] sm:$0xf0]  ;;  %v9712_v28 = vld [vmem:[#allocation5 + $0x104] sm:$0xf]  ;;  %v6759_v31 = vor.u32 %v9780_v21, %v6756_v22 }
  0x99   :  { %2697 = vmatpush.bf16.msrb.mxu1 %v6519_v4  ;;  %v6484_v29 = vld [vmem:[#allocation5 + $0x110] sm:$0xf0]  ;;  %v9744_v30 = vld [vmem:[#allocation5 + $0x204] sm:$0xf]  ;;  %v6359_v40 = vor.u32 %v9680_v24, %v6356_v25 }
  0x9a   :  { %v6612_v34 = vld [vmem:[#allocation5 + $0x210] sm:$0xf0]  ;;  %v9776_v35 = vld [vmem:[#allocation5 + $0x304] sm:$0xf]  ;;  %v6487_v44 = vor.u32 %v9712_v28, %v6484_v29 }
  0x9b   :  { %2711 = vmatpush.bf16.msrb.mxu2 %v6647_v6  ;;  %2725 = vmatpush.bf16.msrb.mxu3 %v6775_v11  ;;  %v6740_v36 = vld [vmem:[#allocation5 + $0x310] sm:$0xf0]  ;;  %v9836_v37 = vld [vmem:[#allocation5 + $0x4e4] sm:$0xf]  ;;  %v6615_v45 = vor.u32 %v9744_v30, %v6612_v34 }
  0x9c   :  { %v6980_v38 = vld [vmem:[#allocation5 + $0x4f0] sm:$0xf0]  ;;  %v9868_v39 = vld [vmem:[#allocation5 + $0x5e4] sm:$0xf]  ;;  %2684 = vmatpush.bf16.msrb.mxu0 %v6375_v23  ;;  %v6743_v48 = vor.u32 %v9776_v35, %v6740_v36 }
  0x9d   :  { %v7108_v41 = vld [vmem:[#allocation5 + $0x5f0] sm:$0xf0]  ;;  %v9900_v42 = vld [vmem:[#allocation5 + $0x6e4] sm:$0xf]  ;;  %2698 = vmatpush.bf16.msrb.mxu1 %v6503_v26  ;;  %v6983_v49 = vor.u32 %v9836_v37, %v6980_v38 }
  0x9e   :  { %v7236_v43 = vld [vmem:[#allocation5 + $0x6f0] sm:$0xf0]  ;;  %v9932_v46 = vld [vmem:[#allocation5 + $0x7e4] sm:$0xf]  ;;  %v7111_v51 = vor.u32 %v9868_v39, %v7108_v41 }
  0x9f   :  { %2712 = vmatpush.bf16.msrb.mxu2 %v6631_v27  ;;  %v7364_v47 = vld [vmem:[#allocation5 + $0x7f0] sm:$0xf0]  ;;  %2726 = vmatpush.bf16.msrb.mxu3 %v6759_v31  ;;  %v7239_v52 = vor.u32 %v9900_v42, %v7236_v43  ;;  %v9832_v53 = vld [vmem:[#allocation5 + $0x4c4] sm:$0xf] }
  0xa0   :  { %v6964_v54 = vld [vmem:[#allocation5 + $0x4d0] sm:$0xf0]  ;;  %v9864_v59 = vld [vmem:[#allocation5 + $0x5c4] sm:$0xf]  ;;  %2685 = vmatpush.bf16.msrb.mxu0 %v6359_v40  ;;  %v7367_v55 = vor.u32 %v9932_v46, %v7364_v47 }
  0xa1   :  { %v7092_v60 = vld [vmem:[#allocation5 + $0x5d0] sm:$0xf0]  ;;  %v9896_v63 = vld [vmem:[#allocation5 + $0x6c4] sm:$0xf]  ;;  %2699 = vmatpush.bf16.msrb.mxu1 %v6487_v44  ;;  %v6967_v14 = vor.u32 %v9832_v53, %v6964_v54 }
  0xa2   :  { %v7220_v0 = vld [vmem:[#allocation5 + $0x6d0] sm:$0xf0]  ;;  %v9928_v56 = vld [vmem:[#allocation5 + $0x7c4] sm:$0xf]  ;;  %v7095_v2 = vor.u32 %v9864_v59, %v7092_v60 }
  0xa3   :  { %2713 = vmatpush.bf16.msrb.mxu2 %v6615_v45  ;;  %v7348_v62 = vld [vmem:[#allocation5 + $0x7d0] sm:$0xf0]  ;;  %2727 = vmatpush.bf16.msrb.mxu3 %v6743_v48  ;;  %v7223_v3 = vor.u32 %v9896_v63, %v7220_v0  ;;  %v9828_v4 = vld [vmem:[#allocation5 + $0x4a4] sm:$0xf] }
  0xa4   :  { %2734 = vmatpush.bf16.msra.mxu0 %v6983_v49  ;;  %v6948_v6 = vld [vmem:[#allocation5 + $0x4b0] sm:$0xf0]  ;;  %v9860_v7 = vld [vmem:[#allocation5 + $0x5a4] sm:$0xf]  ;;  %v7351_v8 = vor.u32 %v9928_v56, %v7348_v62  ;;  %7929 = vmatmul.msk.bf16.vlgmr.msrb.gmra.mxu1 %vm10775_vm2, %v10799_v32 }
  0xa5   :  { %2748 = vmatpush.bf16.msra.mxu1 %v7111_v51  ;;  %v7076_v10 = vld [vmem:[#allocation5 + $0x5b0] sm:$0xf0]  ;;  %v9892_v11 = vld [vmem:[#allocation5 + $0x6a4] sm:$0xf]  ;;  %7924 = vmatmul.msk.bf16.vlgmr.msrb.gmra.mxu0 %vm10775_vm2, %v10770_v9  ;;  %v6951_v21 = vor.u32 %v9828_v4, %v6948_v6 }
  0xa6   :  { %v7204_v15 = vld [vmem:[#allocation5 + $0x6b0] sm:$0xf0]  ;;  %v9924_v16 = vld [vmem:[#allocation5 + $0x7a4] sm:$0xf]  ;;  %7934 = vmatmul.msk.bf16.vlgmr.msrb.gmra.mxu2 %vm10775_vm2, %v10779_v13  ;;  %7939 = vmatmul.msk.bf16.vlgmr.msrb.gmra.mxu3 %vm10775_vm2, %v10801_v33  ;;  %v7079_v22 = vor.u32 %v9860_v7, %v7076_v10 }
  0xa7   :  { %2762 = vmatpush.bf16.msra.mxu2 %v7239_v52  ;;  %2776 = vmatpush.bf16.msra.mxu3 %v7367_v55  ;;  %v7332_v18 = vld [vmem:[#allocation5 + $0x7b0] sm:$0xf0]  ;;  %v7207_v23 = vor.u32 %v9892_v11, %v7204_v15  ;;  %v9824_v24 = vld [vmem:[#allocation5 + $0x484] sm:$0xf] }
  0xa8   :  { %2735 = vmatpush.bf16.msra.mxu0 %v6967_v14  ;;  %v6932_v25 = vld [vmem:[#allocation5 + $0x490] sm:$0xf0]  ;;  %v9856_v26 = vld [vmem:[#allocation5 + $0x584] sm:$0xf]  ;;  %v7335_v27 = vor.u32 %v9924_v16, %v7332_v18 }
  0xa9   :  { %2749 = vmatpush.bf16.msra.mxu1 %v7095_v2  ;;  %v7060_v28 = vld [vmem:[#allocation5 + $0x590] sm:$0xf0]  ;;  %v9888_v29 = vld [vmem:[#allocation5 + $0x684] sm:$0xf]  ;;  %v6935_v35 = vor.u32 %v9824_v24, %v6932_v25 }
  0xaa   :  { %v7188_v30 = vld [vmem:[#allocation5 + $0x690] sm:$0xf0]  ;;  %v9920_v31 = vld [vmem:[#allocation5 + $0x784] sm:$0xf]  ;;  %v7063_v36 = vor.u32 %v9856_v26, %v7060_v28 }
  0xab   :  { %2763 = vmatpush.bf16.msra.mxu2 %v7223_v3  ;;  %2777 = vmatpush.bf16.msra.mxu3 %v7351_v8  ;;  %v7316_v34 = vld [vmem:[#allocation5 + $0x790] sm:$0xf0]  ;;  %v7191_v37 = vor.u32 %v9888_v29, %v7188_v30  ;;  %v9820_v38 = vld [vmem:[#allocation5 + $0x464] sm:$0xf] }
  0xac   :  { %2736 = vmatpush.bf16.msra.mxu0 %v6951_v21  ;;  %v6916_v39 = vld [vmem:[#allocation5 + $0x470] sm:$0xf0]  ;;  %v9852_v40 = vld [vmem:[#allocation5 + $0x564] sm:$0xf]  ;;  %v7319_v41 = vor.u32 %v9920_v31, %v7316_v34 }
  0xad   :  { %2750 = vmatpush.bf16.msra.mxu1 %v7079_v22  ;;  %v7044_v42 = vld [vmem:[#allocation5 + $0x570] sm:$0xf0]  ;;  %v9884_v43 = vld [vmem:[#allocation5 + $0x664] sm:$0xf]  ;;  %v6919_v47 = vor.u32 %v9820_v38, %v6916_v39 }
  0xae   :  { %v7172_v44 = vld [vmem:[#allocation5 + $0x670] sm:$0xf0]  ;;  %v9916_v45 = vld [vmem:[#allocation5 + $0x764] sm:$0xf]  ;;  %v7047_v48 = vor.u32 %v9852_v40, %v7044_v42 }
  0xaf   :  { %2764 = vmatpush.bf16.msra.mxu2 %v7207_v23  ;;  %2778 = vmatpush.bf16.msra.mxu3 %v7335_v27  ;;  %v7300_v46 = vld [vmem:[#allocation5 + $0x770] sm:$0xf0]  ;;  %v7175_v49 = vor.u32 %v9884_v43, %v7172_v44  ;;  %v9816_v51 = vld [vmem:[#allocation5 + $0x444] sm:$0xf] }
  0xb0   :  { %2737 = vmatpush.bf16.msra.mxu0 %v6935_v35  ;;  %v6900_v52 = vld [vmem:[#allocation5 + $0x450] sm:$0xf0]  ;;  %v9848_v53 = vld [vmem:[#allocation5 + $0x544] sm:$0xf]  ;;  %v7303_v54 = vor.u32 %v9916_v45, %v7300_v46 }
  0xb1   :  { %2751 = vmatpush.bf16.msra.mxu1 %v7063_v36  ;;  %v7028_v59 = vld [vmem:[#allocation5 + $0x550] sm:$0xf0]  ;;  %v9880_v55 = vld [vmem:[#allocation5 + $0x644] sm:$0xf]  ;;  %v6903_v56 = vor.u32 %v9816_v51, %v6900_v52 }
  0xb2   :  { %v7156_v60 = vld [vmem:[#allocation5 + $0x650] sm:$0xf0]  ;;  %v9912_v63 = vld [vmem:[#allocation5 + $0x744] sm:$0xf]  ;;  %v7031_v62 = vor.u32 %v9848_v53, %v7028_v59 }
  0xb3   :  { %2765 = vmatpush.bf16.msra.mxu2 %v7191_v37  ;;  %2779 = vmatpush.bf16.msra.mxu3 %v7319_v41  ;;  %v7284_v0 = vld [vmem:[#allocation5 + $0x750] sm:$0xf0]  ;;  %v7159_v14 = vor.u32 %v9880_v55, %v7156_v60  ;;  %v9812_v2 = vld [vmem:[#allocation5 + $0x424] sm:$0xf] }
  0xb4   :  { %2738 = vmatpush.bf16.msra.mxu0 %v6919_v47  ;;  %v6884_v3 = vld [vmem:[#allocation5 + $0x430] sm:$0xf0]  ;;  %v9844_v4 = vld [vmem:[#allocation5 + $0x524] sm:$0xf]  ;;  %v7287_v6 = vor.u32 %v9912_v63, %v7284_v0 }
  0xb5   :  { %2752 = vmatpush.bf16.msra.mxu1 %v7047_v48  ;;  %v7012_v7 = vld [vmem:[#allocation5 + $0x530] sm:$0xf0]  ;;  %v9876_v8 = vld [vmem:[#allocation5 + $0x624] sm:$0xf]  ;;  %v6887_v16 = vor.u32 %v9812_v2, %v6884_v3 }
  0xb6   :  { %v7140_v10 = vld [vmem:[#allocation5 + $0x630] sm:$0xf0]  ;;  %v9908_v11 = vld [vmem:[#allocation5 + $0x724] sm:$0xf]  ;;  %v7015_v22 = vor.u32 %v9844_v4, %v7012_v7 }
  0xb7   :  { %2766 = vmatpush.bf16.msra.mxu2 %v7175_v49  ;;  %2780 = vmatpush.bf16.msra.mxu3 %v7303_v54  ;;  %v7268_v15 = vld [vmem:[#allocation5 + $0x730] sm:$0xf0]  ;;  %v9808_v18 = vld [vmem:[#allocation5 + $0x404] sm:$0xf]  ;;  %v7143_v23 = vor.u32 %v9876_v8, %v7140_v10 }
  0xb8   :  { %2739 = vmatpush.bf16.msra.mxu0 %v6903_v56  ;;  %v6868_v21 = vld [vmem:[#allocation5 + $0x410] sm:$0xf0]  ;;  %v9840_v24 = vld [vmem:[#allocation5 + $0x504] sm:$0xf]  ;;  %v7271_v27 = vor.u32 %v9908_v11, %v7268_v15 }
  0xb9   :  { %2753 = vmatpush.bf16.msra.mxu1 %v7031_v62  ;;  %v6996_v25 = vld [vmem:[#allocation5 + $0x510] sm:$0xf0]  ;;  %v9872_v26 = vld [vmem:[#allocation5 + $0x604] sm:$0xf]  ;;  %v6871_v36 = vor.u32 %v9808_v18, %v6868_v21 }
  0xba   :  { %v7124_v28 = vld [vmem:[#allocation5 + $0x610] sm:$0xf0]  ;;  %v9904_v29 = vld [vmem:[#allocation5 + $0x704] sm:$0xf]  ;;  %v6999_v40 = vor.u32 %v9840_v24, %v6996_v25 }
  0xbb   :  { %2767 = vmatpush.bf16.msra.mxu2 %v7159_v14  ;;  %2781 = vmatpush.bf16.msra.mxu3 %v7287_v6  ;;  %v7252_v30 = vld [vmem:[#allocation5 + $0x710] sm:$0xf0]  ;;  %v9964_v31 = vld [vmem:[#allocation5 + $0x8e4] sm:$0xf]  ;;  %v7127_v41 = vor.u32 %v9872_v26, %v7124_v28 }
  0xbc   :  { %v7492_v34 = vld [vmem:[#allocation5 + $0x8f0] sm:$0xf0]  ;;  %v9996_v35 = vld [vmem:[#allocation5 + $0x9e4] sm:$0xf]  ;;  %2740 = vmatpush.bf16.msra.mxu0 %v6887_v16  ;;  %v7255_v44 = vor.u32 %v9904_v29, %v7252_v30 }
  0xbd   :  { %v7620_v37 = vld [vmem:[#allocation5 + $0x9f0] sm:$0xf0]  ;;  %v10028_v38 = vld [vmem:[#allocation5 + $0xae4] sm:$0xf]  ;;  %2754 = vmatpush.bf16.msra.mxu1 %v7015_v22  ;;  %v7495_v45 = vor.u32 %v9964_v31, %v7492_v34 }
  0xbe   :  { %v7748_v39 = vld [vmem:[#allocation5 + $0xaf0] sm:$0xf0]  ;;  %v10060_v42 = vld [vmem:[#allocation5 + $0xbe4] sm:$0xf]  ;;  %v7623_v46 = vor.u32 %v9996_v35, %v7620_v37 }
  0xbf   :  { %2768 = vmatpush.bf16.msra.mxu2 %v7143_v23  ;;  %v7876_v43 = vld [vmem:[#allocation5 + $0xbf0] sm:$0xf0]  ;;  %2782 = vmatpush.bf16.msra.mxu3 %v7271_v27  ;;  %v7751_v47 = vor.u32 %v10028_v38, %v7748_v39  ;;  %v9960_v48 = vld [vmem:[#allocation5 + $0x8c4] sm:$0xf] }
  0xc0   :  { %v7476_v49 = vld [vmem:[#allocation5 + $0x8d0] sm:$0xf0]  ;;  %v9992_v51 = vld [vmem:[#allocation5 + $0x9c4] sm:$0xf]  ;;  %2741 = vmatpush.bf16.msra.mxu0 %v6871_v36  ;;  %v7879_v52 = vor.u32 %v10060_v42, %v7876_v43 }
  0xc1   :  { %v7604_v53 = vld [vmem:[#allocation5 + $0x9d0] sm:$0xf0]  ;;  %v10024_v54 = vld [vmem:[#allocation5 + $0xac4] sm:$0xf]  ;;  %2755 = vmatpush.bf16.msra.mxu1 %v6999_v40  ;;  %v7479_v63 = vor.u32 %v9960_v48, %v7476_v49 }
  0xc2   :  { %v7732_v59 = vld [vmem:[#allocation5 + $0xad0] sm:$0xf0]  ;;  %v10056_v55 = vld [vmem:[#allocation5 + $0xbc4] sm:$0xf]  ;;  %v7607_v0 = vor.u32 %v9992_v51, %v7604_v53 }
  0xc3   :  { %2769 = vmatpush.bf16.msra.mxu2 %v7127_v41  ;;  %v7860_v60 = vld [vmem:[#allocation5 + $0xbd0] sm:$0xf0]  ;;  %2783 = vmatpush.bf16.msra.mxu3 %v7255_v44  ;;  %v7735_v56 = vor.u32 %v10024_v54, %v7732_v59  ;;  %v9956_v62 = vld [vmem:[#allocation5 + $0x8a4] sm:$0xf] }
  0xc4   :  { %2790 = vmatpush.bf16.msrb.mxu0 %v7495_v45  ;;  %v7460_v14 = vld [vmem:[#allocation5 + $0x8b0] sm:$0xf0]  ;;  %v9988_v2 = vld [vmem:[#allocation5 + $0x9a4] sm:$0xf]  ;;  %v7863_v3 = vor.u32 %v10056_v55, %v7860_v60  ;;  %2756 = vmatmul.bf16.vlgmr.msra.gmra.mxu1 %v10819_v58  ;;  %v2533_v60 = vpop.f32.mrf.mxu1 }
  0xc5   :  { %2804 = vmatpush.bf16.msrb.mxu1 %v7623_v46  ;;  %2742 = vmatmul.bf16.vlgmr.msra.gmra.mxu0 %v10811_v50  ;;  %v7588_v4 = vld [vmem:[#allocation5 + $0x9b0] sm:$0xf0]  ;;  %v10020_v6 = vld [vmem:[#allocation5 + $0xaa4] sm:$0xf]  ;;  %v7463_v11 = vor.u32 %v9956_v62, %v7460_v14 }
  0xc6   :  { %v7716_v7 = vld [vmem:[#allocation5 + $0xab0] sm:$0xf0]  ;;  %2770 = vmatmul.bf16.vlgmr.msra.gmra.mxu2 %v10815_v57  ;;  %v10052_v8 = vld [vmem:[#allocation5 + $0xba4] sm:$0xf]  ;;  %2784 = vmatmul.bf16.vlgmr.msra.gmra.mxu3 %v10823_v61  ;;  %v7591_v15 = vor.u32 %v9988_v2, %v7588_v4 }
  0xc7   :  { %2818 = vmatpush.bf16.msrb.mxu2 %v7751_v47  ;;  %2832 = vmatpush.bf16.msrb.mxu3 %v7879_v52  ;;  %v7844_v10 = vld [vmem:[#allocation5 + $0xbb0] sm:$0xf0]  ;;  %v7719_v16 = vor.u32 %v10020_v6, %v7716_v7  ;;  %v9952_v18 = vld [vmem:[#allocation5 + $0x884] sm:$0xf] }
  0xc8   :  { %2791 = vmatpush.bf16.msrb.mxu0 %v7479_v63  ;;  %v7444_v21 = vld [vmem:[#allocation5 + $0x890] sm:$0xf0]  ;;  %v9984_v22 = vld [vmem:[#allocation5 + $0x984] sm:$0xf]  ;;  %v7847_v23 = vor.u32 %v10052_v8, %v7844_v10 }
  0xc9   :  { %2805 = vmatpush.bf16.msrb.mxu1 %v7607_v0  ;;  %v7572_v24 = vld [vmem:[#allocation5 + $0x990] sm:$0xf0]  ;;  %v10016_v25 = vld [vmem:[#allocation5 + $0xa84] sm:$0xf]  ;;  %v7447_v29 = vor.u32 %v9952_v18, %v7444_v21 }
  0xca   :  { %v7700_v26 = vld [vmem:[#allocation5 + $0xa90] sm:$0xf0]  ;;  %v10048_v27 = vld [vmem:[#allocation5 + $0xb84] sm:$0xf]  ;;  %v7575_v30 = vor.u32 %v9984_v22, %v7572_v24 }
  0xcb   :  { %2819 = vmatpush.bf16.msrb.mxu2 %v7735_v56  ;;  %2833 = vmatpush.bf16.msrb.mxu3 %v7863_v3  ;;  %v7828_v28 = vld [vmem:[#allocation5 + $0xb90] sm:$0xf0]  ;;  %v7703_v31 = vor.u32 %v10016_v25, %v7700_v26  ;;  %v9948_v34 = vld [vmem:[#allocation5 + $0x864] sm:$0xf]  ;;  %v2519_v55 = vpop.f32.mrf.mxu0 }
  0xcc   :  { %2792 = vmatpush.bf16.msrb.mxu0 %v7463_v11  ;;  %v7428_v35 = vld [vmem:[#allocation5 + $0x870] sm:$0xf0]  ;;  %v9980_v36 = vld [vmem:[#allocation5 + $0x964] sm:$0xf]  ;;  %v7831_v37 = vor.u32 %v10048_v27, %v7828_v28  ;;  %v2534_v0 = vadd.f32 %v2533_v60, %v2519_v55  ;;  %v9739_v60 = vld [vmem:[#allocation5 + $0x1d4] sm:$0xf0] }
  0xcd   :  { %2806 = vmatpush.bf16.msrb.mxu1 %v7591_v15  ;;  %v7556_v38 = vld [vmem:[#allocation5 + $0x970] sm:$0xf0]  ;;  %v10012_v39 = vld [vmem:[#allocation5 + $0xa64] sm:$0xf]  ;;  %v7431_v43 = vor.u32 %v9948_v34, %v7428_v35  ;;  %v2561_v34 = vpop.f32.mrf.mxu3  ;;  %v6474_v35 = vld [vmem:[#allocation5 + $0xe8] sm:$0xf] }
  0xce   :  { %v7684_v40 = vld [vmem:[#allocation5 + $0xa70] sm:$0xf0]  ;;  %v10044_v41 = vld [vmem:[#allocation5 + $0xb64] sm:$0xf]  ;;  %v7559_v44 = vor.u32 %v9980_v36, %v7556_v38  ;;  %v9711_v36 = vld [vmem:[#allocation5 + $0xf4] sm:$0xf0] }
  0xcf   :  { %2820 = vmatpush.bf16.msrb.mxu2 %v7719_v16  ;;  %2834 = vmatpush.bf16.msrb.mxu3 %v7847_v23  ;;  %v7812_v42 = vld [vmem:[#allocation5 + $0xb70] sm:$0xf0]  ;;  %v7687_v45 = vor.u32 %v10012_v39, %v7684_v40  ;;  %v9944_v46 = vld [vmem:[#allocation5 + $0x844] sm:$0xf]  ;;  %v9743_v40 = vld [vmem:[#allocation5 + $0x1f4] sm:$0xf0] }
  0xd0   :  { %2793 = vmatpush.bf16.msrb.mxu0 %v7447_v29  ;;  %v7412_v47 = vld [vmem:[#allocation5 + $0x850] sm:$0xf0]  ;;  %v9976_v48 = vld [vmem:[#allocation5 + $0x944] sm:$0xf]  ;;  %v7815_v49 = vor.u32 %v10044_v41, %v7812_v42  ;;  %v6730_v41 = vld [vmem:[#allocation5 + $0x2e8] sm:$0xf] }
  0xd1   :  { %2807 = vmatpush.bf16.msrb.mxu1 %v7575_v30  ;;  %v7540_v51 = vld [vmem:[#allocation5 + $0x950] sm:$0xf0]  ;;  %v10008_v52 = vld [vmem:[#allocation5 + $0xa44] sm:$0xf]  ;;  %v7415_v63 = vor.u32 %v9944_v46, %v7412_v47  ;;  %v2547_v10 = vpop.f32.mrf.mxu2  ;;  %v9775_v42 = vld [vmem:[#allocation5 + $0x2f4] sm:$0xf0] }
  0xd2   :  { %v7668_v53 = vld [vmem:[#allocation5 + $0xa50] sm:$0xf0]  ;;  %v10040_v54 = vld [vmem:[#allocation5 + $0xb44] sm:$0xf]  ;;  %v7543_v56 = vor.u32 %v9976_v48, %v7540_v51  ;;  %v2548_v16 = vadd.f32 %v2547_v10, %v2534_v0  ;;  %v9807_v46 = vld [vmem:[#allocation5 + $0x3f4] sm:$0xf0]  ;;  %v6475_v48 = vor.u32 %v9711_v36, %v6474_v35  ;;  %v6731_v51 = vor.u32 %v9775_v42, %v6730_v41 }
  0xd3   :  { %2821 = vmatpush.bf16.msrb.mxu2 %v7703_v31  ;;  %2835 = vmatpush.bf16.msrb.mxu3 %v7831_v37  ;;  %v7796_v59 = vld [vmem:[#allocation5 + $0xb50] sm:$0xf0]  ;;  %v7671_v62 = vor.u32 %v10008_v52, %v7668_v53  ;;  %v9940_v14 = vld [vmem:[#allocation5 + $0x824] sm:$0xf]  ;;  %v6602_v37 = vld [vmem:[#allocation5 + $0x1e8] sm:$0xf]  ;;  %v10881_v52 = vpop.f32.mrf.mxu0 }
  0xd4   :  { %2794 = vmatpush.bf16.msrb.mxu0 %v7431_v43  ;;  %v7396_v2 = vld [vmem:[#allocation5 + $0x830] sm:$0xf0]  ;;  %v9972_v3 = vld [vmem:[#allocation5 + $0x924] sm:$0xf]  ;;  %v7799_v4 = vor.u32 %v10040_v54, %v7796_v59  ;;  %v10879_v38 = vadd.f32 %v2561_v34, %v2548_v16  ;;  %v6458_v53 = vld [vmem:[#allocation5 + $0xc8] sm:$0xf] }
  0xd5   :  { %2808 = vmatpush.bf16.msrb.mxu1 %v7559_v44  ;;  %v7524_v6 = vld [vmem:[#allocation5 + $0x930] sm:$0xf0]  ;;  %v10004_v7 = vld [vmem:[#allocation5 + $0xa24] sm:$0xf]  ;;  %v7399_v18 = vor.u32 %v9940_v14, %v7396_v2  ;;  %v9707_v54 = vld [vmem:[#allocation5 + $0xd4] sm:$0xf0]  ;;  %v10883_v14 = vpop.f32.mrf.mxu1 }
  0xd6   :  { %v7652_v8 = vld [vmem:[#allocation5 + $0xa30] sm:$0xf0]  ;;  %v10036_v11 = vld [vmem:[#allocation5 + $0xb24] sm:$0xf]  ;;  %v7527_v23 = vor.u32 %v9972_v3, %v7524_v6  ;;  %v6586_v59 = vld [vmem:[#allocation5 + $0x1c8] sm:$0xf]  ;;  %v6459_v2 = vor.u32 %v9707_v54, %v6458_v53 }
  0xd7   :  { %2822 = vmatpush.bf16.msrb.mxu2 %v7687_v45  ;;  %2836 = vmatpush.bf16.msrb.mxu3 %v7815_v49  ;;  %v7780_v15 = vld [vmem:[#allocation5 + $0xb30] sm:$0xf0]  ;;  %v9936_v21 = vld [vmem:[#allocation5 + $0x804] sm:$0xf]  ;;  %v7655_v24 = vor.u32 %v10004_v7, %v7652_v8  ;;  %v6858_v45 = vld [vmem:[#allocation5 + $0x3e8] sm:$0xf]  ;;  %v6603_v49 = vor.u32 %v9743_v40, %v6602_v37  ;;  %v6587_v3 = vor.u32 %v9739_v60, %v6586_v59 }
  0xd8   :  { %2795 = vmatpush.bf16.msrb.mxu0 %v7415_v63  ;;  %v7380_v22 = vld [vmem:[#allocation5 + $0x810] sm:$0xf0]  ;;  %v9968_v25 = vld [vmem:[#allocation5 + $0x904] sm:$0xf]  ;;  %v7783_v28 = vor.u32 %v10036_v11, %v7780_v15  ;;  %v6859_v55 = vor.u32 %v9807_v46, %v6858_v45  ;;  %v6714_v63 = vld [vmem:[#allocation5 + $0x2c8] sm:$0xf] }
  0xd9   :  { %2809 = vmatpush.bf16.msrb.mxu1 %v7543_v56  ;;  %v7508_v26 = vld [vmem:[#allocation5 + $0x910] sm:$0xf0]  ;;  %v10000_v27 = vld [vmem:[#allocation5 + $0xa04] sm:$0xf]  ;;  %v7383_v39 = vor.u32 %v9936_v21, %v7380_v22  ;;  %v9771_v0 = vld [vmem:[#allocation5 + $0x2d4] sm:$0xf0] }
  0xda   :  { %v7636_v29 = vld [vmem:[#allocation5 + $0xa10] sm:$0xf0]  ;;  %v10032_v30 = vld [vmem:[#allocation5 + $0xb04] sm:$0xf]  ;;  %v7511_v43 = vor.u32 %v9968_v25, %v7508_v26  ;;  %v6842_v56 = vld [vmem:[#allocation5 + $0x3c8] sm:$0xf] }
  0xdb   :  { %2823 = vmatpush.bf16.msrb.mxu2 %v7671_v62  ;;  %2837 = vmatpush.bf16.msrb.mxu3 %v7799_v4  ;;  %v7764_v31 = vld [vmem:[#allocation5 + $0xb10] sm:$0xf0]  ;;  %v7639_v44 = vor.u32 %v10000_v27, %v7636_v29  ;;  %v9803_v62 = vld [vmem:[#allocation5 + $0x3d4] sm:$0xf0]  ;;  %v6715_v4 = vor.u32 %v9771_v0, %v6714_v63  ;;  %v6442_v6 = vld [vmem:[#allocation5 + $0xa8] sm:$0xf] }
  0xdc   :  { %2796 = vmatpush.bf16.msrb.mxu0 %v7399_v18  ;;  %v7767_v47 = vor.u32 %v10032_v30, %v7764_v31  ;;  %v9703_v7 = vld [vmem:[#allocation5 + $0xb4] sm:$0xf0]  ;;  %v6570_v8 = vld [vmem:[#allocation5 + $0x1a8] sm:$0xf]  ;;  %v6843_v10 = vor.u32 %v9803_v62, %v6842_v56  ;;  %v10899_v30 = vpop.f32.mrf.mxu3 }
  0xdd   :  { %2810 = vmatpush.bf16.msrb.mxu1 %v7527_v23  ;;  %v9735_v11 = vld [vmem:[#allocation5 + $0x1b4] sm:$0xf0]  ;;  %v6698_v15 = vld [vmem:[#allocation5 + $0x2a8] sm:$0xf]  ;;  %v6443_v22 = vor.u32 %v9703_v7, %v6442_v6  ;;  %v10897_v23 = vpop.f32.mrf.mxu2 }
  0xde   :  { %v9767_v16 = vld [vmem:[#allocation5 + $0x2b4] sm:$0xf0]  ;;  %v6826_v18 = vld [vmem:[#allocation5 + $0x3a8] sm:$0xf] }
  0xdf   :  { %2824 = vmatpush.bf16.msrb.mxu2 %v7655_v24  ;;  %2838 = vmatpush.bf16.msrb.mxu3 %v7783_v28  ;;  %v9799_v21 = vld [vmem:[#allocation5 + $0x3b4] sm:$0xf0]  ;;  %v6571_v24 = vor.u32 %v9735_v11, %v6570_v8  ;;  %v6699_v25 = vor.u32 %v9767_v16, %v6698_v15  ;;  %v6426_v26 = vld [vmem:[#allocation5 + $0x88] sm:$0xf] }
  0xe0   :  { %2797 = vmatpush.bf16.msrb.mxu0 %v7383_v39  ;;  %v9699_v27 = vld [vmem:[#allocation5 + $0x94] sm:$0xf0]  ;;  %v6554_v28 = vld [vmem:[#allocation5 + $0x188] sm:$0xf]  ;;  %v6827_v29 = vor.u32 %v9799_v21, %v6826_v18 }
  0xe1   :  { %2811 = vmatpush.bf16.msrb.mxu1 %v7511_v43  ;;  %v9731_v31 = vld [vmem:[#allocation5 + $0x194] sm:$0xf0]  ;;  %v6682_v34 = vld [vmem:[#allocation5 + $0x288] sm:$0xf]  ;;  %v6427_v41 = vor.u32 %v9699_v27, %v6426_v26 }
  0xe2   :  { %v9763_v35 = vld [vmem:[#allocation5 + $0x294] sm:$0xf0]  ;;  %v2575_v36 = vpop.f32.mrf.mxu0  ;;  %v6810_v37 = vld [vmem:[#allocation5 + $0x388] sm:$0xf]  ;;  %v6555_v42 = vor.u32 %v9731_v31, %v6554_v28 }
  0xe3   :  { %2825 = vmatpush.bf16.msrb.mxu2 %v7639_v44  ;;  %2839 = vmatpush.bf16.msrb.mxu3 %v7767_v47  ;;  %v9795_v39 = vld [vmem:[#allocation5 + $0x394] sm:$0xf0]  ;;  %v2576_v40 = vadd.f32 %v2575_v36, %v10879_v38  ;;  %v6683_v43 = vor.u32 %v9763_v35, %v6682_v34  ;;  %v2589_v44 = vpop.f32.mrf.mxu1  ;;  %v6410_v45 = vld [vmem:[#allocation5 + $0x68] sm:$0xf] }
  0xe4   :  { %2846 = vmatpush.bf16.msra.mxu0 %v6475_v48  ;;  %7945 = vmatmul.msk.bf16.vlgmr.msrb.gmra.mxu1 %vm10841_vm4, %v10847_v20  ;;  %v9695_v46 = vld [vmem:[#allocation5 + $0x74] sm:$0xf0]  ;;  %v6538_v47 = vld [vmem:[#allocation5 + $0x168] sm:$0xf]  ;;  %v6811_v48 = vor.u32 %v9795_v39, %v6810_v37 }
  0xe5   :  { %2860 = vmatpush.bf16.msra.mxu1 %v6603_v49  ;;  %7942 = vmatmul.msk.bf16.vlgmr.msrb.gmra.mxu0 %vm10841_vm4, %v10837_v1  ;;  %v2590_v49 = vadd.f32 %v2589_v44, %v2576_v40  ;;  %v6666_v53 = vld [vmem:[#allocation5 + $0x268] sm:$0xf]  ;;  %v9759_v54 = vld [vmem:[#allocation5 + $0x274] sm:$0xf0]  ;;  %v6411_v60 = vor.u32 %v9695_v46, %v6410_v45 }
  0xe6   :  { %7948 = vmatmul.msk.bf16.vlgmr.msrb.gmra.mxu2 %vm10841_vm4, %v10845_v19  ;;  %7951 = vmatmul.msk.bf16.vlgmr.msrb.gmra.mxu3 %vm10841_vm4, %v10849_v5  ;;  %v6794_v59 = vld [vmem:[#allocation5 + $0x368] sm:$0xf]  ;;  %v6667_v63 = vor.u32 %v9759_v54, %v6666_v53  ;;  %v9691_v56 = vld [vmem:[#allocation5 + $0x54] sm:$0xf0] }
  0xe7   :  { %2874 = vmatpush.bf16.msra.mxu2 %v6731_v51  ;;  %2888 = vmatpush.bf16.msra.mxu3 %v6859_v55  ;;  %v9727_v51 = vld [vmem:[#allocation5 + $0x174] sm:$0xf0]  ;;  %v6394_v0 = vld [vmem:[#allocation5 + $0x48] sm:$0xf] }
  0xe8   :  { %2847 = vmatpush.bf16.msra.mxu0 %v6459_v2  ;;  %v9791_v55 = vld [vmem:[#allocation5 + $0x374] sm:$0xf0]  ;;  %v6539_v38 = vor.u32 %v9727_v51, %v6538_v47  ;;  %v6522_v62 = vld [vmem:[#allocation5 + $0x148] sm:$0xf]  ;;  %v6395_v16 = vor.u32 %v9691_v56, %v6394_v0 }
  0xe9   :  { %2861 = vmatpush.bf16.msra.mxu1 %v6587_v3  ;;  %v6795_v2 = vor.u32 %v9791_v55, %v6794_v59  ;;  %v2603_v3 = vpop.f32.mrf.mxu2  ;;  %v6650_v6 = vld [vmem:[#allocation5 + $0x248] sm:$0xf]  ;;  %v9755_v7 = vld [vmem:[#allocation5 + $0x254] sm:$0xf0]  ;;  %v2617_v15 = vpop.f32.mrf.mxu3 }
  0xea   :  { %v2604_v8 = vadd.f32 %v2603_v3, %v2590_v49  ;;  %v9787_v11 = vld [vmem:[#allocation5 + $0x354] sm:$0xf0]  ;;  %v6506_v26 = vld [vmem:[#allocation5 + $0x128] sm:$0xf] }
  0xeb   :  { %2875 = vmatpush.bf16.msra.mxu2 %v6715_v4  ;;  %2889 = vmatpush.bf16.msra.mxu3 %v6843_v10  ;;  %v9723_v4 = vld [vmem:[#allocation5 + $0x154] sm:$0xf0]  ;;  %v6778_v10 = vld [vmem:[#allocation5 + $0x348] sm:$0xf] }
  0xec   :  { %2848 = vmatpush.bf16.msra.mxu0 %v6443_v22  ;;  %v10902_v18 = vadd.f32 %v2617_v15, %v2604_v8  ;;  %v6523_v21 = vor.u32 %v9723_v4, %v6522_v62  ;;  %v6651_v22 = vor.u32 %v9755_v7, %v6650_v6  ;;  %v6779_v27 = vor.u32 %v9787_v11, %v6778_v10  ;;  %v9719_v28 = vld [vmem:[#allocation5 + $0x134] sm:$0xf0]  ;;  %v6762_v34 = vld [vmem:[#allocation5 + $0x328] sm:$0xf] }
  0xed   :  { %2862 = vmatpush.bf16.msra.mxu1 %v6571_v24  ;;  %v6378_v24 = vld [vmem:[#allocation5 + $0x28] sm:$0xf]  ;;  %v9751_v31 = vld [vmem:[#allocation5 + $0x234] sm:$0xf0]  ;;  %v6507_v40 = vor.u32 %v9719_v28, %v6506_v26 }
  0xee   :  { %v9783_v35 = vld [vmem:[#allocation5 + $0x334] sm:$0xf0]  ;;  %v6362_v37 = vld [vmem:[#allocation5 + $0x8] sm:$0xf] }
  0xef   :  { %2876 = vmatpush.bf16.msra.mxu2 %v6699_v25  ;;  %2890 = vmatpush.bf16.msra.mxu3 %v6827_v29  ;;  %v9687_v25 = vld [vmem:[#allocation5 + $0x34] sm:$0xf0]  ;;  %v6634_v29 = vld [vmem:[#allocation5 + $0x228] sm:$0xf]  ;;  %v6763_v45 = vor.u32 %v9783_v35, %v6762_v34 }
  0xf0   :  { %2849 = vmatpush.bf16.msra.mxu0 %v6427_v41  ;;  %v6379_v36 = vor.u32 %v9687_v25, %v6378_v24  ;;  %v9683_v39 = vld [vmem:[#allocation5 + $0x14] sm:$0xf0]  ;;  %v6635_v41 = vor.u32 %v9751_v31, %v6634_v29  ;;  %v6618_v44 = vld [vmem:[#allocation5 + $0x208] sm:$0xf]  ;;  %v10906_v25 = vpop.f32.mrf.mxu1 }
  0xf1   :  { %2863 = vmatpush.bf16.msra.mxu1 %v6555_v42  ;;  %v6490_v42 = vld [vmem:[#allocation5 + $0x108] sm:$0xf]  ;;  %v9747_v46 = vld [vmem:[#allocation5 + $0x214] sm:$0xf0]  ;;  %v6363_v54 = vor.u32 %v9683_v39, %v6362_v37 }
  0xf2   :  { %v6746_v47 = vld [vmem:[#allocation5 + $0x308] sm:$0xf]  ;;  %v9839_v51 = vld [vmem:[#allocation5 + $0x4f4] sm:$0xf0] }
  0xf3   :  { %2877 = vmatpush.bf16.msra.mxu2 %v6683_v43  ;;  %2891 = vmatpush.bf16.msra.mxu3 %v6811_v48  ;;  %v9715_v43 = vld [vmem:[#allocation5 + $0x114] sm:$0xf0]  ;;  %v6986_v49 = vld [vmem:[#allocation5 + $0x4e8] sm:$0xf] }
  0xf4   :  { %2850 = vmatpush.bf16.msra.mxu0 %v6411_v60  ;;  %v9779_v48 = vld [vmem:[#allocation5 + $0x314] sm:$0xf0]  ;;  %v7114_v53 = vld [vmem:[#allocation5 + $0x5e8] sm:$0xf] }
  0xf5   :  { %2864 = vmatpush.bf16.msra.mxu1 %v6539_v38  ;;  %v9871_v59 = vld [vmem:[#allocation5 + $0x5f4] sm:$0xf0]  ;;  %v7242_v55 = vld [vmem:[#allocation5 + $0x6e8] sm:$0xf]  ;;  %v6491_v38 = vor.u32 %v9715_v43, %v6490_v42  ;;  %v6747_v62 = vor.u32 %v9779_v48, %v6746_v47  ;;  %v10920_v48 = vpop.f32.mrf.mxu2 }
  0xf6   :  { %v9903_v60 = vld [vmem:[#allocation5 + $0x6f4] sm:$0xf0]  ;;  %v7370_v0 = vld [vmem:[#allocation5 + $0x7e8] sm:$0xf]  ;;  %v7115_v3 = vor.u32 %v9871_v59, %v7114_v53  ;;  %v10922_v59 = vpop.f32.mrf.mxu3 }
  0xf7   :  { %2878 = vmatpush.bf16.msra.mxu2 %v6667_v63  ;;  %2892 = vmatpush.bf16.msra.mxu3 %v6795_v2  ;;  %v6619_v63 = vor.u32 %v9747_v46, %v6618_v44  ;;  %v9935_v56 = vld [vmem:[#allocation5 + $0x7f4] sm:$0xf0]  ;;  %v6987_v2 = vor.u32 %v9839_v51, %v6986_v49  ;;  %v7243_v4 = vor.u32 %v9903_v60, %v7242_v55  ;;  %v6970_v6 = vld [vmem:[#allocation5 + $0x4c8] sm:$0xf] }
  0xf8   :  { %2851 = vmatpush.bf16.msra.mxu0 %v6395_v16  ;;  %v9835_v7 = vld [vmem:[#allocation5 + $0x4d4] sm:$0xf0]  ;;  %v7098_v8 = vld [vmem:[#allocation5 + $0x5c8] sm:$0xf]  ;;  %v7371_v10 = vor.u32 %v9935_v56, %v7370_v0 }
  0xf9   :  { %2865 = vmatpush.bf16.msra.mxu1 %v6523_v21  ;;  %v9867_v11 = vld [vmem:[#allocation5 + $0x5d4] sm:$0xf0]  ;;  %v7226_v15 = vld [vmem:[#allocation5 + $0x6c8] sm:$0xf]  ;;  %v10904_v21 = vpop.f32.mrf.mxu0  ;;  %v6971_v26 = vor.u32 %v9835_v7, %v6970_v6 }
  0xfa   :  { %v9899_v16 = vld [vmem:[#allocation5 + $0x6d4] sm:$0xf0]  ;;  %v6954_v29 = vld [vmem:[#allocation5 + $0x4a8] sm:$0xf] }
  0xfb   :  { %2879 = vmatpush.bf16.msra.mxu2 %v6651_v22  ;;  %2893 = vmatpush.bf16.msra.mxu3 %v6779_v27  ;;  %v7354_v22 = vld [vmem:[#allocation5 + $0x7c8] sm:$0xf]  ;;  %v9931_v24 = vld [vmem:[#allocation5 + $0x7d4] sm:$0xf0]  ;;  %v7099_v27 = vor.u32 %v9867_v11, %v7098_v8  ;;  %v7227_v28 = vor.u32 %v9899_v16, %v7226_v15 }
  0xfc   :  { %2852 = vmatpush.bf16.msra.mxu0 %v6379_v36  ;;  %v9831_v31 = vld [vmem:[#allocation5 + $0x4b4] sm:$0xf0]  ;;  %v7082_v34 = vld [vmem:[#allocation5 + $0x5a8] sm:$0xf]  ;;  %v7355_v35 = vor.u32 %v9931_v24, %v7354_v22 }
  0xfd   :  { %2866 = vmatpush.bf16.msra.mxu1 %v6507_v40  ;;  %v9863_v36 = vld [vmem:[#allocation5 + $0x5b4] sm:$0xf0]  ;;  %v7210_v37 = vld [vmem:[#allocation5 + $0x6a8] sm:$0xf]  ;;  %v6955_v42 = vor.u32 %v9831_v31, %v6954_v29 }
  0xfe   :  { %v9895_v39 = vld [vmem:[#allocation5 + $0x6b4] sm:$0xf0]  ;;  %v7338_v40 = vld [vmem:[#allocation5 + $0x7a8] sm:$0xf]  ;;  %v7083_v43 = vor.u32 %v9863_v36, %v7082_v34 }
  0xff   :  { %2880 = vmatpush.bf16.msra.mxu2 %v6635_v41  ;;  %2894 = vmatpush.bf16.msra.mxu3 %v6763_v45  ;;  %v9927_v41 = vld [vmem:[#allocation5 + $0x7b4] sm:$0xf0]  ;;  %v7211_v44 = vor.u32 %v9895_v39, %v7210_v37  ;;  %v6938_v45 = vld [vmem:[#allocation5 + $0x488] sm:$0xf] }
 0x100   :  { %2853 = vmatpush.bf16.msra.mxu0 %v6363_v54  ;;  %v9827_v46 = vld [vmem:[#allocation5 + $0x494] sm:$0xf0]  ;;  %v7066_v47 = vld [vmem:[#allocation5 + $0x588] sm:$0xf]  ;;  %v7339_v49 = vor.u32 %v9927_v41, %v7338_v40 }
 0x101   :  { %2867 = vmatpush.bf16.msra.mxu1 %v6491_v38  ;;  %v9859_v51 = vld [vmem:[#allocation5 + $0x594] sm:$0xf0]  ;;  %v7194_v53 = vld [vmem:[#allocation5 + $0x688] sm:$0xf]  ;;  %v6939_v0 = vor.u32 %v9827_v46, %v6938_v45  ;;  %v2645_v56 = vpop.f32.mrf.mxu1 }
 0x102   :  { %v9891_v54 = vld [vmem:[#allocation5 + $0x694] sm:$0xf0]  ;;  %v2631_v55 = vpop.f32.mrf.mxu0  ;;  %v7322_v60 = vld [vmem:[#allocation5 + $0x788] sm:$0xf] }
 0x103   :  { %2881 = vmatpush.bf16.msra.mxu2 %v6619_v63  ;;  %2895 = vmatpush.bf16.msra.mxu3 %v6747_v62  ;;  %v9923_v38 = vld [vmem:[#allocation5 + $0x794] sm:$0xf0]  ;;  %v2632_v63 = vadd.f32 %v2631_v55, %v10902_v18  ;;  %v7067_v62 = vor.u32 %v9859_v51, %v7066_v47  ;;  %v7050_v6 = vld [vmem:[#allocation5 + $0x568] sm:$0xf] }
 0x104   :  { %2902 = vmatpush.bf16.msrb.mxu0 %v6987_v2  ;;  %7961 = vmatmul.msk.bf16.vlgmr.msra.gmra.mxu1 %vm10775_vm2, %v10799_v32  ;;  %v7195_v2 = vor.u32 %v9891_v54, %v7194_v53  ;;  %v7323_v7 = vor.u32 %v9923_v38, %v7322_v60  ;;  %v7178_v11 = vld [vmem:[#allocation5 + $0x668] sm:$0xf]  ;;  %v9887_v15 = vld [vmem:[#allocation5 + $0x674] sm:$0xf0] }
 0x105   :  { %2916 = vmatpush.bf16.msrb.mxu1 %v7115_v3  ;;  %7956 = vmatmul.msk.bf16.vlgmr.msra.gmra.mxu0 %vm10775_vm2, %v10770_v9  ;;  %v6922_v3 = vld [vmem:[#allocation5 + $0x468] sm:$0xf]  ;;  %v2646_v8 = vadd.f32 %v2645_v56, %v2632_v63  ;;  %v9919_v22 = vld [vmem:[#allocation5 + $0x774] sm:$0xf0] }
 0x106   :  { %7966 = vmatmul.msk.bf16.vlgmr.msra.gmra.mxu2 %vm10775_vm2, %v10779_v13  ;;  %7971 = vmatmul.msk.bf16.vlgmr.msra.gmra.mxu3 %vm10775_vm2, %v10801_v33  ;;  %v7306_v16 = vld [vmem:[#allocation5 + $0x768] sm:$0xf]  ;;  %v9883_v37 = vld [vmem:[#allocation5 + $0x654] sm:$0xf0] }
 0x107   :  { %2930 = vmatpush.bf16.msrb.mxu2 %v7243_v4  ;;  %2944 = vmatpush.bf16.msrb.mxu3 %v7371_v10  ;;  %v9823_v4 = vld [vmem:[#allocation5 + $0x474] sm:$0xf0]  ;;  %v7034_v29 = vld [vmem:[#allocation5 + $0x548] sm:$0xf]  ;;  %v7307_v31 = vor.u32 %v9919_v22, %v7306_v16 }
 0x108   :  { %2903 = vmatpush.bf16.msrb.mxu0 %v6971_v26  ;;  %v9855_v10 = vld [vmem:[#allocation5 + $0x574] sm:$0xf0]  ;;  %v6923_v24 = vor.u32 %v9823_v4, %v6922_v3  ;;  %v7179_v26 = vor.u32 %v9887_v15, %v7178_v11  ;;  %v7162_v36 = vld [vmem:[#allocation5 + $0x648] sm:$0xf] }
 0x109   :  { %2917 = vmatpush.bf16.msrb.mxu1 %v7099_v27  ;;  %v7051_v18 = vor.u32 %v9855_v10, %v7050_v6  ;;  %v6906_v27 = vld [vmem:[#allocation5 + $0x448] sm:$0xf]  ;;  %v2659_v34 = vpop.f32.mrf.mxu2  ;;  %v2673_v40 = vpop.f32.mrf.mxu3  ;;  %v7163_v46 = vor.u32 %v9883_v37, %v7162_v36  ;;  %v9847_v54 = vld [vmem:[#allocation5 + $0x534] sm:$0xf0] }
 0x10a   :  { %v2660_v39 = vadd.f32 %v2659_v34, %v2646_v8  ;;  %v7290_v41 = vld [vmem:[#allocation5 + $0x748] sm:$0xf]  ;;  %v9879_v60 = vld [vmem:[#allocation5 + $0x634] sm:$0xf0] }
 0x10b   :  { %2931 = vmatpush.bf16.msrb.mxu2 %v7227_v28  ;;  %2945 = vmatpush.bf16.msrb.mxu3 %v7355_v35  ;;  %v9819_v28 = vld [vmem:[#allocation5 + $0x454] sm:$0xf0]  ;;  %v6890_v47 = vld [vmem:[#allocation5 + $0x428] sm:$0xf] }
 0x10c   :  { %2904 = vmatpush.bf16.msrb.mxu0 %v6955_v42  ;;  %v9851_v35 = vld [vmem:[#allocation5 + $0x554] sm:$0xf0]  ;;  %v7018_v51 = vld [vmem:[#allocation5 + $0x528] sm:$0xf] }
 0x10d   :  { %2918 = vmatpush.bf16.msrb.mxu1 %v7083_v43  ;;  %v9915_v42 = vld [vmem:[#allocation5 + $0x754] sm:$0xf0]  ;;  %v6907_v43 = vor.u32 %v9819_v28, %v6906_v27  ;;  %v7035_v45 = vor.u32 %v9851_v35, %v7034_v29  ;;  %v7146_v55 = vld [vmem:[#allocation5 + $0x628] sm:$0xf] }
 0x10e   :  { %v7291_v53 = vor.u32 %v9915_v42, %v7290_v41  ;;  %v7274_v38 = vld [vmem:[#allocation5 + $0x728] sm:$0xf]  ;;  %v9911_v63 = vld [vmem:[#allocation5 + $0x734] sm:$0xf0]  ;;  %v7147_v3 = vor.u32 %v9879_v60, %v7146_v55 }
 0x10f   :  { %2932 = vmatpush.bf16.msrb.mxu2 %v7211_v44  ;;  %2946 = vmatpush.bf16.msrb.mxu3 %v7339_v49  ;;  %v10925_v44 = vadd.f32 %v2673_v40, %v2660_v39  ;;  %v9815_v49 = vld [vmem:[#allocation5 + $0x434] sm:$0xf0]  ;;  %v6874_v56 = vld [vmem:[#allocation5 + $0x408] sm:$0xf]  ;;  %v7275_v8 = vor.u32 %v9911_v63, %v7274_v38 }
 0x110   :  { %2905 = vmatpush.bf16.msrb.mxu0 %v6939_v0  ;;  %v6891_v0 = vor.u32 %v9815_v49, %v6890_v47  ;;  %v7002_v4 = vld [vmem:[#allocation5 + $0x508] sm:$0xf]  ;;  %v9843_v6 = vld [vmem:[#allocation5 + $0x514] sm:$0xf0] }
 0x111   :  { %2919 = vmatpush.bf16.msrb.mxu1 %v7067_v62  ;;  %v9811_v62 = vld [vmem:[#allocation5 + $0x414] sm:$0xf0]  ;;  %v7258_v11 = vld [vmem:[#allocation5 + $0x708] sm:$0xf]  ;;  %v7003_v29 = vor.u32 %v9843_v6, %v7002_v4 }
 0x112   :  { %v9875_v10 = vld [vmem:[#allocation5 + $0x614] sm:$0xf0]  ;;  %v7498_v16 = vld [vmem:[#allocation5 + $0x8e8] sm:$0xf] }
 0x113   :  { %2933 = vmatpush.bf16.msrb.mxu2 %v7195_v2  ;;  %2947 = vmatpush.bf16.msrb.mxu3 %v7323_v7  ;;  %v7019_v2 = vor.u32 %v9847_v54, %v7018_v51  ;;  %v7130_v7 = vld [vmem:[#allocation5 + $0x608] sm:$0xf]  ;;  %v9907_v15 = vld [vmem:[#allocation5 + $0x714] sm:$0xf0] }
 0x114   :  { %2906 = vmatpush.bf16.msrb.mxu0 %v6923_v24  ;;  %v9967_v22 = vld [vmem:[#allocation5 + $0x8f4] sm:$0xf0]  ;;  %v7626_v24 = vld [vmem:[#allocation5 + $0x9e8] sm:$0xf]  ;;  %v7259_v36 = vor.u32 %v9907_v15, %v7258_v11 }
 0x115   :  { %2920 = vmatpush.bf16.msrb.mxu1 %v7051_v18  ;;  %v6875_v18 = vor.u32 %v9811_v62, %v6874_v56  ;;  %v7754_v27 = vld [vmem:[#allocation5 + $0xae8] sm:$0xf]  ;;  %v10031_v28 = vld [vmem:[#allocation5 + $0xaf4] sm:$0xf0]  ;;  %v7499_v37 = vor.u32 %v9967_v22, %v7498_v16 }
 0x116   :  { %v7882_v34 = vld [vmem:[#allocation5 + $0xbe8] sm:$0xf]  ;;  %v10063_v35 = vld [vmem:[#allocation5 + $0xbf4] sm:$0xf0]  ;;  %v7755_v40 = vor.u32 %v10031_v28, %v7754_v27 }
 0x117   :  { %2934 = vmatpush.bf16.msrb.mxu2 %v7179_v26  ;;  %2948 = vmatpush.bf16.msrb.mxu3 %v7307_v31  ;;  %v9999_v26 = vld [vmem:[#allocation5 + $0x9f4] sm:$0xf0]  ;;  %v7131_v31 = vor.u32 %v9875_v10, %v7130_v7  ;;  %v7482_v41 = vld [vmem:[#allocation5 + $0x8c8] sm:$0xf] }
 0x118   :  { %2907 = vmatpush.bf16.msrb.mxu0 %v6907_v43  ;;  %v7627_v39 = vor.u32 %v9999_v26, %v7626_v24  ;;  %v9963_v42 = vld [vmem:[#allocation5 + $0x8d4] sm:$0xf0]  ;;  %v7610_v43 = vld [vmem:[#allocation5 + $0x9c8] sm:$0xf] }
 0x119   :  { %2921 = vmatpush.bf16.msrb.mxu1 %v7035_v45  ;;  %v7883_v45 = vor.u32 %v10063_v35, %v7882_v34  ;;  %v7738_v47 = vld [vmem:[#allocation5 + $0xac8] sm:$0xf]  ;;  %v10027_v49 = vld [vmem:[#allocation5 + $0xad4] sm:$0xf0]  ;;  %v7483_v54 = vor.u32 %v9963_v42, %v7482_v41 }
 0x11a   :  { %v7866_v51 = vld [vmem:[#allocation5 + $0xbc8] sm:$0xf]  ;;  %v7739_v60 = vor.u32 %v10027_v49, %v7738_v47  ;;  %v9959_v63 = vld [vmem:[#allocation5 + $0x8b4] sm:$0xf0] }
 0x11b   :  { %2935 = vmatpush.bf16.msrb.mxu2 %v7163_v46  ;;  %2949 = vmatpush.bf16.msrb.mxu3 %v7291_v53  ;;  %v9995_v46 = vld [vmem:[#allocation5 + $0x9d4] sm:$0xf0]  ;;  %v7466_v38 = vld [vmem:[#allocation5 + $0x8a8] sm:$0xf] }
 0x11c   :  { %2908 = vmatpush.bf16.msrb.mxu0 %v6891_v0  ;;  %v10059_v53 = vld [vmem:[#allocation5 + $0xbd4] sm:$0xf0]  ;;  %v7611_v55 = vor.u32 %v9995_v46, %v7610_v43  ;;  %v7594_v0 = vld [vmem:[#allocation5 + $0x9a8] sm:$0xf]  ;;  %v7467_v7 = vor.u32 %v9959_v63, %v7466_v38 }
 0x11d   :  { %2922 = vmatpush.bf16.msrb.mxu1 %v7019_v2  ;;  %v7867_v56 = vor.u32 %v10059_v53, %v7866_v51  ;;  %v9991_v62 = vld [vmem:[#allocation5 + $0x9b4] sm:$0xf0]  ;;  %v7722_v2 = vld [vmem:[#allocation5 + $0xaa8] sm:$0xf] }
 0x11e   :  { %v7850_v4 = vld [vmem:[#allocation5 + $0xba8] sm:$0xf]  ;;  %v10055_v6 = vld [vmem:[#allocation5 + $0xbb4] sm:$0xf0] }
 0x11f   :  { %2936 = vmatpush.bf16.msrb.mxu2 %v7147_v3  ;;  %2950 = vmatpush.bf16.msrb.mxu3 %v7275_v8  ;;  %v10023_v3 = vld [vmem:[#allocation5 + $0xab4] sm:$0xf0]  ;;  %v7595_v8 = vor.u32 %v9991_v62, %v7594_v0  ;;  %v7450_v11 = vld [vmem:[#allocation5 + $0x888] sm:$0xf]  ;;  %v7851_v22 = vor.u32 %v10055_v6, %v7850_v4 }
 0x120   :  { %2909 = vmatpush.bf16.msrb.mxu0 %v6875_v18  ;;  %v7723_v10 = vor.u32 %v10023_v3, %v7722_v2  ;;  %v9955_v15 = vld [vmem:[#allocation5 + $0x894] sm:$0xf0]  ;;  %v7578_v16 = vld [vmem:[#allocation5 + $0x988] sm:$0xf] }
 0x121   :  { %2923 = vmatpush.bf16.msrb.mxu1 %v7003_v29  ;;  %v9987_v24 = vld [vmem:[#allocation5 + $0x994] sm:$0xf0]  ;;  %v7706_v18 = vld [vmem:[#allocation5 + $0xa88] sm:$0xf]  ;;  %v7451_v29 = vor.u32 %v9955_v15, %v7450_v11 }
 0x122   :  { %v10019_v26 = vld [vmem:[#allocation5 + $0xa94] sm:$0xf0]  ;;  %v7834_v27 = vld [vmem:[#allocation5 + $0xb88] sm:$0xf] }
 0x123   :  { %2937 = vmatpush.bf16.msrb.mxu2 %v7131_v31  ;;  %2951 = vmatpush.bf16.msrb.mxu3 %v7259_v36  ;;  %v10051_v28 = vld [vmem:[#allocation5 + $0xb94] sm:$0xf0]  ;;  %v7579_v31 = vor.u32 %v9987_v24, %v7578_v16  ;;  %v7707_v34 = vor.u32 %v10019_v26, %v7706_v18  ;;  %v7434_v35 = vld [vmem:[#allocation5 + $0x868] sm:$0xf] }
 0x124   :  { %2958 = vmatpush.bf16.msra.mxu0 %v7499_v37  ;;  %2924 = vmatmul.bf16.vlgmr.msrb.gmra.mxu1 %v10819_v58  ;;  %v9951_v36 = vld [vmem:[#allocation5 + $0x874] sm:$0xf0]  ;;  %v7562_v37 = vld [vmem:[#allocation5 + $0x968] sm:$0xf] }
 0x125   :  { %2972 = vmatpush.bf16.msra.mxu1 %v7627_v39  ;;  %2910 = vmatmul.bf16.vlgmr.msrb.gmra.mxu0 %v10811_v50  ;;  %v7835_v39 = vor.u32 %v10051_v28, %v7834_v27  ;;  %v7690_v41 = vld [vmem:[#allocation5 + $0xa68] sm:$0xf]  ;;  %v10015_v42 = vld [vmem:[#allocation5 + $0xa74] sm:$0xf0]  ;;  %v7435_v46 = vor.u32 %v9951_v36, %v7434_v35 }
 0x126   :  { %2938 = vmatmul.bf16.vlgmr.msrb.gmra.mxu2 %v10815_v57  ;;  %2952 = vmatmul.bf16.vlgmr.msrb.gmra.mxu3 %v10823_v61  ;;  %v7818_v43 = vld [vmem:[#allocation5 + $0xb68] sm:$0xf]  ;;  %v7691_v49 = vor.u32 %v10015_v42, %v7690_v41  ;;  %v9947_v53 = vld [vmem:[#allocation5 + $0x854] sm:$0xf0]  ;;  %v6476_v41 = vld [vmem:[#allocation5 + $0xf8] sm:$0xf0] }
 0x127   :  { %2986 = vmatpush.bf16.msra.mxu2 %v7755_v40  ;;  %3000 = vmatpush.bf16.msra.mxu3 %v7883_v45  ;;  %v9983_v40 = vld [vmem:[#allocation5 + $0x974] sm:$0xf0]  ;;  %v7418_v51 = vld [vmem:[#allocation5 + $0x848] sm:$0xf]  ;;  %v9741_v42 = vld [vmem:[#allocation5 + $0x1ec] sm:$0xf] }
 0x128   :  { %2959 = vmatpush.bf16.msra.mxu0 %v7483_v54  ;;  %v10047_v45 = vld [vmem:[#allocation5 + $0xb74] sm:$0xf0]  ;;  %v7563_v47 = vor.u32 %v9983_v40, %v7562_v37  ;;  %v7546_v54 = vld [vmem:[#allocation5 + $0x948] sm:$0xf]  ;;  %v7419_v62 = vor.u32 %v9947_v53, %v7418_v51  ;;  %v9709_v40 = vld [vmem:[#allocation5 + $0xec] sm:$0xf] }
 0x129   :  { %2973 = vmatpush.bf16.msra.mxu1 %v7611_v55  ;;  %v7819_v55 = vor.u32 %v10047_v45, %v7818_v43  ;;  %v7674_v38 = vld [vmem:[#allocation5 + $0xa48] sm:$0xf]  ;;  %v10011_v63 = vld [vmem:[#allocation5 + $0xa54] sm:$0xf0]  ;;  %v6604_v45 = vld [vmem:[#allocation5 + $0x1f8] sm:$0xf0] }
 0x12a   :  { %v7802_v0 = vld [vmem:[#allocation5 + $0xb48] sm:$0xf]  ;;  %v7675_v3 = vor.u32 %v10011_v63, %v7674_v38  ;;  %v9943_v6 = vld [vmem:[#allocation5 + $0x834] sm:$0xf0]  ;;  %v9805_v53 = vld [vmem:[#allocation5 + $0x3ec] sm:$0xf]  ;;  %v6607_v38 = vor.u32 %v9741_v42, %v6604_v45 }
 0x12b   :  { %2987 = vmatpush.bf16.msra.mxu2 %v7739_v60  ;;  %3001 = vmatpush.bf16.msra.mxu3 %v7867_v56  ;;  %v9979_v60 = vld [vmem:[#allocation5 + $0x954] sm:$0xf0]  ;;  %v7402_v4 = vld [vmem:[#allocation5 + $0x828] sm:$0xf]  ;;  %v6556_v42 = vld [vmem:[#allocation5 + $0x198] sm:$0xf0] }
 0x12c   :  { %2960 = vmatpush.bf16.msra.mxu0 %v7467_v7  ;;  %v10043_v56 = vld [vmem:[#allocation5 + $0xb54] sm:$0xf0]  ;;  %v7547_v2 = vor.u32 %v9979_v60, %v7546_v54  ;;  %v7530_v7 = vld [vmem:[#allocation5 + $0x928] sm:$0xf]  ;;  %v7403_v24 = vor.u32 %v9943_v6, %v7402_v4  ;;  %v6860_v54 = vld [vmem:[#allocation5 + $0x3f8] sm:$0xf0]  ;;  %v6479_v60 = vor.u32 %v9709_v40, %v6476_v41 }
 0x12d   :  { %2974 = vmatpush.bf16.msra.mxu1 %v7595_v8  ;;  %v7803_v8 = vor.u32 %v10043_v56, %v7802_v0  ;;  %v7658_v11 = vld [vmem:[#allocation5 + $0xa28] sm:$0xf]  ;;  %v10007_v15 = vld [vmem:[#allocation5 + $0xa34] sm:$0xf0]  ;;  %v9705_v0 = vld [vmem:[#allocation5 + $0xcc] sm:$0xf] }
 0x12e   :  { %v7786_v16 = vld [vmem:[#allocation5 + $0xb28] sm:$0xf]  ;;  %v9939_v26 = vld [vmem:[#allocation5 + $0x814] sm:$0xf0]  ;;  %v7659_v28 = vor.u32 %v10007_v15, %v7658_v11  ;;  %v6460_v56 = vld [vmem:[#allocation5 + $0xd8] sm:$0xf0] }
 0x12f   :  { %2988 = vmatpush.bf16.msra.mxu2 %v7723_v10  ;;  %3002 = vmatpush.bf16.msra.mxu3 %v7851_v22  ;;  %v9975_v10 = vld [vmem:[#allocation5 + $0x934] sm:$0xf0]  ;;  %v7386_v18 = vld [vmem:[#allocation5 + $0x808] sm:$0xf]  ;;  %v9769_v4 = vld [vmem:[#allocation5 + $0x2cc] sm:$0xf] }
 0x130   :  { %2961 = vmatpush.bf16.msra.mxu0 %v7451_v29  ;;  %v10039_v22 = vld [vmem:[#allocation5 + $0xb34] sm:$0xf0]  ;;  %v7531_v27 = vor.u32 %v9975_v10, %v7530_v7  ;;  %v7514_v29 = vld [vmem:[#allocation5 + $0x908] sm:$0xf]  ;;  %v7387_v43 = vor.u32 %v9939_v26, %v7386_v18  ;;  %v6716_v6 = vld [vmem:[#allocation5 + $0x2d8] sm:$0xf0]  ;;  %v6463_v10 = vor.u32 %v9705_v0, %v6460_v56 }
 0x131   :  { %2975 = vmatpush.bf16.msra.mxu1 %v7579_v31  ;;  %v9971_v31 = vld [vmem:[#allocation5 + $0x914] sm:$0xf0]  ;;  %v7787_v35 = vor.u32 %v10039_v22, %v7786_v16  ;;  %v7770_v37 = vld [vmem:[#allocation5 + $0xb08] sm:$0xf]  ;;  %v9801_v7 = vld [vmem:[#allocation5 + $0x3cc] sm:$0xf]  ;;  %v6719_v15 = vor.u32 %v9769_v4, %v6716_v6 }
 0x132   :  { %v10003_v36 = vld [vmem:[#allocation5 + $0xa14] sm:$0xf0]  ;;  %v9701_v16 = vld [vmem:[#allocation5 + $0xac] sm:$0xf]  ;;  %v6444_v22 = vld [vmem:[#allocation5 + $0xb8] sm:$0xf0] }
 0x133   :  { %2989 = vmatpush.bf16.msra.mxu2 %v7707_v34  ;;  %3003 = vmatpush.bf16.msra.mxu3 %v7835_v39  ;;  %v7642_v34 = vld [vmem:[#allocation5 + $0xa08] sm:$0xf]  ;;  %v10035_v39 = vld [vmem:[#allocation5 + $0xb14] sm:$0xf0]  ;;  %v6572_v26 = vld [vmem:[#allocation5 + $0x1b8] sm:$0xf0] }
 0x134   :  { %2962 = vmatpush.bf16.msra.mxu0 %v7435_v46  ;;  %v9773_v46 = vld [vmem:[#allocation5 + $0x2ec] sm:$0xf]  ;;  %v7643_v51 = vor.u32 %v10003_v36, %v7642_v34  ;;  %v6447_v34 = vor.u32 %v9701_v16, %v6444_v22  ;;  %v6684_v45 = vld [vmem:[#allocation5 + $0x298] sm:$0xf0] }
 0x135   :  { %2976 = vmatpush.bf16.msra.mxu1 %v7563_v47  ;;  %v6732_v47 = vld [vmem:[#allocation5 + $0x2f8] sm:$0xf0]  ;;  %v9729_v40 = vld [vmem:[#allocation5 + $0x18c] sm:$0xf] }
 0x136   :  { %v6735_v63 = vor.u32 %v9773_v46, %v6732_v47  ;;  %v9793_v46 = vld [vmem:[#allocation5 + $0x38c] sm:$0xf]  ;;  %v6812_v47 = vld [vmem:[#allocation5 + $0x398] sm:$0xf0] }
 0x137   :  { %2990 = vmatpush.bf16.msra.mxu2 %v7691_v49  ;;  %3004 = vmatpush.bf16.msra.mxu3 %v7819_v55  ;;  %v7515_v49 = vor.u32 %v9971_v31, %v7514_v29  ;;  %v7771_v55 = vor.u32 %v10035_v39, %v7770_v37  ;;  %v9797_v29 = vld [vmem:[#allocation5 + $0x3ac] sm:$0xf]  ;;  %v6828_v31 = vld [vmem:[#allocation5 + $0x3b8] sm:$0xf0] }
 0x138   :  { %2963 = vmatpush.bf16.msra.mxu0 %v7419_v62  ;;  %v9737_v62 = vld [vmem:[#allocation5 + $0x1cc] sm:$0xf]  ;;  %v6428_v39 = vld [vmem:[#allocation5 + $0x98] sm:$0xf0]  ;;  %v6831_v41 = vor.u32 %v9797_v29, %v6828_v31 }
 0x139   :  { %2977 = vmatpush.bf16.msra.mxu1 %v7547_v2  ;;  %v6863_v2 = vor.u32 %v9805_v53, %v6860_v54  ;;  %v9697_v37 = vld [vmem:[#allocation5 + $0x8c] sm:$0xf]  ;;  %v6668_v56 = vld [vmem:[#allocation5 + $0x278] sm:$0xf0] }
 0x13a   :  { %v9693_v54 = vld [vmem:[#allocation5 + $0x6c] sm:$0xf]  ;;  %v6652_v22 = vld [vmem:[#allocation5 + $0x258] sm:$0xf0] }
 0x13b   :  { %2991 = vmatpush.bf16.msra.mxu2 %v7675_v3  ;;  %3005 = vmatpush.bf16.msra.mxu3 %v7803_v8  ;;  %v6588_v3 = vld [vmem:[#allocation5 + $0x1d8] sm:$0xf0]  ;;  %v9757_v0 = vld [vmem:[#allocation5 + $0x26c] sm:$0xf] }
 0x13c   :  { %2964 = vmatpush.bf16.msra.mxu0 %v7403_v24  ;;  %v6844_v8 = vld [vmem:[#allocation5 + $0x3d8] sm:$0xf0]  ;;  %v6591_v11 = vor.u32 %v9737_v62, %v6588_v3  ;;  %v9733_v24 = vld [vmem:[#allocation5 + $0x1ac] sm:$0xf]  ;;  %v6671_v6 = vor.u32 %v9757_v0, %v6668_v56 }
 0x13d   :  { %2978 = vmatpush.bf16.msra.mxu1 %v7531_v27  ;;  %v6847_v18 = vor.u32 %v9801_v7, %v6844_v8  ;;  %v9765_v27 = vld [vmem:[#allocation5 + $0x2ac] sm:$0xf]  ;;  %v6396_v8 = vld [vmem:[#allocation5 + $0x58] sm:$0xf0] }
 0x13e   :  { %v9789_v62 = vld [vmem:[#allocation5 + $0x36c] sm:$0xf]  ;;  %v6380_v31 = vld [vmem:[#allocation5 + $0x38] sm:$0xf0] }
 0x13f   :  { %2992 = vmatpush.bf16.msra.mxu2 %v7659_v28  ;;  %3006 = vmatpush.bf16.msra.mxu3 %v7787_v35  ;;  %v6700_v28 = vld [vmem:[#allocation5 + $0x2b8] sm:$0xf0]  ;;  %v6575_v35 = vor.u32 %v9733_v24, %v6572_v26  ;;  %v9689_v7 = vld [vmem:[#allocation5 + $0x4c] sm:$0xf] }
 0x140   :  { %2965 = vmatpush.bf16.msra.mxu0 %v7387_v43  ;;  %v6703_v36 = vor.u32 %v9765_v27, %v6700_v28  ;;  %v9761_v43 = vld [vmem:[#allocation5 + $0x28c] sm:$0xf]  ;;  %v6399_v26 = vor.u32 %v9689_v7, %v6396_v8  ;;  %v6988_v0 = vld [vmem:[#allocation5 + $0x4f8] sm:$0xf0] }
 0x141   :  { %2979 = vmatpush.bf16.msra.mxu1 %v7515_v49  ;;  %v6431_v49 = vor.u32 %v9697_v37, %v6428_v39  ;;  %v6687_v53 = vor.u32 %v9761_v43, %v6684_v45  ;;  %v9753_v16 = vld [vmem:[#allocation5 + $0x24c] sm:$0xf]  ;;  %v6636_v39 = vld [vmem:[#allocation5 + $0x238] sm:$0xf0] }
 0x142   :  { %v9785_v24 = vld [vmem:[#allocation5 + $0x34c] sm:$0xf]  ;;  %v6655_v28 = vor.u32 %v9753_v16, %v6652_v22  ;;  %v6364_v45 = vld [vmem:[#allocation5 + $0x18] sm:$0xf0] }
 0x143   :  { %2993 = vmatpush.bf16.msra.mxu2 %v7643_v51  ;;  %3007 = vmatpush.bf16.msra.mxu3 %v7771_v55  ;;  %v6559_v51 = vor.u32 %v9729_v40, %v6556_v42  ;;  %v6412_v55 = vld [vmem:[#allocation5 + $0x78] sm:$0xf0]  ;;  %v9685_v29 = vld [vmem:[#allocation5 + $0x2c] sm:$0xf] }
 0x144   :  { %3014 = vmatpush.bf16.msrb.mxu0 %v6479_v60  ;;  %7977 = vmatmul.msk.bf16.vlgmr.msra.gmra.mxu1 %vm10841_vm4, %v10847_v20  ;;  %v9725_v60 = vld [vmem:[#allocation5 + $0x16c] sm:$0xf]  ;;  %v6415_v3 = vor.u32 %v9693_v54, %v6412_v55  ;;  %v6383_v42 = vor.u32 %v9685_v29, %v6380_v31  ;;  %v6620_v55 = vld [vmem:[#allocation5 + $0x218] sm:$0xf0] }
 0x145   :  { %3028 = vmatpush.bf16.msrb.mxu1 %v6607_v38  ;;  %7974 = vmatmul.msk.bf16.vlgmr.msra.gmra.mxu0 %vm10841_vm4, %v10837_v1  ;;  %v6815_v38 = vor.u32 %v9793_v46, %v6812_v47  ;;  %v9749_v37 = vld [vmem:[#allocation5 + $0x22c] sm:$0xf]  ;;  %v7100_v31 = vld [vmem:[#allocation5 + $0x5d8] sm:$0xf0] }
 0x146   :  { %7980 = vmatmul.msk.bf16.vlgmr.msra.gmra.mxu2 %vm10841_vm4, %v10845_v19  ;;  %7983 = vmatmul.msk.bf16.vlgmr.msra.gmra.mxu3 %vm10841_vm4, %v10849_v5  ;;  %v9781_v40 = vld [vmem:[#allocation5 + $0x32c] sm:$0xf]  ;;  %v6639_v47 = vor.u32 %v9749_v37, %v6636_v39  ;;  %v7356_v37 = vld [vmem:[#allocation5 + $0x7d8] sm:$0xf0] }
 0x147   :  { %3042 = vmatpush.bf16.msrb.mxu2 %v6735_v63  ;;  %3056 = vmatpush.bf16.msrb.mxu3 %v6863_v2  ;;  %v6540_v63 = vld [vmem:[#allocation5 + $0x178] sm:$0xf0]  ;;  %v9681_v43 = vld [vmem:[#allocation5 + $0xc] sm:$0xf] }
 0x148   :  { %3015 = vmatpush.bf16.msrb.mxu0 %v6463_v10  ;;  %v6796_v2 = vld [vmem:[#allocation5 + $0x378] sm:$0xf0]  ;;  %v6543_v4 = vor.u32 %v9725_v60, %v6540_v63  ;;  %v9721_v10 = vld [vmem:[#allocation5 + $0x14c] sm:$0xf] }
 0x149   :  { %3029 = vmatpush.bf16.msrb.mxu1 %v6591_v11  ;;  %v6799_v11 = vor.u32 %v9789_v62, %v6796_v2  ;;  %v9777_v60 = vld [vmem:[#allocation5 + $0x30c] sm:$0xf]  ;;  %v6367_v62 = vor.u32 %v9681_v43, %v6364_v45  ;;  %v7116_v2 = vld [vmem:[#allocation5 + $0x5f8] sm:$0xf0] }
 0x14a   :  { %v9837_v63 = vld [vmem:[#allocation5 + $0x4ec] sm:$0xf]  ;;  %v6956_v43 = vld [vmem:[#allocation5 + $0x4b8] sm:$0xf0] }
 0x14b   :  { %3043 = vmatpush.bf16.msrb.mxu2 %v6719_v15  ;;  %3057 = vmatpush.bf16.msrb.mxu3 %v6847_v18  ;;  %v6524_v15 = vld [vmem:[#allocation5 + $0x158] sm:$0xf0]  ;;  %v9869_v56 = vld [vmem:[#allocation5 + $0x5ec] sm:$0xf]  ;;  %v6991_v22 = vor.u32 %v9837_v63, %v6988_v0 }
 0x14c   :  { %3016 = vmatpush.bf16.msrb.mxu0 %v6447_v34  ;;  %v6780_v18 = vld [vmem:[#allocation5 + $0x358] sm:$0xf0]  ;;  %v6527_v27 = vor.u32 %v9721_v10, %v6524_v15  ;;  %v9717_v34 = vld [vmem:[#allocation5 + $0x12c] sm:$0xf]  ;;  %v10945_v15 = vpop.f32.mrf.mxu1 }
 0x14d   :  { %3030 = vmatpush.bf16.msrb.mxu1 %v6575_v35  ;;  %v6783_v35 = vor.u32 %v9785_v24, %v6780_v18  ;;  %v9933_v10 = vld [vmem:[#allocation5 + $0x7ec] sm:$0xf]  ;;  %v7119_v24 = vor.u32 %v9869_v56, %v7116_v2  ;;  %v6940_v2 = vld [vmem:[#allocation5 + $0x498] sm:$0xf0] }
 0x14e   :  { %v9861_v45 = vld [vmem:[#allocation5 + $0x5ac] sm:$0xf] }
 0x14f   :  { %3044 = vmatpush.bf16.msrb.mxu2 %v6703_v36  ;;  %3058 = vmatpush.bf16.msrb.mxu3 %v6831_v41  ;;  %v6508_v36 = vld [vmem:[#allocation5 + $0x138] sm:$0xf0] }
 0x150   :  { %3017 = vmatpush.bf16.msrb.mxu0 %v6431_v49  ;;  %v6764_v41 = vld [vmem:[#allocation5 + $0x338] sm:$0xf0]  ;;  %v6511_v46 = vor.u32 %v9717_v34, %v6508_v36  ;;  %v9713_v49 = vld [vmem:[#allocation5 + $0x10c] sm:$0xf] }
 0x151   :  { %3031 = vmatpush.bf16.msrb.mxu1 %v6559_v51  ;;  %v6492_v51 = vld [vmem:[#allocation5 + $0x118] sm:$0xf0]  ;;  %v6767_v54 = vor.u32 %v9781_v40, %v6764_v41  ;;  %v9897_v34 = vld [vmem:[#allocation5 + $0x6cc] sm:$0xf] }
 0x152   :  { %v6495_v7 = vor.u32 %v9713_v49, %v6492_v51  ;;  %v9929_v36 = vld [vmem:[#allocation5 + $0x7cc] sm:$0xf]  ;;  %v7084_v49 = vld [vmem:[#allocation5 + $0x5b8] sm:$0xf0] }
 0x153   :  { %3045 = vmatpush.bf16.msrb.mxu2 %v6687_v53  ;;  %3059 = vmatpush.bf16.msrb.mxu3 %v6815_v38  ;;  %v9745_v53 = vld [vmem:[#allocation5 + $0x20c] sm:$0xf]  ;;  %v6748_v38 = vld [vmem:[#allocation5 + $0x318] sm:$0xf0] }
 0x154   :  { %3018 = vmatpush.bf16.msrb.mxu0 %v6415_v3  ;;  %v9901_v3 = vld [vmem:[#allocation5 + $0x6ec] sm:$0xf]  ;;  %v6623_v8 = vor.u32 %v9745_v53, %v6620_v55  ;;  %v6751_v16 = vor.u32 %v9777_v60, %v6748_v38  ;;  %v7212_v53 = vld [vmem:[#allocation5 + $0x6b8] sm:$0xf0]  ;;  %v10962_v63 = vpop.f32.mrf.mxu1 }
 0x155   :  { %3032 = vmatpush.bf16.msrb.mxu1 %v6543_v4  ;;  %v7244_v4 = vld [vmem:[#allocation5 + $0x6f8] sm:$0xf0]  ;;  %v9893_v51 = vld [vmem:[#allocation5 + $0x6ac] sm:$0xf] }
 0x156   :  { %v7247_v18 = vor.u32 %v9901_v3, %v7244_v4  ;;  %v9925_v60 = vld [vmem:[#allocation5 + $0x7ac] sm:$0xf]  ;;  %v7340_v38 = vld [vmem:[#allocation5 + $0x7b8] sm:$0xf0]  ;;  %v7215_v56 = vor.u32 %v9893_v51, %v7212_v53 }
 0x157   :  { %3046 = vmatpush.bf16.msrb.mxu2 %v6671_v6  ;;  %3060 = vmatpush.bf16.msrb.mxu3 %v6799_v11  ;;  %v10943_v6 = vpop.f32.mrf.mxu0  ;;  %v7372_v11 = vld [vmem:[#allocation5 + $0x7f8] sm:$0xf0]  ;;  %v9857_v3 = vld [vmem:[#allocation5 + $0x58c] sm:$0xf] }
 0x158   :  { %3019 = vmatpush.bf16.msrb.mxu0 %v6399_v26  ;;  %v9833_v26 = vld [vmem:[#allocation5 + $0x4cc] sm:$0xf]  ;;  %v7375_v29 = vor.u32 %v9933_v10, %v7372_v11  ;;  %v7068_v4 = vld [vmem:[#allocation5 + $0x598] sm:$0xf0] }
 0x159   :  { %3033 = vmatpush.bf16.msrb.mxu1 %v6527_v27  ;;  %v6972_v27 = vld [vmem:[#allocation5 + $0x4d8] sm:$0xf0]  ;;  %v9881_v53 = vld [vmem:[#allocation5 + $0x64c] sm:$0xf] }
 0x15a   :  { %v6975_v39 = vor.u32 %v9833_v26, %v6972_v27  ;;  %v7324_v10 = vld [vmem:[#allocation5 + $0x798] sm:$0xf0] }
 0x15b   :  { %3047 = vmatpush.bf16.msrb.mxu2 %v6655_v28  ;;  %3061 = vmatpush.bf16.msrb.mxu3 %v6783_v35  ;;  %v9865_v28 = vld [vmem:[#allocation5 + $0x5cc] sm:$0xf]  ;;  %v7228_v35 = vld [vmem:[#allocation5 + $0x6d8] sm:$0xf0] }
 0x15c   :  { %3020 = vmatpush.bf16.msrb.mxu0 %v6383_v42  ;;  %v7103_v40 = vor.u32 %v9865_v28, %v7100_v31  ;;  %v7231_v41 = vor.u32 %v9897_v34, %v7228_v35  ;;  %v9829_v42 = vld [vmem:[#allocation5 + $0x4ac] sm:$0xf]  ;;  %v7052_v28 = vld [vmem:[#allocation5 + $0x578] sm:$0xf0] }
 0x15d   :  { %3034 = vmatpush.bf16.msrb.mxu1 %v6511_v46  ;;  %v10947_v46 = vpop.f32.mrf.mxu2  ;;  %v6959_v0 = vor.u32 %v9829_v42, %v6956_v43  ;;  %v7180_v31 = vld [vmem:[#allocation5 + $0x678] sm:$0xf0]  ;;  %v9917_v35 = vld [vmem:[#allocation5 + $0x76c] sm:$0xf] }
 0x15e   :  { %v9817_v42 = vld [vmem:[#allocation5 + $0x44c] sm:$0xf]  ;;  %v6908_v43 = vld [vmem:[#allocation5 + $0x458] sm:$0xf0] }
 0x15f   :  { %3048 = vmatpush.bf16.msrb.mxu2 %v6639_v47  ;;  %3062 = vmatpush.bf16.msrb.mxu3 %v6767_v54  ;;  %v7359_v47 = vor.u32 %v9929_v36, %v7356_v37  ;;  %v10952_v54 = vpop.f32.mrf.mxu3  ;;  %v10954_v55 = vpop.f32.mrf.mxu0  ;;  %v7308_v36 = vld [vmem:[#allocation5 + $0x778] sm:$0xf0] }
 0x160   :  { %3021 = vmatpush.bf16.msrb.mxu0 %v6367_v62  ;;  %v9825_v62 = vld [vmem:[#allocation5 + $0x48c] sm:$0xf]  ;;  %v7036_v51 = vld [vmem:[#allocation5 + $0x558] sm:$0xf0] }
 0x161   :  { %3035 = vmatpush.bf16.msrb.mxu1 %v6495_v7  ;;  %v9889_v7 = vld [vmem:[#allocation5 + $0x68c] sm:$0xf]  ;;  %v6943_v11 = vor.u32 %v9825_v62, %v6940_v2 }
 0x162   :  { %v9813_v2 = vld [vmem:[#allocation5 + $0x42c] sm:$0xf] }
 0x163   :  { %3049 = vmatpush.bf16.msrb.mxu2 %v6623_v8  ;;  %3063 = vmatpush.bf16.msrb.mxu3 %v6751_v16  ;;  %v9921_v8 = vld [vmem:[#allocation5 + $0x78c] sm:$0xf]  ;;  %v7071_v16 = vor.u32 %v9857_v3, %v7068_v4  ;;  %v6892_v3 = vld [vmem:[#allocation5 + $0x438] sm:$0xf0] }
 0x164   :  { %3070 = vmatpush.bf16.msra.mxu0 %v6991_v22  ;;  %7993 = vmatmul.msk.bf16.vlgmr.msrb.gmra.mxu1 %vm10775_vm2, %v10799_v32  ;;  %v7196_v32 = vld [vmem:[#allocation5 + $0x698] sm:$0xf0]  ;;  %v9821_v22 = vld [vmem:[#allocation5 + $0x46c] sm:$0xf]  ;;  %v7327_v27 = vor.u32 %v9921_v8, %v7324_v10 }
 0x165   :  { %3084 = vmatpush.bf16.msra.mxu1 %v7119_v24  ;;  %7988 = vmatmul.msk.bf16.vlgmr.msrb.gmra.mxu0 %vm10775_vm2, %v10770_v9  ;;  %v7087_v9 = vor.u32 %v9861_v45, %v7084_v49  ;;  %v6924_v24 = vld [vmem:[#allocation5 + $0x478] sm:$0xf0]  ;;  %v10967_v26 = vpop.f32.mrf.mxu2  ;;  %v9849_v45 = vld [vmem:[#allocation5 + $0x54c] sm:$0xf]  ;;  %v7311_v49 = vor.u32 %v9917_v35, %v7308_v36 }
 0x166   :  { %7998 = vmatmul.msk.bf16.vlgmr.msrb.gmra.mxu2 %vm10775_vm2, %v10779_v13  ;;  %8003 = vmatmul.msk.bf16.vlgmr.msrb.gmra.mxu3 %vm10775_vm2, %v10801_v33  ;;  %v7343_v13 = vor.u32 %v9925_v60, %v7340_v38  ;;  %v7199_v33 = vor.u32 %v9889_v7, %v7196_v32  ;;  %v6927_v37 = vor.u32 %v9821_v22, %v6924_v24  ;;  %v7164_v60 = vld [vmem:[#allocation5 + $0x658] sm:$0xf0]  ;;  %v9913_v38 = vld [vmem:[#allocation5 + $0x74c] sm:$0xf] }
 0x167   :  { %3098 = vmatpush.bf16.msra.mxu2 %v7247_v18  ;;  %3112 = vmatpush.bf16.msra.mxu3 %v7375_v29  ;;  %v9853_v18 = vld [vmem:[#allocation5 + $0x56c] sm:$0xf]  ;;  %v10969_v34 = vpop.f32.mrf.mxu3  ;;  %v7167_v62 = vor.u32 %v9881_v53, %v7164_v60  ;;  %v7020_v7 = vld [vmem:[#allocation5 + $0x538] sm:$0xf0] }
 0x168   :  { %3071 = vmatpush.bf16.msra.mxu0 %v6975_v39  ;;  %v9885_v29 = vld [vmem:[#allocation5 + $0x66c] sm:$0xf]  ;;  %v10971_v39 = vpop.f32.mrf.mxu0  ;;  %v7148_v8 = vld [vmem:[#allocation5 + $0x638] sm:$0xf0] }
 0x169   :  { %3085 = vmatpush.bf16.msra.mxu1 %v7103_v40  ;;  %v7055_v40 = vor.u32 %v9853_v18, %v7052_v28  ;;  %v9877_v32 = vld [vmem:[#allocation5 + $0x62c] sm:$0xf]  ;;  %v6876_v24 = vld [vmem:[#allocation5 + $0x418] sm:$0xf0] }
 0x16a   :  { %v9909_v10 = vld [vmem:[#allocation5 + $0x72c] sm:$0xf]  ;;  %v7151_v28 = vor.u32 %v9877_v32, %v7148_v8  ;;  %v7628_v60 = vld [vmem:[#allocation5 + $0x9f8] sm:$0xf0] }
 0x16b   :  { %3099 = vmatpush.bf16.msra.mxu2 %v7231_v41  ;;  %3113 = vmatpush.bf16.msra.mxu3 %v7359_v47  ;;  %v7183_v41 = vor.u32 %v9885_v29, %v7180_v31  ;;  %v10973_v47 = vpop.f32.mrf.mxu1  ;;  %v9809_v22 = vld [vmem:[#allocation5 + $0x40c] sm:$0xf]  ;;  %v7004_v31 = vld [vmem:[#allocation5 + $0x518] sm:$0xf0] }
 0x16c   :  { %3072 = vmatpush.bf16.msra.mxu0 %v6959_v0  ;;  %v7292_v0 = vld [vmem:[#allocation5 + $0x758] sm:$0xf0]  ;;  %v9841_v29 = vld [vmem:[#allocation5 + $0x50c] sm:$0xf]  ;;  %v6879_v53 = vor.u32 %v9809_v22, %v6876_v24 }
 0x16d   :  { %3086 = vmatpush.bf16.msra.mxu1 %v7087_v9  ;;  %v6911_v9 = vor.u32 %v9817_v42, %v6908_v43  ;;  %v7295_v4 = vor.u32 %v9913_v38, %v7292_v0  ;;  %v9873_v35 = vld [vmem:[#allocation5 + $0x60c] sm:$0xf]  ;;  %v7756_v0 = vld [vmem:[#allocation5 + $0xaf8] sm:$0xf0] }
 0x16e   :  { %v9965_v43 = vld [vmem:[#allocation5 + $0x8ec] sm:$0xf]  ;;  %v7484_v8 = vld [vmem:[#allocation5 + $0x8d8] sm:$0xf0] }
 0x16f   :  { %3100 = vmatpush.bf16.msra.mxu2 %v7215_v56  ;;  %3114 = vmatpush.bf16.msra.mxu3 %v7343_v13  ;;  %v7039_v56 = vor.u32 %v9849_v45, %v7036_v51  ;;  %v9845_v13 = vld [vmem:[#allocation5 + $0x52c] sm:$0xf]  ;;  %v10977_v18 = vpop.f32.mrf.mxu3  ;;  %v7500_v45 = vld [vmem:[#allocation5 + $0x8f8] sm:$0xf0] }
 0x170   :  { %3073 = vmatpush.bf16.msra.mxu0 %v6943_v11  ;;  %v7276_v11 = vld [vmem:[#allocation5 + $0x738] sm:$0xf0]  ;;  %v10979_v42 = vpop.f32.mrf.mxu0  ;;  %v10029_v38 = vld [vmem:[#allocation5 + $0xaec] sm:$0xf] }
 0x171   :  { %3087 = vmatpush.bf16.msra.mxu1 %v7071_v16  ;;  %v10975_v16 = vpop.f32.mrf.mxu2  ;;  %v7279_v36 = vor.u32 %v9909_v10, %v7276_v11  ;;  %v9961_v32 = vld [vmem:[#allocation5 + $0x8cc] sm:$0xf]  ;;  %v7740_v24 = vld [vmem:[#allocation5 + $0xad8] sm:$0xf0] }
 0x172   :  { %v9993_v10 = vld [vmem:[#allocation5 + $0x9cc] sm:$0xf] }
 0x173   :  { %3101 = vmatpush.bf16.msra.mxu2 %v7199_v33  ;;  %3115 = vmatpush.bf16.msra.mxu3 %v7327_v27  ;;  %v6895_v33 = vor.u32 %v9813_v2, %v6892_v3  ;;  %v7023_v27 = vor.u32 %v9845_v13, %v7020_v7  ;;  %v10981_v51 = vpop.f32.mrf.mxu1  ;;  %v7884_v2 = vld [vmem:[#allocation5 + $0xbf8] sm:$0xf0]  ;;  %v7503_v13 = vor.u32 %v9965_v43, %v7500_v45  ;;  %v10025_v22 = vld [vmem:[#allocation5 + $0xacc] sm:$0xf] }
 0x174   :  { %3074 = vmatpush.bf16.msra.mxu0 %v6927_v37  ;;  %v7132_v37 = vld [vmem:[#allocation5 + $0x618] sm:$0xf0]  ;;  %v7759_v7 = vor.u32 %v10029_v38, %v7756_v0  ;;  %v9989_v43 = vld [vmem:[#allocation5 + $0x9ac] sm:$0xf] }
 0x175   :  { %3088 = vmatpush.bf16.msra.mxu1 %v7055_v40  ;;  %v9905_v40 = vld [vmem:[#allocation5 + $0x70c] sm:$0xf] }
 0x176   :  { %v10053_v0 = vld [vmem:[#allocation5 + $0xbac] sm:$0xf] }
 0x177   :  { %3102 = vmatpush.bf16.msra.mxu2 %v7183_v41  ;;  %3116 = vmatpush.bf16.msra.mxu3 %v7311_v49  ;;  %v7260_v41 = vld [vmem:[#allocation5 + $0x718] sm:$0xf0]  ;;  %v9997_v49 = vld [vmem:[#allocation5 + $0x9ec] sm:$0xf] }
 0x178   :  { %3075 = vmatpush.bf16.msra.mxu0 %v6911_v9  ;;  %v7007_v9 = vor.u32 %v9841_v29, %v7004_v31  ;;  %v7263_v3 = vor.u32 %v9905_v40, %v7260_v41  ;;  %v7487_v31 = vor.u32 %v9961_v32, %v7484_v8  ;;  %v9957_v40 = vld [vmem:[#allocation5 + $0x8ac] sm:$0xf]  ;;  %v7468_v41 = vld [vmem:[#allocation5 + $0x8b8] sm:$0xf0]  ;;  %v10988_v38 = vpop.f32.mrf.mxu0 }
 0x179   :  { %3089 = vmatpush.bf16.msra.mxu1 %v7039_v56  ;;  %v7135_v56 = vor.u32 %v9873_v35, %v7132_v37  ;;  %v10983_v29 = vpop.f32.mrf.mxu2  ;;  %v10985_v35 = vpop.f32.mrf.mxu3  ;;  %v7743_v37 = vor.u32 %v10025_v22, %v7740_v24  ;;  %v7580_v32 = vld [vmem:[#allocation5 + $0x998] sm:$0xf0]  ;;  %v10017_v8 = vld [vmem:[#allocation5 + $0xa8c] sm:$0xf] }
 0x17b   :  { %3103 = vmatpush.bf16.msra.mxu2 %v7167_v62  ;;  %3117 = vmatpush.bf16.msra.mxu3 %v7295_v4  ;;  %v10061_v62 = vld [vmem:[#allocation5 + $0xbec] sm:$0xf]  ;;  %v7631_v4 = vor.u32 %v9997_v49, %v7628_v60  ;;  %v7596_v49 = vld [vmem:[#allocation5 + $0x9b8] sm:$0xf0] }
 0x17c   :  { %3076 = vmatpush.bf16.msra.mxu0 %v6895_v33  ;;  %v7887_v11 = vor.u32 %v10061_v62, %v7884_v2  ;;  %v7612_v33 = vld [vmem:[#allocation5 + $0x9d8] sm:$0xf0]  ;;  %v7471_v62 = vor.u32 %v9957_v40, %v7468_v41  ;;  %v7599_v2 = vor.u32 %v9989_v43, %v7596_v49  ;;  %v10045_v43 = vld [vmem:[#allocation5 + $0xb6c] sm:$0xf] }
 0x17d   :  { %3090 = vmatpush.bf16.msra.mxu1 %v7023_v27  ;;  %v10057_v27 = vld [vmem:[#allocation5 + $0xbcc] sm:$0xf]  ;;  %v7724_v60 = vld [vmem:[#allocation5 + $0xab8] sm:$0xf0] }
 0x17e   :  { %v7692_v40 = vld [vmem:[#allocation5 + $0xa78] sm:$0xf0] }
 0x17f   :  { %3104 = vmatpush.bf16.msra.mxu2 %v7151_v28  ;;  %3118 = vmatpush.bf16.msra.mxu3 %v7279_v36  ;;  %v7868_v28 = vld [vmem:[#allocation5 + $0xbd8] sm:$0xf0]  ;;  %v7615_v36 = vor.u32 %v9993_v10, %v7612_v33 }
 0x180   :  { %3077 = vmatpush.bf16.msra.mxu0 %v6879_v53  ;;  %v7871_v45 = vor.u32 %v10057_v27, %v7868_v28  ;;  %v10021_v53 = vld [vmem:[#allocation5 + $0xaac] sm:$0xf]  ;;  %v7708_v10 = vld [vmem:[#allocation5 + $0xa98] sm:$0xf0] }
 0x181   :  { %3091 = vmatpush.bf16.msra.mxu1 %v7007_v9  ;;  %v7852_v9 = vld [vmem:[#allocation5 + $0xbb8] sm:$0xf0]  ;;  %v7711_v24 = vor.u32 %v10017_v8, %v7708_v10  ;;  %v9949_v27 = vld [vmem:[#allocation5 + $0x86c] sm:$0xf]  ;;  %v11004_v28 = vpop.f32.mrf.mxu2  ;;  %v11006_v41 = vpop.f32.mrf.mxu3 }
 0x183   :  { %3105 = vmatpush.bf16.msra.mxu2 %v7135_v56  ;;  %3119 = vmatpush.bf16.msra.mxu3 %v7263_v3  ;;  %v10992_v56 = vpop.f32.mrf.mxu1  ;;  %v7727_v3 = vor.u32 %v10021_v53, %v7724_v60 }
 0x184   :  { %3126 = vmatpush.bf16.msrb.mxu0 %v7503_v13  ;;  %3092 = vmatmul.bf16.vlgmr.msra.gmra.mxu1 %v10819_v58  ;;  %v9953_v13 = vld [vmem:[#allocation5 + $0x88c] sm:$0xf]  ;;  %v2702_v58 = vadd.f32 %v10962_v63, %v10954_v55  ;;  %v7436_v55 = vld [vmem:[#allocation5 + $0x878] sm:$0xf0] }
 0x185   :  { %3140 = vmatpush.bf16.msrb.mxu1 %v7631_v4  ;;  %3078 = vmatmul.bf16.vlgmr.msra.gmra.mxu0 %v10811_v50  ;;  %v2536_v50 = vadd.f32 %v10883_v14, %v10881_v52  ;;  %v7452_v4 = vld [vmem:[#allocation5 + $0x898] sm:$0xf0]  ;;  %v9981_v63 = vld [vmem:[#allocation5 + $0x96c] sm:$0xf]  ;;  %v7439_v53 = vor.u32 %v9949_v27, %v7436_v55 }
 0x186   :  { %3106 = vmatmul.bf16.vlgmr.msra.gmra.mxu2 %v10815_v57  ;;  %3120 = vmatmul.bf16.vlgmr.msra.gmra.mxu3 %v10823_v61  ;;  %v9985_v57 = vld [vmem:[#allocation5 + $0x98c] sm:$0xf]  ;;  %v7855_v61 = vor.u32 %v10053_v0, %v7852_v9  ;;  %v7836_v52 = vld [vmem:[#allocation5 + $0xb98] sm:$0xf0]  ;;  %v7455_v14 = vor.u32 %v9953_v13, %v7452_v4 }
 0x187   :  { %3154 = vmatpush.bf16.msrb.mxu2 %v7759_v7  ;;  %3168 = vmatpush.bf16.msrb.mxu3 %v7887_v11  ;;  %v2704_v7 = vadd.f32 %v10973_v47, %v10971_v39  ;;  %v10049_v11 = vld [vmem:[#allocation5 + $0xb8c] sm:$0xf]  ;;  %v2550_v33 = vadd.f32 %v10897_v23, %v2536_v50  ;;  %v7583_v22 = vor.u32 %v9985_v57, %v7580_v32  ;;  %v11008_v23 = vpop.f32.mrf.mxu0  ;;  %v7420_v9 = vld [vmem:[#allocation5 + $0x858] sm:$0xf0] }
 0x188   :  { %3127 = vmatpush.bf16.msrb.mxu0 %v7487_v31  ;;  %v2716_v39 = vadd.f32 %v10967_v26, %v2702_v58  ;;  %v7839_v31 = vor.u32 %v10049_v11, %v7836_v52  ;;  %v9945_v0 = vld [vmem:[#allocation5 + $0x84c] sm:$0xf]  ;;  %v7548_v13 = vld [vmem:[#allocation5 + $0x958] sm:$0xf0] }
 0x189   :  { %3141 = vmatpush.bf16.msrb.mxu1 %v7615_v36  ;;  %v2718_v47 = vadd.f32 %v10975_v16, %v2704_v7  ;;  %v7564_v36 = vld [vmem:[#allocation5 + $0x978] sm:$0xf0]  ;;  %v2564_v26 = vadd.f32 %v10899_v30, %v2550_v33  ;;  %v10009_v4 = vld [vmem:[#allocation5 + $0xa4c] sm:$0xf]  ;;  %v7423_v32 = vor.u32 %v9945_v0, %v7420_v9  ;;  %v11021_v27 = vpop.f32.mrf.mxu3 }
 0x18a   :  { %v7567_v16 = vor.u32 %v9981_v63, %v7564_v36  ;;  %v2730_v50 = vadd.f32 %v10969_v34, %v2716_v39  ;;  %v7676_v57 = vld [vmem:[#allocation5 + $0xa58] sm:$0xf0]  ;;  %v10041_v7 = vld [vmem:[#allocation5 + $0xb4c] sm:$0xf] }
 0x18b   :  { %3155 = vmatpush.bf16.msrb.mxu2 %v7743_v37  ;;  %3169 = vmatpush.bf16.msrb.mxu3 %v7871_v45  ;;  %v10013_v37 = vld [vmem:[#allocation5 + $0xa6c] sm:$0xf]  ;;  %v7820_v45 = vld [vmem:[#allocation5 + $0xb78] sm:$0xf0]  ;;  %v11010_v49 = vpop.f32.mrf.mxu1  ;;  %v2578_v58 = vadd.f32 %v10904_v21, %v2564_v26  ;;  %v7679_v10 = vor.u32 %v10009_v4, %v7676_v57 }
 0x18c   :  { %3128 = vmatpush.bf16.msrb.mxu0 %v7471_v62  ;;  %v7695_v60 = vor.u32 %v10013_v37, %v7692_v40  ;;  %v9977_v62 = vld [vmem:[#allocation5 + $0x94c] sm:$0xf]  ;;  %v7804_v30 = vld [vmem:[#allocation5 + $0xb58] sm:$0xf0]  ;;  %v2744_v52 = vadd.f32 %v10979_v42, %v2730_v50  ;;  %v10094_v50 = vld [vmem:[#allocation7 + $0xec] sm:$0xf0] }
 0x18d   :  { %3142 = vmatpush.bf16.msrb.mxu1 %v7599_v2  ;;  %v2732_v2 = vadd.f32 %v10977_v18, %v2718_v47  ;;  %v7551_v8 = vor.u32 %v9977_v62, %v7548_v13  ;;  %v9941_v34 = vld [vmem:[#allocation5 + $0x82c] sm:$0xf]  ;;  %v7404_v11 = vld [vmem:[#allocation5 + $0x838] sm:$0xf0]  ;;  %v7807_v33 = vor.u32 %v10041_v7, %v7804_v30  ;;  %v10126_v13 = vld [vmem:[#allocation7 + $0x1ec] sm:$0xf0] }
 0x18e   :  { %v9973_v18 = vld [vmem:[#allocation5 + $0x92c] sm:$0xf]  ;;  %v7532_v21 = vld [vmem:[#allocation5 + $0x938] sm:$0xf0]  ;;  %v7407_v47 = vor.u32 %v9941_v34, %v7404_v11  ;;  %v10090_v34 = vld [vmem:[#allocation7 + $0xcc] sm:$0xf0] }
 0x18f   :  { %3156 = vmatpush.bf16.msrb.mxu2 %v7727_v3  ;;  %3170 = vmatpush.bf16.msrb.mxu3 %v7855_v61  ;;  %v7823_v3 = vor.u32 %v10045_v43, %v7820_v45  ;;  %v2746_v61 = vadd.f32 %v10988_v38, %v2732_v2  ;;  %v2592_v38 = vadd.f32 %v10906_v25, %v2578_v58  ;;  %v10037_v55 = vld [vmem:[#allocation5 + $0xb2c] sm:$0xf]  ;;  %v7788_v63 = vld [vmem:[#allocation5 + $0xb38] sm:$0xf0]  ;;  %v2801_v36 = vpop.f32.mrf.mxu0 }
 0x190   :  { %3129 = vmatpush.bf16.msrb.mxu0 %v7455_v14  ;;  %v11018_v14 = vpop.f32.mrf.mxu2  ;;  %v7535_v37 = vor.u32 %v9973_v18, %v7532_v21  ;;  %v7388_v43 = vld [vmem:[#allocation5 + $0x818] sm:$0xf0]  ;;  %v9969_v45 = vld [vmem:[#allocation5 + $0x90c] sm:$0xf]  ;;  %v2758_v25 = vadd.f32 %v10981_v51, %v2744_v52  ;;  %v8242_v52 = vld [vmem:[#allocation7 + $0x1c0] sm:$0xf] }
 0x191   :  { %3143 = vmatpush.bf16.msrb.mxu1 %v7583_v22  ;;  %v10005_v22 = vld [vmem:[#allocation5 + $0xa2c] sm:$0xf]  ;;  %v2760_v39 = vadd.f32 %v10992_v56, %v2746_v61  ;;  %v2606_v42 = vadd.f32 %v10920_v48, %v2592_v38  ;;  %v7791_v56 = vor.u32 %v10037_v55, %v7788_v63  ;;  %v7644_v0 = vld [vmem:[#allocation5 + $0xa18] sm:$0xf0]  ;;  %v8130_v48 = vld [vmem:[#allocation7 + $0xe0] sm:$0xf]  ;;  %v2843_v21 = vpop.f32.mrf.mxu3 }
 0x192   :  { %v10033_v9 = vld [vmem:[#allocation5 + $0xb0c] sm:$0xf]  ;;  %v7772_v62 = vld [vmem:[#allocation5 + $0xb18] sm:$0xf0]  ;;  %v8131_v30 = vor.u32 %v10094_v50, %v8130_v48  ;;  %v8386_v61 = vld [vmem:[#allocation7 + $0x2e0] sm:$0xf] }
 0x193   :  { %3157 = vmatpush.bf16.msrb.mxu2 %v7711_v24  ;;  %3171 = vmatpush.bf16.msrb.mxu3 %v7839_v31  ;;  %v7660_v24 = vld [vmem:[#allocation5 + $0xa38] sm:$0xf0]  ;;  %v9937_v31 = vld [vmem:[#allocation5 + $0x80c] sm:$0xf]  ;;  %v2774_v26 = vadd.f32 %v11004_v28, %v2760_v39  ;;  %v2620_v4 = vadd.f32 %v10922_v59, %v2606_v42  ;;  %v2772_v28 = vadd.f32 %v10983_v29, %v2758_v25  ;;  %v8370_v55 = vld [vmem:[#allocation7 + $0x2c0] sm:$0xf] }
 0x194   :  { %3130 = vmatpush.bf16.msrb.mxu0 %v7439_v53  ;;  %v7663_v40 = vor.u32 %v10005_v22, %v7660_v24  ;;  %v7516_v53 = vld [vmem:[#allocation5 + $0x918] sm:$0xf0]  ;;  %v7391_v2 = vor.u32 %v9937_v31, %v7388_v43  ;;  %v7775_v7 = vor.u32 %v10033_v9, %v7772_v62  ;;  %v8098_v39 = vld [vmem:[#allocation7 + $0xa0] sm:$0xf]  ;;  %v10082_v25 = vld [vmem:[#allocation7 + $0x8c] sm:$0xf0] }
 0x195   :  { %3144 = vmatpush.bf16.msrb.mxu1 %v7567_v16  ;;  %v2815_v16 = vpop.f32.mrf.mxu1  ;;  %v7519_v51 = vor.u32 %v9969_v45, %v7516_v53  ;;  %v2788_v58 = vadd.f32 %v11006_v41, %v2774_v26  ;;  %v2634_v11 = vadd.f32 %v10943_v6, %v2620_v4  ;;  %v2786_v41 = vadd.f32 %v10985_v35, %v2772_v28  ;;  %v10154_v6 = vld [vmem:[#allocation7 + $0x2cc] sm:$0xf0]  ;;  %v11057_v9 = vld [vmem:[#allocation10] sm:$0xf] }
 0x196   :  { %v10150_v45 = vld [vmem:[#allocation7 + $0x2ac] sm:$0xf0] }
 0x197   :  { %3158 = vmatpush.bf16.msrb.mxu2 %v7695_v60  ;;  %3172 = vmatpush.bf16.msrb.mxu3 %v7823_v3  ;;  %v10001_v60 = vld [vmem:[#allocation5 + $0xa0c] sm:$0xf]  ;;  %v8258_v3 = vld [vmem:[#allocation7 + $0x1e0] sm:$0xf]  ;;  %v2802_v18 = vadd.f32 %v2801_v36, %v2788_v58  ;;  %v11031_v22 = vpop.f32.mrf.mxu0  ;;  %v2648_v31 = vadd.f32 %v10945_v15, %v2634_v11  ;;  %v2800_v42 = vadd.f32 %v11008_v23, %v2786_v41  ;;  %v10106_v41 = vld [vmem:[#allocation7 + $0x14c] sm:$0xf0] }
 0x198   :  { %3131 = vmatpush.bf16.msrb.mxu0 %v7423_v32  ;;  %v7647_v57 = vor.u32 %v10001_v60, %v7644_v0  ;;  %v10158_v32 = vld [vmem:[#allocation7 + $0x2ec] sm:$0xf0]  ;;  %v2829_v59 = vpop.f32.mrf.mxu2  ;;  %v8226_v36 = vld [vmem:[#allocation7 + $0x1a0] sm:$0xf] }
 0x199   :  { %3145 = vmatpush.bf16.msrb.mxu1 %v7551_v8  ;;  %v8259_v8 = vor.u32 %v10126_v13, %v8258_v3  ;;  %v8387_v29 = vor.u32 %v10158_v32, %v8386_v61  ;;  %v2816_v35 = vadd.f32 %v2815_v16, %v2802_v18  ;;  %v11050_v15 = vld [vmem:[#allocation8] sm:$0xf]  ;;  %v2662_v23 = vadd.f32 %v10947_v46, %v2648_v31  ;;  %v11055_v0 = vpop.f32.mrf.mxu3  ;;  %v10142_v18 = vld [vmem:[#allocation7 + $0x26c] sm:$0xf0] }
 0x19a   :  { %v2814_v26 = vadd.f32 %v11010_v49, %v2800_v42  ;;  %v3184_v60 = vperm.slane %v11050_v15, 0  ;;  %v8338_v3 = vld [vmem:[#allocation7 + $0x280] sm:$0xf]  ;;  %v10146_v49 = vld [vmem:[#allocation7 + $0x28c] sm:$0xf0]  ;;  %v3185_v28 = vperm.slane %v11050_v15, 1 }
 0x19b   :  { %3159 = vmatpush.bf16.msrb.mxu2 %v7679_v10  ;;  %3173 = vmatpush.bf16.msrb.mxu3 %v7807_v33  ;;  %v8114_v10 = vld [vmem:[#allocation7 + $0xc0] sm:$0xf]  ;;  %v10122_v33 = vld [vmem:[#allocation7 + $0x1cc] sm:$0xf0]  ;;  %v2676_v62 = vadd.f32 %v10952_v54, %v2662_v23  ;;  %v8339_v61 = vor.u32 %v10146_v49, %v8338_v3 }
 0x19c   :  { %3132 = vmatpush.bf16.msrb.mxu0 %v7407_v47  ;;  %v8115_v38 = vor.u32 %v10090_v34, %v8114_v10  ;;  %v8243_v63 = vor.u32 %v10122_v33, %v8242_v52  ;;  %v10086_v47 = vld [vmem:[#allocation7 + $0xac] sm:$0xf0]  ;;  %v2828_v48 = vadd.f32 %v11018_v14, %v2814_v26  ;;  %v3192_v54 = vmul.f32 %v3184_v60, %v10925_v44  ;;  %v8322_v11 = vld [vmem:[#allocation7 + $0x260] sm:$0xf] }
 0x19d   :  { %3146 = vmatpush.bf16.msrb.mxu1 %v7535_v37  ;;  %v11034_v24 = vpop.f32.mrf.mxu1  ;;  %v10118_v37 = vld [vmem:[#allocation7 + $0x1ac] sm:$0xf0]  ;;  %v8099_v43 = vor.u32 %v10086_v47, %v8098_v39  ;;  %v3202_v14 = vperm.slane %v11057_v9, 0  ;;  %v3196_v32 = vmul.f32 %v3184_v60, %v2676_v62  ;;  %v8050_v33 = vld [vmem:[#allocation7 + $0x40] sm:$0xf]  ;;  %v3203_v44 = vperm.slane %v11057_v9, 1 }
 0x19e   :  { %v8227_v53 = vor.u32 %v10118_v37, %v8226_v36  ;;  %v8306_v31 = vld [vmem:[#allocation7 + $0x240] sm:$0xf]  ;;  %v10070_v37 = vld [vmem:[#allocation7 + $0x2c] sm:$0xf0] }
 0x19f   :  { %3160 = vmatpush.bf16.msrb.mxu2 %v7663_v40  ;;  %3174 = vmatpush.bf16.msrb.mxu3 %v7791_v56  ;;  %v2830_v40 = vadd.f32 %v2829_v59, %v2816_v35  ;;  %v8210_v56 = vld [vmem:[#allocation7 + $0x180] sm:$0xf]  ;;  %v11061_v13 = vpop.f32.mrf.mxu0  ;;  %v2870_v59 = vadd.f32 %v11034_v24, %v11031_v22  ;;  %v10138_v22 = vld [vmem:[#allocation7 + $0x24c] sm:$0xf0] }
 0x1a0   :  { %3133 = vmatpush.bf16.msrb.mxu0 %v7391_v2  ;;  %v2883_v16 = vpop.f32.mrf.mxu2  ;;  %v8034_v36 = vld [vmem:[#allocation7 + $0x20] sm:$0xf]  ;;  %v10102_v23 = vld [vmem:[#allocation7 + $0x12c] sm:$0xf0] }
 0x1a1   :  { %3147 = vmatpush.bf16.msrb.mxu1 %v7519_v51  ;;  %v2844_v50 = vadd.f32 %v2843_v21, %v2830_v40  ;;  %v8066_v51 = vld [vmem:[#allocation7 + $0x60] sm:$0xf]  ;;  %v10074_v21 = vld [vmem:[#allocation7 + $0x4c] sm:$0xf0]  ;;  %v2884_v24 = vadd.f32 %v2883_v16, %v2870_v59  ;;  %v11074_v42 = vpop.f32.mrf.mxu3  ;;  %v8035_v26 = vor.u32 %v10070_v37, %v8034_v36 }
 0x1a2   :  { %v8051_v47 = vor.u32 %v10074_v21, %v8050_v33  ;;  %v8290_v16 = vld [vmem:[#allocation7 + $0x220] sm:$0xf]  ;;  %v10066_v62 = vld [vmem:[#allocation7 + $0xc] sm:$0xf0] }
 0x1a3   :  { %3161 = vmatpush.bf16.msrb.mxu2 %v7647_v57  ;;  %3175 = vmatpush.bf16.msrb.mxu3 %v7775_v7  ;;  %v10078_v57 = vld [vmem:[#allocation7 + $0x6c] sm:$0xf0]  ;;  %v8194_v7 = vld [vmem:[#allocation7 + $0x160] sm:$0xf]  ;;  %v3197_v10 = vmul.f32 %v3185_v28, %v2844_v50 }
 0x1a4   :  { %5598 = vmatpush.bf16.msra.mxu0 %v8131_v30  ;;  %8009 = vmatmul.msk.bf16.vlgmr.msrb.gmra.mxu1 %vm10841_vm4, %v10847_v20  ;;  %v8354_v20 = vld [vmem:[#allocation7 + $0x2a0] sm:$0xf]  ;;  %v10110_v30 = vld [vmem:[#allocation7 + $0x16c] sm:$0xf0]  ;;  %v8067_v34 = vor.u32 %v10078_v57, %v8066_v51 }
 0x1a5   :  { %5612 = vmatpush.bf16.msra.mxu1 %v8259_v8  ;;  %8006 = vmatmul.msk.bf16.vlgmr.msrb.gmra.mxu0 %vm10841_vm4, %v10837_v1  ;;  %v8371_v1 = vor.u32 %v10154_v6, %v8370_v55  ;;  %v8355_v46 = vor.u32 %v10150_v45, %v8354_v20  ;;  %v11064_v58 = vpop.f32.mrf.mxu1  ;;  %v2842_v8 = vadd.f32 %v11021_v27, %v2828_v48  ;;  %v8146_v48 = vld [vmem:[#allocation7 + $0x100] sm:$0xf]  ;;  %v10098_v50 = vld [vmem:[#allocation7 + $0x10c] sm:$0xf0] }
 0x1a6   :  { %8012 = vmatmul.msk.bf16.vlgmr.msrb.gmra.mxu2 %vm10841_vm4, %v10845_v19  ;;  %8015 = vmatmul.msk.bf16.vlgmr.msrb.gmra.mxu3 %vm10841_vm4, %v10849_v5  ;;  %v8082_v19 = vld [vmem:[#allocation7 + $0x80] sm:$0xf]  ;;  %v10114_v5 = vld [vmem:[#allocation7 + $0x18c] sm:$0xf0]  ;;  %v8195_v52 = vor.u32 %v10110_v30, %v8194_v7  ;;  %v8323_v55 = vor.u32 %v10142_v18, %v8322_v11  ;;  %v3214_v27 = vadd.f32 %v3202_v14, %v3196_v32 }
 0x1a7   :  { %5626 = vmatpush.bf16.msra.mxu2 %v8387_v29  ;;  %v8083_v2 = vor.u32 %v10082_v25, %v8082_v19  ;;  %v8211_v4 = vor.u32 %v10114_v5, %v8210_v56  ;;  %v8178_v29 = vld [vmem:[#allocation7 + $0x140] sm:$0xf]  ;;  %v3193_v6 = vmul.f32 %v3185_v28, %v2842_v8  ;;  %v8307_v20 = vor.u32 %v10138_v22, %v8306_v31  ;;  %v10134_v56 = vld [vmem:[#allocation7 + $0x22c] sm:$0xf0] }
 0x1a8   :  { %5599 = vmatpush.bf16.msra.mxu0 %v8115_v38  ;;  %v3210_v38 = vadd.f32 %v3202_v14, %v3192_v54  ;;  %v11072_v39 = vpop.f32.mrf.mxu2  ;;  %v8179_v35 = vor.u32 %v10106_v41, %v8178_v29  ;;  %v11078_v45 = vmax.f32 %v3214_v27, 0.0  ;;  %v2898_v5 = vadd.f32 %v11055_v0, %v2884_v24  ;;  %v10222_v3 = vld [vmem:[#allocation7 + $0x4ec] sm:$0xf0]  ;;  %v8770_v49 = vld [vmem:[#allocation7 + $0x5e0] sm:$0xf] }
 0x1a9   :  { %5613 = vmatpush.bf16.msra.mxu1 %v8243_v63  ;;  %v3215_v63 = vadd.f32 %v3203_v44, %v3197_v10  ;;  %v8291_v51 = vor.u32 %v10134_v56, %v8290_v16  ;;  %v8274_v30 = vld [vmem:[#allocation7 + $0x200] sm:$0xf]  ;;  %v10130_v0 = vld [vmem:[#allocation7 + $0x20c] sm:$0xf0]  ;;  %v2872_v54 = vadd.f32 %v11064_v58, %v11061_v13  ;;  %v2953_v21 = vpop.f32.mrf.mxu3 }
 0x1aa   :  { %v11076_v40 = vmax.f32 %v3210_v38, 0.0  ;;  %v3238_v57 = vrot.slane %v11078_v45, 7  ;;  %v8898_v8 = vld [vmem:[#allocation7 + $0x6e0] sm:$0xf]  ;;  %v10286_v10 = vld [vmem:[#allocation7 + $0x6ec] sm:$0xf0]  ;;  %v8275_v41 = vor.u32 %v10130_v0, %v8274_v30 }
 0x1ab   :  { %5627 = vmatpush.bf16.msra.mxu2 %v8371_v1  ;;  %v8162_v1 = vld [vmem:[#allocation7 + $0x120] sm:$0xf]  ;;  %v11080_v19 = vmax.f32 %v3215_v63, 0.0  ;;  %v10218_v33 = vld [vmem:[#allocation7 + $0x4cc] sm:$0xf0]  ;;  %v8899_v38 = vor.u32 %v10286_v10, %v8898_v8 }
 0x1ac   :  { %5600 = vmatpush.bf16.msra.mxu0 %v8099_v43  ;;  %v2911_v43 = vpop.f32.mrf.mxu0  ;;  %v8163_v60 = vor.u32 %v10102_v23, %v8162_v1  ;;  %v10250_v29 = vld [vmem:[#allocation7 + $0x5cc] sm:$0xf0]  ;;  %v8610_v36 = vld [vmem:[#allocation7 + $0x4a0] sm:$0xf] }
 0x1ad   :  { %5614 = vmatpush.bf16.msra.mxu1 %v8227_v53  ;;  %v3211_v53 = vadd.f32 %v3203_v44, %v3193_v6  ;;  %v2925_v25 = vpop.f32.mrf.mxu1  ;;  %v2912_v14 = vadd.f32 %v2911_v43, %v2898_v5  ;;  %v3239_v11 = vrot.slane %v11080_v19, 7  ;;  %v8754_v44 = vld [vmem:[#allocation7 + $0x5c0] sm:$0xf]  ;;  %v10282_v31 = vld [vmem:[#allocation7 + $0x6cc] sm:$0xf0] }
 0x1ae   :  { %v10214_v37 = vld [vmem:[#allocation7 + $0x4ac] sm:$0xf0]  ;;  %v8738_v1 = vld [vmem:[#allocation7 + $0x5a0] sm:$0xf] }
 0x1af   :  { %5628 = vmatpush.bf16.msra.mxu2 %v8355_v46  ;;  %v8018_v46 = vld [vmem:[#allocation7] sm:$0xf]  ;;  %v11084_v28 = vmax.f32 %v3211_v53, 0.0  ;;  %v2926_v27 = vadd.f32 %v2925_v25, %v2912_v14  ;;  %v8611_v53 = vor.u32 %v10214_v37, %v8610_v36  ;;  %v10210_v5 = vld [vmem:[#allocation7 + $0x48c] sm:$0xf0] }
 0x1b0   :  { %5601 = vmatpush.bf16.msra.mxu0 %v8083_v2  ;;  %v8642_v2 = vld [vmem:[#allocation7 + $0x4e0] sm:$0xf]  ;;  %v8019_v7 = vor.u32 %v10066_v62, %v8018_v46  ;;  %v2939_v18 = vpop.f32.mrf.mxu2  ;;  %v10242_v62 = vld [vmem:[#allocation7 + $0x58c] sm:$0xf0] }
 0x1b1   :  { %5615 = vmatpush.bf16.msra.mxu1 %v8211_v4  ;;  %v10254_v4 = vld [vmem:[#allocation7 + $0x5ec] sm:$0xf0]  ;;  %v8643_v32 = vor.u32 %v10222_v3, %v8642_v2  ;;  %v3235_v58 = vrot.slane %v11084_v28, 7  ;;  %v8866_v25 = vld [vmem:[#allocation7 + $0x6a0] sm:$0xf]  ;;  %v2955_v3 = vpop.f32.mrf.mxu3 }
 0x1b2   :  { %v8771_v59 = vor.u32 %v10254_v4, %v8770_v49  ;;  %v8594_v56 = vld [vmem:[#allocation7 + $0x480] sm:$0xf]  ;;  %v10206_v0 = vld [vmem:[#allocation7 + $0x46c] sm:$0xf0] }
 0x1b3   :  { %5629 = vmatpush.bf16.msra.mxu2 %v8339_v61  ;;  %v8147_v61 = vor.u32 %v10098_v50, %v8146_v48  ;;  %v11094_v22 = vpack.c.bf16 %v3239_v11, %v3235_v58  ;;  %v8722_v46 = vld [vmem:[#allocation7 + $0x580] sm:$0xf]  ;;  %v10198_v36 = vld [vmem:[#allocation7 + $0x42c] sm:$0xf0] }
 0x1b4   :  { %5602 = vmatpush.bf16.msra.mxu0 %v8067_v34  ;;  %v3234_v34 = vrot.slane %v11076_v40, 7  ;;  %v2913_v6 = vpop.f32.mrf.mxu0  ;;  %v8850_v4 = vld [vmem:[#allocation7 + $0x680] sm:$0xf] }
 0x1b5   :  { %5616 = vmatpush.bf16.msra.mxu1 %v8195_v52  ;;  %v8626_v52 = vld [vmem:[#allocation7 + $0x4c0] sm:$0xf]  ;;  %v2927_v24 = vpop.f32.mrf.mxu1 }
 0x1b6   :  { %v11090_v13 = vpack.c.bf16 %v3238_v57, %v3234_v34  ;;  %v8627_v63 = vor.u32 %v10218_v33, %v8626_v52  ;;  %v8723_v57 = vor.u32 %v10242_v62, %v8722_v46  ;;  %v8578_v30 = vld [vmem:[#allocation7 + $0x460] sm:$0xf]  ;;  %v10202_v33 = vld [vmem:[#allocation7 + $0x44c] sm:$0xf0] }
 0x1b7   :  { %5630 = vmatpush.bf16.msra.mxu2 %v8323_v55  ;;  %v2886_v55 = vadd.f32 %v11072_v39, %v2872_v54  ;;  %v10246_v39 = vld [vmem:[#allocation7 + $0x5ac] sm:$0xf0]  ;;  %v8579_v34 = vor.u32 %v10206_v0, %v8578_v30  ;;  %v8834_v11 = vld [vmem:[#allocation7 + $0x660] sm:$0xf] }
 0x1b8   :  { %5603 = vmatpush.bf16.msra.mxu0 %v8051_v47  ;;  %v8882_v47 = vld [vmem:[#allocation7 + $0x6c0] sm:$0xf]  ;;  %v8739_v16 = vor.u32 %v10246_v39, %v8738_v1  ;;  %v2941_v48 = vpop.f32.mrf.mxu2  ;;  %v3186_v39 = vperm.slane %v11050_v15, 2  ;;  %v10194_v46 = vld [vmem:[#allocation7 + $0x40c] sm:$0xf0] }
 0x1b9   :  { %5617 = vmatpush.bf16.msra.mxu1 %v8179_v35  ;;  %v8755_v35 = vor.u32 %v10250_v29, %v8754_v44  ;;  %v8883_v23 = vor.u32 %v10282_v31, %v8882_v47  ;;  %v2900_v43 = vadd.f32 %v11074_v42, %v2886_v55  ;;  %v8595_v42 = vor.u32 %v10210_v5, %v8594_v56  ;;  %v8562_v52 = vld [vmem:[#allocation7 + $0x440] sm:$0xf]  ;;  %v10234_v29 = vld [vmem:[#allocation7 + $0x54c] sm:$0xf0] }
 0x1ba   :  { %v8690_v44 = vld [vmem:[#allocation7 + $0x540] sm:$0xf]  ;;  %v10266_v31 = vld [vmem:[#allocation7 + $0x64c] sm:$0xf0] }
 0x1bb   :  { %5631 = vmatpush.bf16.msra.mxu2 %v8307_v20  ;;  %v2940_v20 = vadd.f32 %v2939_v18, %v2926_v27  ;;  %v10270_v18 = vld [vmem:[#allocation7 + $0x66c] sm:$0xf0]  ;;  %v8818_v47 = vld [vmem:[#allocation7 + $0x640] sm:$0xf] }
 0x1bc   :  { %5604 = vmatpush.bf16.msra.mxu0 %v8035_v26  ;;  %v10278_v26 = vld [vmem:[#allocation7 + $0x6ac] sm:$0xf0]  ;;  %v8835_v58 = vor.u32 %v10270_v18, %v8834_v11  ;;  %v8658_v62 = vld [vmem:[#allocation7 + $0x500] sm:$0xf] }
 0x1bd   :  { %5618 = vmatpush.bf16.msra.mxu1 %v8163_v60  ;;  %v2914_v60 = vadd.f32 %v2913_v6, %v2900_v43  ;;  %v8867_v50 = vor.u32 %v10278_v26, %v8866_v25  ;;  %v2954_v2 = vadd.f32 %v2953_v21, %v2940_v20  ;;  %v10230_v43 = vld [vmem:[#allocation7 + $0x52c] sm:$0xf0]  ;;  %v3204_v25 = vperm.slane %v11057_v9, 2  ;;  %v9154_v15 = vld [vmem:[#allocation7 + $0x8e0] sm:$0xf] }
 0x1be   :  { %v10262_v56 = vld [vmem:[#allocation7 + $0x62c] sm:$0xf0]  ;;  %v8786_v30 = vld [vmem:[#allocation7 + $0x600] sm:$0xf] }
 0x1bf   :  { %5632 = vmatpush.bf16.msra.mxu2 %v8291_v51  ;;  %v10274_v51 = vld [vmem:[#allocation7 + $0x68c] sm:$0xf0]  ;;  %v2928_v54 = vadd.f32 %v2927_v24, %v2914_v60  ;;  %v8691_v24 = vor.u32 %v10234_v29, %v8690_v44  ;;  %v8530_v60 = vld [vmem:[#allocation7 + $0x400] sm:$0xf]  ;;  %v11111_v44 = vpack.c.bf16 %v11080_v19, %v11084_v28 }
 0x1c0   :  { %5605 = vmatpush.bf16.msra.mxu0 %v8019_v7  ;;  %v8851_v8 = vor.u32 %v10274_v51, %v8850_v4  ;;  %v10382_v4 = vld [vmem:[#allocation7 + $0x9ec] sm:$0xf0]  ;;  %v9266_v11 = vld [vmem:[#allocation7 + $0x9c0] sm:$0xf] }
 0x1c1   :  { %5619 = vmatpush.bf16.msra.mxu1 %v8147_v61  ;;  %v2981_v7 = vpop.f32.mrf.mxu1  ;;  %v8706_v61 = vld [vmem:[#allocation7 + $0x560] sm:$0xf]  ;;  %v2942_v10 = vadd.f32 %v2941_v48, %v2928_v54  ;;  %v10258_v0 = vld [vmem:[#allocation7 + $0x60c] sm:$0xf0] }
 0x1c2   :  { %v2967_v49 = vpop.f32.mrf.mxu0  ;;  %v10378_v18 = vld [vmem:[#allocation7 + $0x9cc] sm:$0xf0] }
 0x1c3   :  { %9556 = vmatmul.msk.bf16.vlgmr.msra.gmra.mxu0 %vm10775_vm2, %v11090_v13  ;;  %5633 = vmatpush.bf16.msra.mxu2 %v8275_v41  ;;  %v2968_v14 = vadd.f32 %v2967_v49, %v2954_v2  ;;  %v10226_v2 = vld [vmem:[#allocation7 + $0x50c] sm:$0xf0] }
 0x1c4   :  { %5654 = vmatpush.bf16.msrb.mxu0 %v8643_v32  ;;  %9561 = vmatmul.msk.bf16.vlgmr.msra.gmra.mxu1 %vm10775_vm2, %v11094_v22  ;;  %v10238_v32 = vld [vmem:[#allocation7 + $0x56c] sm:$0xf0]  ;;  %v8659_v54 = vor.u32 %v10226_v2, %v8658_v62  ;;  %v9090_v62 = vld [vmem:[#allocation7 + $0x860] sm:$0xf] }
 0x1c5   :  { %5668 = vmatpush.bf16.msrb.mxu1 %v8771_v59  ;;  %v8707_v59 = vor.u32 %v10238_v32, %v8706_v61  ;;  %v2982_v21 = vadd.f32 %v2981_v7, %v2968_v14  ;;  %v8531_v7 = vor.u32 %v10194_v46, %v8530_v60 }
 0x1c7   :  { %5682 = vmatpush.bf16.msrb.mxu2 %v8899_v38  ;;  %v2956_v38 = vadd.f32 %v2955_v3, %v2942_v10  ;;  %v10350_v3 = vld [vmem:[#allocation7 + $0x8ec] sm:$0xf0]  ;;  %v9138_v10 = vld [vmem:[#allocation7 + $0x8c0] sm:$0xf] }
 0x1c8   :  { %5655 = vmatpush.bf16.msrb.mxu0 %v8627_v63  ;;  %v8563_v63 = vor.u32 %v10202_v33, %v8562_v52  ;;  %v9155_v14 = vor.u32 %v10350_v3, %v9154_v15  ;;  %v11107_v33 = vpack.c.bf16 %v11078_v45, %v11076_v40  ;;  %v10366_v15 = vld [vmem:[#allocation7 + $0x96c] sm:$0xf0]  ;;  %v8498_v3 = vld [vmem:[#allocation7 + $0x3c0] sm:$0xf] }
 0x1c9   :  { %5669 = vmatpush.bf16.msrb.mxu1 %v8755_v35  ;;  %v2995_v41 = vpop.f32.mrf.mxu2  ;;  %v3009_v6 = vpop.f32.mrf.mxu3  ;;  %v8546_v35 = vld [vmem:[#allocation7 + $0x420] sm:$0xf] }
 0x1ca   :  { %v2996_v55 = vadd.f32 %v2995_v41, %v2982_v21  ;;  %v2969_v27 = vpop.f32.mrf.mxu0  ;;  %v2983_v20 = vpop.f32.mrf.mxu1  ;;  %v8547_v26 = vor.u32 %v10198_v36, %v8546_v35  ;;  %v9106_v35 = vld [vmem:[#allocation7 + $0x880] sm:$0xf] }
 0x1cb   :  { %5683 = vmatpush.bf16.msrb.mxu2 %v8883_v23  ;;  %v2970_v37 = vadd.f32 %v2969_v27, %v2956_v38  ;;  %v8674_v23 = vld [vmem:[#allocation7 + $0x520] sm:$0xf] }
 0x1cc   :  { %5656 = vmatpush.bf16.msrb.mxu0 %v8611_v53  ;;  %v3010_v1 = vadd.f32 %v3009_v6, %v2996_v55  ;;  %v8819_v53 = vor.u32 %v10266_v31, %v8818_v47  ;;  %v8675_v5 = vor.u32 %v10230_v43, %v8674_v23  ;;  %v9122_v38 = vld [vmem:[#allocation7 + $0x8a0] sm:$0xf]  ;;  %v10342_v55 = vld [vmem:[#allocation7 + $0x8ac] sm:$0xf0] }
 0x1cd   :  { %5670 = vmatpush.bf16.msrb.mxu1 %v8739_v16  ;;  %v8802_v16 = vld [vmem:[#allocation7 + $0x620] sm:$0xf]  ;;  %v10374_v6 = vld [vmem:[#allocation7 + $0x9ac] sm:$0xf0] }
 0x1ce   :  { %v3194_v48 = vmul.f32 %v3186_v39, %v3010_v1  ;;  %v8803_v51 = vor.u32 %v10262_v56, %v8802_v16  ;;  %v9250_v27 = vld [vmem:[#allocation7 + $0x9a0] sm:$0xf]  ;;  %v10414_v31 = vld [vmem:[#allocation7 + $0xaec] sm:$0xf0] }
 0x1cf   :  { %5684 = vmatpush.bf16.msrb.mxu2 %v8867_v50  ;;  %v2984_v50 = vadd.f32 %v2983_v20, %v2970_v37  ;;  %v9410_v47 = vld [vmem:[#allocation7 + $0xae0] sm:$0xf]  ;;  %v9251_v1 = vor.u32 %v10374_v6, %v9250_v27  ;;  %v10370_v20 = vld [vmem:[#allocation7 + $0x98c] sm:$0xf0] }
 0x1d0   :  { %5657 = vmatpush.bf16.msrb.mxu0 %v8595_v42  ;;  %v9282_v42 = vld [vmem:[#allocation7 + $0x9e0] sm:$0xf]  ;;  %v3212_v61 = vadd.f32 %v3204_v25, %v3194_v48  ;;  %v9411_v43 = vor.u32 %v10414_v31, %v9410_v47  ;;  %v10410_v56 = vld [vmem:[#allocation7 + $0xacc] sm:$0xf0] }
 0x1d1   :  { %5671 = vmatpush.bf16.msrb.mxu1 %v8723_v57  ;;  %v2997_v49 = vpop.f32.mrf.mxu2  ;;  %v3011_v57 = vpop.f32.mrf.mxu3  ;;  %v9234_v23 = vld [vmem:[#allocation7 + $0x980] sm:$0xf]  ;;  %v10334_v48 = vld [vmem:[#allocation7 + $0x86c] sm:$0xf0] }
 0x1d2   :  { %v2998_v9 = vadd.f32 %v2997_v49, %v2984_v50  ;;  %v11113_v29 = vmax.f32 %v3212_v61, 0.0  ;;  %v9394_v16 = vld [vmem:[#allocation7 + $0xac0] sm:$0xf]  ;;  %v9235_v46 = vor.u32 %v10370_v20, %v9234_v23  ;;  %v10186_v49 = vld [vmem:[#allocation7 + $0x3cc] sm:$0xf0] }
 0x1d3   :  { %5685 = vmatpush.bf16.msrb.mxu2 %v8851_v8  ;;  %v9283_v8 = vor.u32 %v10382_v4, %v9282_v42  ;;  %v9218_v50 = vld [vmem:[#allocation7 + $0x960] sm:$0xf]  ;;  %v9395_v2 = vor.u32 %v10410_v56, %v9394_v16  ;;  %v10406_v4 = vld [vmem:[#allocation7 + $0xaac] sm:$0xf0]  ;;  %v8132_v23 = vld [vmem:[#allocation7 + $0xf0] sm:$0xf0] }
 0x1d4   :  { %5658 = vmatpush.bf16.msrb.mxu0 %v8579_v34  ;;  %v3012_v32 = vadd.f32 %v3011_v57, %v2998_v9  ;;  %v10346_v34 = vld [vmem:[#allocation7 + $0x8cc] sm:$0xf0]  ;;  %v3236_v36 = vrot.slane %v11113_v29, 7  ;;  %v9378_v42 = vld [vmem:[#allocation7 + $0xaa0] sm:$0xf]  ;;  %v9091_v9 = vor.u32 %v10334_v48, %v9090_v62  ;;  %v9219_v57 = vor.u32 %v10366_v15, %v9218_v50 }
 0x1d5   :  { %5672 = vmatpush.bf16.msrb.mxu1 %v8707_v59  ;;  %v8787_v59 = vor.u32 %v10258_v0, %v8786_v30  ;;  %v9139_v21 = vor.u32 %v10346_v34, %v9138_v10  ;;  %v10330_v30 = vld [vmem:[#allocation7 + $0x84c] sm:$0xf0]  ;;  %v9202_v0 = vld [vmem:[#allocation7 + $0x940] sm:$0xf]  ;;  %v10124_v20 = vld [vmem:[#allocation7 + $0x1e4] sm:$0xf] }
 0x1d6   :  { %v3198_v52 = vmul.f32 %v3186_v39, %v3012_v32  ;;  %v10338_v39 = vld [vmem:[#allocation7 + $0x88c] sm:$0xf0]  ;;  %v8482_v61 = vld [vmem:[#allocation7 + $0x3a0] sm:$0xf]  ;;  %v8260_v56 = vld [vmem:[#allocation7 + $0x1f0] sm:$0xf0] }
 0x1d7   :  { %5686 = vmatpush.bf16.msrb.mxu2 %v8835_v58  ;;  %v9267_v58 = vor.u32 %v10378_v18, %v9266_v11  ;;  %v9107_v60 = vor.u32 %v10338_v39, %v9106_v35  ;;  %v10182_v32 = vld [vmem:[#allocation7 + $0x3ac] sm:$0xf0]  ;;  %v9346_v27 = vld [vmem:[#allocation7 + $0xa60] sm:$0xf]  ;;  %v10092_v39 = vld [vmem:[#allocation7 + $0xe4] sm:$0xf] }
 0x1d8   :  { %5659 = vmatpush.bf16.msrb.mxu0 %v8563_v63  ;;  %v3216_v41 = vadd.f32 %v3204_v25, %v3198_v52  ;;  %v10190_v25 = vld [vmem:[#allocation7 + $0x3ec] sm:$0xf0]  ;;  %v8483_v34 = vor.u32 %v10182_v32, %v8482_v61  ;;  %v3258_v62 = vrot.slane %v11076_v40, 1  ;;  %v3262_v50 = vrot.slane %v11078_v45, 1  ;;  %v10084_v61 = vld [vmem:[#allocation7 + $0xa4] sm:$0xf] }
 0x1d9   :  { %5673 = vmatpush.bf16.msrb.mxu1 %v8691_v24  ;;  %v9123_v24 = vor.u32 %v10342_v55, %v9122_v38  ;;  %v10402_v10 = vld [vmem:[#allocation7 + $0xa8c] sm:$0xf0]  ;;  %v8466_v38 = vld [vmem:[#allocation7 + $0x380] sm:$0xf]  ;;  %v8100_v32 = vld [vmem:[#allocation7 + $0xb0] sm:$0xf0] }
 0x1da   :  { %v11116_v63 = vmax.f32 %v3216_v41, 0.0  ;;  %v10326_v52 = vld [vmem:[#allocation7 + $0x82c] sm:$0xf0] }
 0x1db   :  { %5687 = vmatpush.bf16.msrb.mxu2 %v8819_v53  ;;  %v8514_v53 = vld [vmem:[#allocation7 + $0x3e0] sm:$0xf]  ;;  %v10178_v55 = vld [vmem:[#allocation7 + $0x38c] sm:$0xf0] }
 0x1dc   :  { %5660 = vmatpush.bf16.msrb.mxu0 %v8547_v26  ;;  %v3240_v37 = vrot.slane %v11116_v63, 7  ;;  %v10398_v6 = vld [vmem:[#allocation7 + $0xa6c] sm:$0xf0]  ;;  %v8467_v47 = vor.u32 %v10178_v55, %v8466_v38  ;;  %v11128_v16 = vpack.c.bf16 %v11116_v63, %v11113_v29  ;;  %v10156_v38 = vld [vmem:[#allocation7 + $0x2e4] sm:$0xf] }
 0x1dd   :  { %5674 = vmatpush.bf16.msrb.mxu1 %v8675_v5  ;;  %v8515_v5 = vor.u32 %v10190_v25, %v8514_v53  ;;  %v10322_v35 = vld [vmem:[#allocation7 + $0x80c] sm:$0xf0]  ;;  %v8450_v53 = vld [vmem:[#allocation7 + $0x360] sm:$0xf]  ;;  %v8388_v55 = vld [vmem:[#allocation7 + $0x2f0] sm:$0xf0] }
 0x1de   :  { %v11121_v26 = vpack.c.bf16 %v3240_v37, %v3236_v36  ;;  %v9170_v36 = vld [vmem:[#allocation7 + $0x900] sm:$0xf]  ;;  %v10174_v25 = vld [vmem:[#allocation7 + $0x36c] sm:$0xf0] }
 0x1df   :  { %5688 = vmatpush.bf16.msrb.mxu2 %v8803_v51  ;;  %5640 = vmatpush.bf16.msra.mxu3 %v8515_v5  ;;  %v8499_v51 = vor.u32 %v10186_v49, %v8498_v3  ;;  %v9330_v5 = vld [vmem:[#allocation7 + $0xa40] sm:$0xf]  ;;  %v8135_v3 = vor.u32 %v10092_v39, %v8132_v23  ;;  %v10088_v49 = vld [vmem:[#allocation7 + $0xc4] sm:$0xf]  ;;  %v10170_v40 = vld [vmem:[#allocation7 + $0x34c] sm:$0xf0]  ;;  %v8391_v23 = vor.u32 %v10156_v38, %v8388_v55 }
 0x1e0   :  { %5661 = vmatpush.bf16.msrb.mxu0 %v8531_v7  ;;  %9566 = vmatmul.msk.bf16.vlgmr.msra.gmra.mxu2 %vm10775_vm2, %v11121_v26  ;;  %v9074_v7 = vld [vmem:[#allocation7 + $0x840] sm:$0xf]  ;;  %v10162_v39 = vld [vmem:[#allocation7 + $0x30c] sm:$0xf0]  ;;  %v10068_v38 = vld [vmem:[#allocation7 + $0x24] sm:$0xf] }
 0x1e1   :  { %5675 = vmatpush.bf16.msrb.mxu1 %v8659_v54  ;;  %v9379_v54 = vor.u32 %v10406_v4, %v9378_v42  ;;  %v9075_v11 = vor.u32 %v10330_v30, %v9074_v7  ;;  %v8116_v42 = vld [vmem:[#allocation7 + $0xd0] sm:$0xf0]  ;;  %v8263_v4 = vor.u32 %v10124_v20, %v8260_v56  ;;  %v9314_v30 = vld [vmem:[#allocation7 + $0xa20] sm:$0xf]  ;;  %v10152_v56 = vld [vmem:[#allocation7 + $0x2c4] sm:$0xf] }
 0x1e2   :  { %v8244_v7 = vld [vmem:[#allocation7 + $0x1d0] sm:$0xf0] }
 0x1e3   :  { %5662 = vmatmul.bf16.vlgmr.msrb.gmra.mxu0 %v11107_v33  ;;  %5689 = vmatpush.bf16.msrb.mxu2 %v8787_v59  ;;  %v9058_v59 = vld [vmem:[#allocation7 + $0x820] sm:$0xf]  ;;  %v8036_v55 = vld [vmem:[#allocation7 + $0x30] sm:$0xf0] }
 0x1e4   :  { %5710 = vmatpush.bf16.msra.mxu0 %v9155_v14  ;;  %5676 = vmatmul.bf16.vlgmr.msrb.gmra.mxu1 %v11111_v44  ;;  %v10362_v14 = vld [vmem:[#allocation7 + $0x94c] sm:$0xf0]  ;;  %v9059_v31 = vor.u32 %v10326_v52, %v9058_v59  ;;  %v8418_v59 = vld [vmem:[#allocation7 + $0x320] sm:$0xf] }
 0x1e5   :  { %5724 = vmatpush.bf16.msra.mxu1 %v9283_v8  ;;  %5641 = vmatpush.bf16.msra.mxu3 %v8499_v51  ;;  %v9362_v8 = vld [vmem:[#allocation7 + $0xa80] sm:$0xf]  ;;  %v9203_v18 = vor.u32 %v10362_v14, %v9202_v0  ;;  %v10390_v0 = vld [vmem:[#allocation7 + $0xa2c] sm:$0xf0]  ;;  %v8119_v14 = vor.u32 %v10088_v49, %v8116_v42 }
 0x1e6   :  { %v9363_v41 = vor.u32 %v10402_v10, %v9362_v8  ;;  %v11139_v10 = vpop.f32.mrf.mxu0  ;;  %v10166_v52 = vld [vmem:[#allocation7 + $0x32c] sm:$0xf0] }
 0x1e7   :  { %5738 = vmatpush.bf16.msra.mxu2 %v9411_v43  ;;  %v9347_v43 = vor.u32 %v10398_v6, %v9346_v27  ;;  %v3264_v27 = vrot.slane %v11116_v63, 1  ;;  %v3037_v6 = vpop.f32.mrf.mxu1  ;;  %v8372_v63 = vld [vmem:[#allocation7 + $0x2d0] sm:$0xf0] }
 0x1e8   :  { %5711 = vmatpush.bf16.msra.mxu0 %v9139_v21  ;;  %v9186_v21 = vld [vmem:[#allocation7 + $0x920] sm:$0xf]  ;;  %v8375_v42 = vor.u32 %v10152_v56, %v8372_v63  ;;  %v8148_v63 = vld [vmem:[#allocation7 + $0x110] sm:$0xf0] }
 0x1e9   :  { %5725 = vmatpush.bf16.msra.mxu1 %v9267_v58  ;;  %v10358_v58 = vld [vmem:[#allocation7 + $0x92c] sm:$0xf0]  ;;  %5642 = vmatpush.bf16.msra.mxu3 %v8483_v34 }
 0x1ea   :  { %v9187_v37 = vor.u32 %v10358_v58, %v9186_v21  ;;  %v9298_v21 = vld [vmem:[#allocation7 + $0xa00] sm:$0xf]  ;;  %v8419_v58 = vor.u32 %v10166_v52, %v8418_v59  ;;  %v3038_v59 = vadd.f32 %v3037_v6, %v11139_v10  ;;  %v10144_v52 = vld [vmem:[#allocation7 + $0x284] sm:$0xf] }
 0x1eb   :  { %5739 = vmatpush.bf16.msra.mxu2 %v9395_v2  ;;  %v3263_v2 = vrot.slane %v11080_v19, 1  ;;  %v3259_v19 = vrot.slane %v11084_v28, 1  ;;  %v8228_v28 = vld [vmem:[#allocation7 + $0x1b0] sm:$0xf0]  ;;  %v10140_v6 = vld [vmem:[#allocation7 + $0x264] sm:$0xf] }
 0x1ec   :  { %5712 = vmatpush.bf16.msra.mxu0 %v9123_v24  ;;  %v9042_v24 = vld [vmem:[#allocation7 + $0x800] sm:$0xf] }
 0x1ed   :  { %5726 = vmatpush.bf16.msra.mxu1 %v9251_v1  ;;  %v10354_v1 = vld [vmem:[#allocation7 + $0x90c] sm:$0xf0]  ;;  %5643 = vmatpush.bf16.msra.mxu3 %v8467_v47  ;;  %v9043_v48 = vor.u32 %v10322_v35, %v9042_v24  ;;  %v11137_v8 = vpack.c.bf16 %v3263_v2, %v3259_v19  ;;  %v8103_v47 = vor.u32 %v10084_v61, %v8100_v32  ;;  %v8084_v24 = vld [vmem:[#allocation7 + $0x90] sm:$0xf0]  ;;  %v10076_v2 = vld [vmem:[#allocation7 + $0x64] sm:$0xf] }
 0x1ee   :  { %v9171_v15 = vor.u32 %v10354_v1, %v9170_v36  ;;  %v8402_v1 = vld [vmem:[#allocation7 + $0x300] sm:$0xf]  ;;  %v8052_v19 = vld [vmem:[#allocation7 + $0x50] sm:$0xf0] }
 0x1ef   :  { %5740 = vmatpush.bf16.msra.mxu2 %v9379_v54  ;;  %v11135_v54 = vpack.c.bf16 %v3262_v50, %v3258_v62  ;;  %v8403_v20 = vor.u32 %v10162_v39, %v8402_v1  ;;  %v11158_v61 = vpop.f32.mrf.mxu1  ;;  %v8324_v1 = vld [vmem:[#allocation7 + $0x270] sm:$0xf0] }
 0x1f0   :  { %5713 = vmatpush.bf16.msra.mxu0 %v9107_v60  ;;  %v10394_v60 = vld [vmem:[#allocation7 + $0xa4c] sm:$0xf0]  ;;  %5690 = vmatmul.bf16.vlgmr.msrb.gmra.mxu2 %v11128_v16 }
 0x1f1   :  { %5727 = vmatpush.bf16.msra.mxu1 %v9235_v46  ;;  %v8451_v46 = vor.u32 %v10174_v25, %v8450_v53  ;;  %v9331_v51 = vor.u32 %v10394_v60, %v9330_v5  ;;  %v9026_v53 = vld [vmem:[#allocation7 + $0x7e0] sm:$0xf]  ;;  %v10318_v25 = vld [vmem:[#allocation7 + $0x7ec] sm:$0xf0]  ;;  %v3260_v60 = vrot.slane %v11113_v29, 1  ;;  %v11153_v29 = vpop.f32.mrf.mxu0 }
 0x1f2   :  { %v9027_v5 = vor.u32 %v10318_v25, %v9026_v53  ;;  %v10096_v53 = vld [vmem:[#allocation7 + $0x104] sm:$0xf] }
 0x1f3   :  { %5741 = vmatpush.bf16.msra.mxu2 %v9363_v41  ;;  %5644 = vmatpush.bf16.msra.mxu3 %v8451_v46  ;;  %v10386_v41 = vld [vmem:[#allocation7 + $0xa0c] sm:$0xf0]  ;;  %v3051_v46 = vpop.f32.mrf.mxu2  ;;  %v11151_v49 = vpack.c.bf16 %v3264_v27, %v3260_v60  ;;  %v10100_v27 = vld [vmem:[#allocation7 + $0x124] sm:$0xf]  ;;  %v8644_v60 = vld [vmem:[#allocation7 + $0x4f0] sm:$0xf0] }
 0x1f4   :  { %5714 = vmatpush.bf16.msra.mxu0 %v9091_v9  ;;  %v10120_v9 = vld [vmem:[#allocation7 + $0x1c4] sm:$0xf]  ;;  %v9299_v36 = vor.u32 %v10386_v41, %v9298_v21 }
 0x1f5   :  { %5728 = vmatpush.bf16.msra.mxu1 %v9219_v57  ;;  %v8434_v57 = vld [vmem:[#allocation7 + $0x340] sm:$0xf]  ;;  %v8247_v34 = vor.u32 %v10120_v9, %v8244_v7  ;;  %v10314_v9 = vld [vmem:[#allocation7 + $0x7cc] sm:$0xf0] }
 0x1f6   :  { %v8435_v45 = vor.u32 %v10170_v40, %v8434_v57  ;;  %v10148_v57 = vld [vmem:[#allocation7 + $0x2a4] sm:$0xf]  ;;  %v8356_v40 = vld [vmem:[#allocation7 + $0x2b0] sm:$0xf0] }
 0x1f7   :  { %5742 = vmatpush.bf16.msra.mxu2 %v9347_v43  ;;  %v8212_v43 = vld [vmem:[#allocation7 + $0x190] sm:$0xf0]  ;;  %v8359_v32 = vor.u32 %v10148_v57, %v8356_v40  ;;  %v8151_v40 = vor.u32 %v10096_v53, %v8148_v63 }
 0x1f8   :  { %5715 = vmatpush.bf16.msra.mxu0 %v9075_v11  ;;  %v9315_v11 = vor.u32 %v10390_v0, %v9314_v30  ;;  %5645 = vmatpush.bf16.msra.mxu3 %v8435_v45  ;;  %v10072_v45 = vld [vmem:[#allocation7 + $0x44] sm:$0xf] }
 0x1f9   :  { %5729 = vmatpush.bf16.msra.mxu1 %v9203_v18  ;;  %v10116_v18 = vld [vmem:[#allocation7 + $0x1a4] sm:$0xf]  ;;  %v8055_v41 = vor.u32 %v10072_v45, %v8052_v19 }
 0x1fa   :  { %v8231_v35 = vor.u32 %v10116_v18, %v8228_v28  ;;  %v10310_v18 = vld [vmem:[#allocation7 + $0x7ac] sm:$0xf0]  ;;  %v8340_v28 = vld [vmem:[#allocation7 + $0x290] sm:$0xf0] }
 0x1fb   :  { %5743 = vmatpush.bf16.msra.mxu2 %v9331_v51  ;;  %v9010_v51 = vld [vmem:[#allocation7 + $0x7c0] sm:$0xf] }
 0x1fc   :  { %5716 = vmatpush.bf16.msra.mxu0 %v9059_v31  ;;  %v10080_v31 = vld [vmem:[#allocation7 + $0x84] sm:$0xf]  ;;  %5646 = vmatpush.bf16.msra.mxu3 %v8419_v58  ;;  %v9011_v7 = vor.u32 %v10314_v9, %v9010_v51 }
 0x1fd   :  { %5730 = vmatpush.bf16.msra.mxu1 %v9187_v37  ;;  %v10112_v37 = vld [vmem:[#allocation7 + $0x184] sm:$0xf]  ;;  %v8087_v62 = vor.u32 %v10080_v31, %v8084_v24  ;;  %v8343_v31 = vor.u32 %v10144_v52, %v8340_v28  ;;  %v8164_v24 = vld [vmem:[#allocation7 + $0x130] sm:$0xf0] }
 0x1fe   :  { %v8215_v50 = vor.u32 %v10112_v37, %v8212_v43  ;;  %v3052_v37 = vadd.f32 %v3051_v46, %v3038_v59  ;;  %v10064_v43 = vld [vmem:[#allocation7 + $0x4] sm:$0xf]  ;;  %v8167_v56 = vor.u32 %v10100_v27, %v8164_v24  ;;  %v8292_v52 = vld [vmem:[#allocation7 + $0x230] sm:$0xf0] }
 0x1ff   :  { %5744 = vmatpush.bf16.msra.mxu2 %v9315_v11  ;;  %v8994_v11 = vld [vmem:[#allocation7 + $0x7a0] sm:$0xf]  ;;  %v10252_v46 = vld [vmem:[#allocation7 + $0x5e4] sm:$0xf] }
 0x200   :  { %5717 = vmatpush.bf16.msra.mxu0 %v9043_v48  ;;  %v11149_v48 = vpop.f32.mrf.mxu3  ;;  %5647 = vmatpush.bf16.msra.mxu3 %v8403_v20  ;;  %v8995_v21 = vor.u32 %v10310_v18, %v8994_v11  ;;  %v8020_v20 = vld [vmem:[#allocation7 + $0x10] sm:$0xf0]  ;;  %v10132_v59 = vld [vmem:[#allocation7 + $0x224] sm:$0xf] }
 0x201   :  { %5731 = vmatpush.bf16.msra.mxu1 %v9171_v15  ;;  %v8068_v15 = vld [vmem:[#allocation7 + $0x70] sm:$0xf0]  ;;  %v3093_v9 = vpop.f32.mrf.mxu1  ;;  %v8023_v57 = vor.u32 %v10064_v43, %v8020_v20  ;;  %v10244_v24 = vld [vmem:[#allocation7 + $0x5a4] sm:$0xf] }
 0x202   :  { %v8071_v30 = vor.u32 %v10076_v2, %v8068_v15  ;;  %v3079_v25 = vpop.f32.mrf.mxu0  ;;  %v10302_v2 = vld [vmem:[#allocation7 + $0x76c] sm:$0xf0]  ;;  %v3066_v15 = vadd.f32 %v11149_v48, %v3052_v37  ;;  %v3040_v48 = vadd.f32 %v11158_v61, %v11153_v29  ;;  %v8756_v18 = vld [vmem:[#allocation7 + $0x5d0] sm:$0xf0]  ;;  %v8930_v29 = vld [vmem:[#allocation7 + $0x720] sm:$0xf] }
 0x203   :  { %9574 = vmatmul.msk.bf16.vlgmr.msra.gmra.mxu0 %vm10841_vm4, %v11135_v54  ;;  %5745 = vmatpush.bf16.msra.mxu2 %v9299_v36  ;;  %v10306_v36 = vld [vmem:[#allocation7 + $0x78c] sm:$0xf0]  ;;  %v10284_v43 = vld [vmem:[#allocation7 + $0x6e4] sm:$0xf]  ;;  %v8900_v20 = vld [vmem:[#allocation7 + $0x6f0] sm:$0xf0] }
 0x204   :  { %5766 = vmatpush.bf16.msrb.mxu0 %v8135_v3  ;;  %9577 = vmatmul.msk.bf16.vlgmr.msra.gmra.mxu1 %vm10841_vm4, %v11137_v8  ;;  %v10108_v3 = vld [vmem:[#allocation7 + $0x164] sm:$0xf]  ;;  %v3080_v11 = vadd.f32 %v3079_v25, %v3066_v15  ;;  %v10294_v61 = vld [vmem:[#allocation7 + $0x72c] sm:$0xf0] }
 0x205   :  { %5780 = vmatpush.bf16.msrb.mxu1 %v8263_v4  ;;  %v8196_v4 = vld [vmem:[#allocation7 + $0x170] sm:$0xf0]  ;;  %5696 = vmatpush.bf16.msrb.mxu3 %v9027_v5  ;;  %v10220_v5 = vld [vmem:[#allocation7 + $0x4e4] sm:$0xf] }
 0x206   :  { %9580 = vmatmul.msk.bf16.vlgmr.msra.gmra.mxu2 %vm10841_vm4, %v11151_v49  ;;  %v8199_v0 = vor.u32 %v10108_v3, %v8196_v4  ;;  %v8772_v3 = vld [vmem:[#allocation7 + $0x5f0] sm:$0xf0]  ;;  %v10240_v15 = vld [vmem:[#allocation7 + $0x584] sm:$0xf] }
 0x207   :  { %5794 = vmatpush.bf16.msrb.mxu2 %v8391_v23  ;;  %v8039_v23 = vor.u32 %v10068_v38, %v8036_v55  ;;  %v8308_v4 = vld [vmem:[#allocation7 + $0x250] sm:$0xf0]  ;;  %v8775_v45 = vor.u32 %v10252_v46, %v8772_v3  ;;  %v10212_v38 = vld [vmem:[#allocation7 + $0x4a4] sm:$0xf] }
 0x208   :  { %5767 = vmatpush.bf16.msrb.mxu0 %v8119_v14  ;;  %v10104_v14 = vld [vmem:[#allocation7 + $0x144] sm:$0xf]  ;;  %v11163_v10 = vpop.f32.mrf.mxu3  ;;  %v8612_v55 = vld [vmem:[#allocation7 + $0x4b0] sm:$0xf0] }
 0x209   :  { %5781 = vmatpush.bf16.msrb.mxu1 %v8247_v34  ;;  %v8180_v34 = vld [vmem:[#allocation7 + $0x150] sm:$0xf0]  ;;  %5697 = vmatpush.bf16.msrb.mxu3 %v9011_v7  ;;  %v8647_v7 = vor.u32 %v10220_v5, %v8644_v60  ;;  %v8615_v53 = vor.u32 %v10212_v38, %v8612_v55  ;;  %v3095_v25 = vpop.f32.mrf.mxu1  ;;  %v8914_v60 = vld [vmem:[#allocation7 + $0x700] sm:$0xf] }
 0x20a   :  { %v8183_v58 = vor.u32 %v10104_v14, %v8180_v34  ;;  %v10248_v14 = vld [vmem:[#allocation7 + $0x5c4] sm:$0xf]  ;;  %v10298_v34 = vld [vmem:[#allocation7 + $0x74c] sm:$0xf0]  ;;  %v3081_v37 = vpop.f32.mrf.mxu0  ;;  %v8596_v5 = vld [vmem:[#allocation7 + $0x490] sm:$0xf0] }
 0x20b   :  { %5795 = vmatpush.bf16.msrb.mxu2 %v8375_v42  ;;  %v10136_v42 = vld [vmem:[#allocation7 + $0x244] sm:$0xf]  ;;  %v8759_v27 = vor.u32 %v10248_v14, %v8756_v18  ;;  %v8724_v3 = vld [vmem:[#allocation7 + $0x590] sm:$0xf0] }
 0x20c   :  { %5768 = vmatpush.bf16.msrb.mxu0 %v8103_v47  ;;  %v11161_v47 = vpop.f32.mrf.mxu2  ;;  %v8311_v19 = vor.u32 %v10136_v42, %v8308_v4  ;;  %v10280_v4 = vld [vmem:[#allocation7 + $0x6c4] sm:$0xf] }
 0x20d   :  { %5782 = vmatpush.bf16.msrb.mxu1 %v8231_v35  ;;  %v8978_v35 = vld [vmem:[#allocation7 + $0x780] sm:$0xf]  ;;  %5698 = vmatpush.bf16.msrb.mxu3 %v8995_v21 }
 0x20e   :  { %v8979_v39 = vor.u32 %v10306_v36, %v8978_v35  ;;  %v3054_v35 = vadd.f32 %v11161_v47, %v3040_v48  ;;  %v3094_v36 = vadd.f32 %v3093_v9, %v3080_v11  ;;  %v10208_v47 = vld [vmem:[#allocation7 + $0x484] sm:$0xf]  ;;  %v8868_v11 = vld [vmem:[#allocation7 + $0x6b0] sm:$0xf0] }
 0x20f   :  { %5796 = vmatpush.bf16.msrb.mxu2 %v8359_v32  ;;  %v8946_v32 = vld [vmem:[#allocation7 + $0x740] sm:$0xf]  ;;  %v10276_v48 = vld [vmem:[#allocation7 + $0x6a4] sm:$0xf] }
 0x210   :  { %5769 = vmatpush.bf16.msrb.mxu0 %v8087_v62  ;;  %v8327_v62 = vor.u32 %v10140_v6, %v8324_v1  ;;  %v8947_v28 = vor.u32 %v10298_v34, %v8946_v32  ;;  %v8740_v6 = vld [vmem:[#allocation7 + $0x5b0] sm:$0xf0]  ;;  %v10128_v1 = vld [vmem:[#allocation7 + $0x204] sm:$0xf]  ;;  %v3068_v46 = vadd.f32 %v11163_v10, %v3054_v35  ;;  %v8871_v55 = vor.u32 %v10276_v48, %v8868_v11 }
 0x211   :  { %5783 = vmatpush.bf16.msrb.mxu1 %v8215_v50  ;;  %v8962_v50 = vld [vmem:[#allocation7 + $0x760] sm:$0xf]  ;;  %5699 = vmatpush.bf16.msrb.mxu3 %v8979_v39  ;;  %v8276_v39 = vld [vmem:[#allocation7 + $0x210] sm:$0xf0]  ;;  %v10236_v32 = vld [vmem:[#allocation7 + $0x564] sm:$0xf] }
 0x212   :  { %v8963_v51 = vor.u32 %v10302_v2, %v8962_v50  ;;  %v8279_v63 = vor.u32 %v10128_v1, %v8276_v39  ;;  %v8903_v2 = vor.u32 %v10284_v43, %v8900_v20  ;;  %v3082_v9 = vadd.f32 %v3081_v37, %v3068_v46  ;;  %v8708_v34 = vld [vmem:[#allocation7 + $0x570] sm:$0xf0] }
 0x213   :  { %5797 = vmatpush.bf16.msrb.mxu2 %v8343_v31  ;;  %v8295_v31 = vor.u32 %v10132_v59, %v8292_v52  ;;  %v8548_v1 = vld [vmem:[#allocation7 + $0x430] sm:$0xf0] }
 0x214   :  { %5770 = vmatpush.bf16.msrb.mxu0 %v8071_v30  ;;  %v10216_v30 = vld [vmem:[#allocation7 + $0x4c4] sm:$0xf]  ;;  %v3107_v21 = vpop.f32.mrf.mxu2  ;;  %v3096_v18 = vadd.f32 %v3095_v25, %v3082_v9  ;;  %v8676_v25 = vld [vmem:[#allocation7 + $0x530] sm:$0xf0] }
 0x215   :  { %5784 = vmatpush.bf16.msrb.mxu1 %v8199_v0  ;;  %v8628_v0 = vld [vmem:[#allocation7 + $0x4d0] sm:$0xf0]  ;;  %5700 = vmatpush.bf16.msrb.mxu3 %v8963_v51  ;;  %v3108_v50 = vadd.f32 %v3107_v21, %v3094_v36  ;;  %v8711_v21 = vor.u32 %v10236_v32, %v8708_v34  ;;  %v10348_v9 = vld [vmem:[#allocation7 + $0x8e4] sm:$0xf] }
 0x216   :  { %v8884_v51 = vld [vmem:[#allocation7 + $0x6d0] sm:$0xf0] }
 0x217   :  { %5798 = vmatpush.bf16.msrb.mxu2 %v8327_v62  ;;  %v10290_v62 = vld [vmem:[#allocation7 + $0x70c] sm:$0xf0]  ;;  %v8887_v14 = vor.u32 %v10280_v4, %v8884_v51  ;;  %v8660_v4 = vld [vmem:[#allocation7 + $0x510] sm:$0xf0] }
 0x218   :  { %5771 = vmatpush.bf16.msrb.mxu0 %v8055_v41  ;;  %v3121_v41 = vpop.f32.mrf.mxu3  ;;  %v8915_v42 = vor.u32 %v10290_v62, %v8914_v60  ;;  %v10460_v60 = vld [vmem:[#allocation8] sm:$0xf] }
 0x219   :  { %5785 = vmatpush.bf16.msrb.mxu1 %v8183_v58  ;;  %v8631_v58 = vor.u32 %v10216_v30, %v8628_v0  ;;  %5701 = vmatpush.bf16.msrb.mxu3 %v8947_v28  ;;  %v10204_v30 = vld [vmem:[#allocation7 + $0x464] sm:$0xf]  ;;  %v8580_v0 = vld [vmem:[#allocation7 + $0x470] sm:$0xf0]  ;;  %v3187_v62 = vperm.slane %v10460_v60, 3 }
 0x21a   :  { %v8583_v52 = vor.u32 %v10204_v30, %v8580_v0  ;;  %v9284_v30 = vld [vmem:[#allocation7 + $0x9f0] sm:$0xf0]  ;;  %v10264_v0 = vld [vmem:[#allocation7 + $0x644] sm:$0xf]  ;;  %v10446_v60 = vld [vmem:[#allocation7 + $0xbec] sm:$0xf0] }
 0x21b   :  { %5799 = vmatpush.bf16.msrb.mxu2 %v8311_v19 }
 0x21c   :  { %5772 = vmatpush.bf16.msrb.mxu0 %v8039_v23  ;;  %v8931_v23 = vor.u32 %v10294_v61, %v8930_v29  ;;  %v8852_v29 = vld [vmem:[#allocation7 + $0x690] sm:$0xf0] }
 0x21d   :  { %5786 = vmatpush.bf16.msrb.mxu1 %v8167_v56  ;;  %v8743_v56 = vor.u32 %v10244_v24, %v8740_v6  ;;  %v10272_v24 = vld [vmem:[#allocation7 + $0x684] sm:$0xf] }
 0x21e   :  { %5702 = vmatpush.bf16.msrb.mxu3 %v8931_v23  ;;  %v10196_v6 = vld [vmem:[#allocation7 + $0x424] sm:$0xf] }
 0x21f   :  { %5800 = vmatpush.bf16.msrb.mxu2 %v8295_v31  ;;  %v8692_v31 = vld [vmem:[#allocation7 + $0x550] sm:$0xf0] }
 0x220   :  { %5773 = vmatpush.bf16.msrb.mxu0 %v8023_v57  ;;  %v8599_v57 = vor.u32 %v10208_v47, %v8596_v5  ;;  %v3123_v19 = vpop.f32.mrf.mxu3  ;;  %v10228_v47 = vld [vmem:[#allocation7 + $0x524] sm:$0xf] }
 0x221   :  { %5787 = vmatpush.bf16.msrb.mxu1 %v8151_v40  ;;  %v3109_v40 = vpop.f32.mrf.mxu2  ;;  %v3149_v28 = vpop.f32.mrf.mxu1 }
 0x222   :  { %v3135_v10 = vpop.f32.mrf.mxu0  ;;  %5703 = vmatpush.bf16.msrb.mxu3 %v8915_v42  ;;  %v3110_v38 = vadd.f32 %v3109_v40, %v3096_v18  ;;  %v10224_v42 = vld [vmem:[#allocation7 + $0x504] sm:$0xf] }
 0x223   :  { %9588 = vmatmul.msk.bf16.vlgmr.msrb.gmra.mxu0 %vm10775_vm2, %v11090_v13  ;;  %5801 = vmatpush.bf16.msrb.mxu2 %v8279_v63  ;;  %v8836_v63 = vld [vmem:[#allocation7 + $0x670] sm:$0xf0]  ;;  %v10380_v40 = vld [vmem:[#allocation7 + $0x9e4] sm:$0xf]  ;;  %v8663_v11 = vor.u32 %v10224_v42, %v8660_v4 }
 0x224   :  { %5822 = vmatpush.bf16.msra.mxu0 %v8647_v7  ;;  %9593 = vmatmul.msk.bf16.vlgmr.msrb.gmra.mxu1 %vm10775_vm2, %v11094_v22  ;;  %v8727_v7 = vor.u32 %v10240_v15, %v8724_v3  ;;  %v3124_v39 = vadd.f32 %v3123_v19, %v3110_v38  ;;  %v8679_v15 = vor.u32 %v10228_v47, %v8676_v25  ;;  %v8532_v3 = vld [vmem:[#allocation7 + $0x410] sm:$0xf0]  ;;  %v10412_v25 = vld [vmem:[#allocation7 + $0xae4] sm:$0xf] }
 0x225   :  { %5836 = vmatpush.bf16.msra.mxu1 %v8775_v45  ;;  %v3122_v45 = vadd.f32 %v3121_v41, %v3108_v50  ;;  %v10200_v41 = vld [vmem:[#allocation7 + $0x444] sm:$0xf]  ;;  %v8551_v50 = vor.u32 %v10196_v6, %v8548_v1  ;;  %v9124_v1 = vld [vmem:[#allocation7 + $0x8b0] sm:$0xf0] }
 0x226   :  { %9598 = vmatmul.msk.bf16.vlgmr.msrb.gmra.mxu2 %vm10775_vm2, %v11121_v26  ;;  %v10340_v6 = vld [vmem:[#allocation7 + $0x8a4] sm:$0xf]  ;;  %v9236_v4 = vld [vmem:[#allocation7 + $0x990] sm:$0xf0] }
 0x227   :  { %5850 = vmatpush.bf16.msra.mxu2 %v8903_v2  ;;  %v3136_v59 = vadd.f32 %v3135_v10, %v3122_v45  ;;  %v10192_v2 = vld [vmem:[#allocation7 + $0x404] sm:$0xf]  ;;  %v8820_v45 = vld [vmem:[#allocation7 + $0x650] sm:$0xf0] }
 0x228   :  { %5823 = vmatpush.bf16.msra.mxu0 %v8631_v58  ;;  %v8564_v58 = vld [vmem:[#allocation7 + $0x450] sm:$0xf0]  ;;  %v10461_v10 = vld [vmem:[#allocation10] sm:$0xf]  ;;  %v8535_v34 = vor.u32 %v10192_v2, %v8532_v3 }
 0x229   :  { %5837 = vmatpush.bf16.msra.mxu1 %v8759_v27  ;;  %v10232_v27 = vld [vmem:[#allocation7 + $0x544] sm:$0xf]  ;;  %v3150_v61 = vadd.f32 %v3149_v28, %v3136_v59  ;;  %v8567_v35 = vor.u32 %v10200_v41, %v8564_v58  ;;  %v3163_v36 = vpop.f32.mrf.mxu2  ;;  %v3177_v43 = vpop.f32.mrf.mxu3  ;;  %v8823_v28 = vor.u32 %v10264_v0, %v8820_v45  ;;  %v9140_v41 = vld [vmem:[#allocation7 + $0x8d0] sm:$0xf0]  ;;  %v9522_v0 = vld [vmem:[#allocation7 + $0xbc0] sm:$0xf] }
 0x22a   :  { %v8695_v37 = vor.u32 %v10232_v27, %v8692_v31  ;;  %v3137_v20 = vpop.f32.mrf.mxu0  ;;  %v10376_v58 = vld [vmem:[#allocation7 + $0x9c4] sm:$0xf]  ;;  %v8804_v31 = vld [vmem:[#allocation7 + $0x630] sm:$0xf0] }
 0x22b   :  { %5851 = vmatpush.bf16.msra.mxu2 %v8887_v14  ;;  %v3164_v23 = vadd.f32 %v3163_v36, %v3150_v61  ;;  %v3138_v46 = vadd.f32 %v3137_v20, %v3124_v39  ;;  %v3205_v14 = vperm.slane %v10461_v10, 3  ;;  %v10260_v27 = vld [vmem:[#allocation7 + $0x624] sm:$0xf]  ;;  %v8788_v20 = vld [vmem:[#allocation7 + $0x610] sm:$0xf0] }
 0x22c   :  { %5824 = vmatpush.bf16.msra.mxu0 %v8615_v53  ;;  %v8855_v53 = vor.u32 %v10272_v24, %v8852_v29  ;;  %v10372_v39 = vld [vmem:[#allocation7 + $0x9a4] sm:$0xf]  ;;  %v10442_v10 = vld [vmem:[#allocation7 + $0xbcc] sm:$0xf0] }
 0x22d   :  { %5838 = vmatpush.bf16.msra.mxu1 %v8743_v56  ;;  %v10268_v56 = vld [vmem:[#allocation7 + $0x664] sm:$0xf]  ;;  %v3178_v5 = vadd.f32 %v3177_v43, %v3164_v23  ;;  %v9252_v23 = vld [vmem:[#allocation7 + $0x9b0] sm:$0xf0] }
 0x22e   :  { %v8839_v51 = vor.u32 %v10268_v56, %v8836_v63  ;;  %v10256_v43 = vld [vmem:[#allocation7 + $0x604] sm:$0xf]  ;;  %v9412_v56 = vld [vmem:[#allocation7 + $0xaf0] sm:$0xf0]  ;;  %v9127_v63 = vor.u32 %v10340_v6, %v9124_v1  ;;  %v10434_v1 = vld [vmem:[#allocation7 + $0xb8c] sm:$0xf0] }
 0x22f   :  { %5852 = vmatpush.bf16.msra.mxu2 %v8871_v55  ;;  %v3195_v19 = vmul.f32 %v3187_v62, %v3178_v5  ;;  %v9268_v55 = vld [vmem:[#allocation7 + $0x9d0] sm:$0xf0]  ;;  %v9538_v5 = vld [vmem:[#allocation7 + $0xbe0] sm:$0xf]  ;;  %v10336_v2 = vld [vmem:[#allocation7 + $0x884] sm:$0xf]  ;;  %v9415_v3 = vor.u32 %v10412_v25, %v9412_v56 }
 0x230   :  { %5825 = vmatpush.bf16.msra.mxu0 %v8599_v57  ;;  %v9156_v57 = vld [vmem:[#allocation7 + $0x8f0] sm:$0xf0]  ;;  %v9271_v36 = vor.u32 %v10376_v58, %v9268_v55  ;;  %v10368_v42 = vld [vmem:[#allocation7 + $0x984] sm:$0xf]  ;;  %v10438_v58 = vld [vmem:[#allocation7 + $0xbac] sm:$0xf0] }
 0x231   :  { %5839 = vmatpush.bf16.msra.mxu1 %v8727_v7  ;;  %v3151_v7 = vpop.f32.mrf.mxu1  ;;  %v3165_v48 = vpop.f32.mrf.mxu2  ;;  %v9159_v18 = vor.u32 %v10348_v9, %v9156_v57  ;;  %v3213_v24 = vadd.f32 %v3205_v14, %v3195_v19  ;;  %v10408_v57 = vld [vmem:[#allocation7 + $0xac4] sm:$0xf]  ;;  %v9239_v19 = vor.u32 %v10368_v42, %v9236_v4  ;;  %v9076_v55 = vld [vmem:[#allocation7 + $0x850] sm:$0xf0] }
 0x232   :  { %v3152_v32 = vadd.f32 %v3151_v7, %v3138_v46  ;;  %v3179_v38 = vpop.f32.mrf.mxu3  ;;  %v9255_v46 = vor.u32 %v10372_v39, %v9252_v23  ;;  %v9539_v7 = vor.u32 %v10446_v60, %v9538_v5  ;;  %v10324_v39 = vld [vmem:[#allocation7 + $0x824] sm:$0xf]  ;;  %v9060_v23 = vld [vmem:[#allocation7 + $0x830] sm:$0xf0]  ;;  %v9474_v60 = vld [vmem:[#allocation7 + $0xb60] sm:$0xf] }
 0x233   :  { %5853 = vmatpush.bf16.msra.mxu2 %v8855_v53  ;;  %v11180_v53 = vmax.f32 %v3213_v24, 0.0  ;;  %v9204_v24 = vld [vmem:[#allocation7 + $0x950] sm:$0xf0]  ;;  %v10396_v25 = vld [vmem:[#allocation7 + $0xa64] sm:$0xf]  ;;  %v9063_v5 = vor.u32 %v10324_v39, %v9060_v23 }
 0x234   :  { %5826 = vmatpush.bf16.msra.mxu0 %v8583_v52  ;;  %v3166_v59 = vadd.f32 %v3165_v48, %v3152_v32  ;;  %v9287_v52 = vor.u32 %v10380_v40, %v9284_v30  ;;  %v9396_v40 = vld [vmem:[#allocation7 + $0xad0] sm:$0xf0]  ;;  %v10364_v48 = vld [vmem:[#allocation7 + $0x964] sm:$0xf]  ;;  %v8394_v23 = vld [vmem:[#allocation7 + $0x2e8] sm:$0xf] }
 0x235   :  { %5840 = vmatpush.bf16.msra.mxu1 %v8711_v21  ;;  %v10344_v21 = vld [vmem:[#allocation7 + $0x8c4] sm:$0xf]  ;;  %v9092_v32 = vld [vmem:[#allocation7 + $0x870] sm:$0xf0] }
 0x236   :  { %v3180_v29 = vadd.f32 %v3179_v38, %v3166_v59  ;;  %v9143_v61 = vor.u32 %v10344_v21, %v9140_v41  ;;  %v9380_v59 = vld [vmem:[#allocation7 + $0xab0] sm:$0xf0]  ;;  %v9506_v21 = vld [vmem:[#allocation7 + $0xba0] sm:$0xf]  ;;  %v10328_v38 = vld [vmem:[#allocation7 + $0x844] sm:$0xf] }
 0x237   :  { %5854 = vmatpush.bf16.msra.mxu2 %v8839_v51  ;;  %v3237_v51 = vrot.slane %v11180_v53, 7  ;;  %v9348_v56 = vld [vmem:[#allocation7 + $0xa70] sm:$0xf0] }
 0x238   :  { %5827 = vmatpush.bf16.msra.mxu0 %v8567_v35  ;;  %v3199_v35 = vmul.f32 %v3187_v62, %v3180_v29  ;;  %v10400_v29 = vld [vmem:[#allocation7 + $0xa84] sm:$0xf]  ;;  %v9172_v42 = vld [vmem:[#allocation7 + $0x910] sm:$0xf0]  ;;  %v9351_v4 = vor.u32 %v10396_v25, %v9348_v56  ;;  %v10418_v25 = vld [vmem:[#allocation7 + $0xb0c] sm:$0xf0] }
 0x239   :  { %5841 = vmatpush.bf16.msra.mxu1 %v8695_v37  ;;  %v8807_v37 = vor.u32 %v10260_v27, %v8804_v31  ;;  %v10360_v31 = vld [vmem:[#allocation7 + $0x944] sm:$0xf] }
 0x23a   :  { %v3217_v47 = vadd.f32 %v3205_v14, %v3199_v35  ;;  %v10332_v14 = vld [vmem:[#allocation7 + $0x864] sm:$0xf]  ;;  %v9507_v35 = vor.u32 %v10438_v58, %v9506_v21  ;;  %v9207_v6 = vor.u32 %v10360_v31, %v9204_v24  ;;  %v10123_v21 = vld [vmem:[#allocation7 + $0x1d4] sm:$0xf0]  ;;  %v9316_v58 = vld [vmem:[#allocation7 + $0xa30] sm:$0xf0] }
 0x23b   :  { %5855 = vmatpush.bf16.msra.mxu2 %v8823_v28  ;;  %v9095_v28 = vor.u32 %v10332_v14, %v9092_v32  ;;  %v10422_v31 = vld [vmem:[#allocation7 + $0xb2c] sm:$0xf0]  ;;  %v10188_v56 = vld [vmem:[#allocation7 + $0x3e4] sm:$0xf] }
 0x23c   :  { %5828 = vmatpush.bf16.msra.mxu0 %v8551_v50  ;;  %v11183_v62 = vmax.f32 %v3217_v47, 0.0  ;;  %v8791_v50 = vor.u32 %v10256_v43, %v8788_v20  ;;  %v10356_v20 = vld [vmem:[#allocation7 + $0x924] sm:$0xf]  ;;  %v9188_v47 = vld [vmem:[#allocation7 + $0x930] sm:$0xf0] }
 0x23d   :  { %5842 = vmatpush.bf16.msra.mxu1 %v8679_v15  ;;  %v9108_v15 = vld [vmem:[#allocation7 + $0x890] sm:$0xf0] }
 0x23e   :  { %v3241_v9 = vrot.slane %v11183_v62, 7  ;;  %v9111_v30 = vor.u32 %v10336_v2, %v9108_v15  ;;  %v9191_v2 = vor.u32 %v10356_v20, %v9188_v47  ;;  %v9044_v15 = vld [vmem:[#allocation7 + $0x810] sm:$0xf0]  ;;  %v9426_v47 = vld [vmem:[#allocation7 + $0xb00] sm:$0xf] }
 0x23f   :  { %5856 = vmatpush.bf16.msra.mxu2 %v8807_v37  ;;  %v9490_v37 = vld [vmem:[#allocation7 + $0xb80] sm:$0xf] }
 0x240   :  { %5829 = vmatpush.bf16.msra.mxu0 %v8535_v34  ;;  %v11187_v45 = vpack.c.bf16 %v3241_v9, %v3237_v51  ;;  %v9399_v34 = vor.u32 %v10408_v57, %v9396_v40  ;;  %v8138_v51 = vld [vmem:[#allocation7 + $0xe8] sm:$0xf]  ;;  %v10095_v9 = vld [vmem:[#allocation7 + $0xf4] sm:$0xf0] }
 0x241   :  { %5843 = vmatpush.bf16.msra.mxu1 %v8663_v11  ;;  %v9220_v11 = vld [vmem:[#allocation7 + $0x970] sm:$0xf0]  ;;  %v8266_v57 = vld [vmem:[#allocation7 + $0x1e8] sm:$0xf]  ;;  %v10127_v40 = vld [vmem:[#allocation7 + $0x1f4] sm:$0xf0]  ;;  %v8139_v32 = vor.u32 %v10095_v9, %v8138_v51 }
 0x242   :  { %9571 = vmatmul.msk.bf16.vlgmr.msra.gmra.mxu3 %vm10775_vm2, %v11187_v45  ;;  %v9223_v41 = vor.u32 %v10364_v48, %v9220_v11  ;;  %v10426_v48 = vld [vmem:[#allocation7 + $0xb4c] sm:$0xf0]  ;;  %v8267_v11 = vor.u32 %v10127_v40, %v8266_v57  ;;  %v10155_v51 = vld [vmem:[#allocation7 + $0x2d4] sm:$0xf0]  ;;  %v3265_v9 = vrot.slane %v11183_v62, 1 }
 0x243   :  { %5830 = vmatmul.bf16.vlgmr.msra.gmra.mxu0 %v11107_v33  ;;  %5857 = vmatpush.bf16.msra.mxu2 %v8791_v50  ;;  %v10320_v50 = vld [vmem:[#allocation7 + $0x804] sm:$0xf] }
 0x244   :  { %5878 = vmatpush.bf16.msrb.mxu0 %v9159_v18  ;;  %5844 = vmatmul.bf16.vlgmr.msra.gmra.mxu1 %v11111_v44  ;;  %v10404_v18 = vld [vmem:[#allocation7 + $0xaa4] sm:$0xf] }
 0x245   :  { %5892 = vmatpush.bf16.msrb.mxu1 %v9287_v52  ;;  %5752 = vmatpush.bf16.msra.mxu3 %v9539_v7  ;;  %v9523_v52 = vor.u32 %v10442_v10, %v9522_v0  ;;  %v9383_v27 = vor.u32 %v10404_v18, %v9380_v59  ;;  %v10392_v7 = vld [vmem:[#allocation7 + $0xa44] sm:$0xf]  ;;  %v11195_v10 = vpack.c.bf16 %v11183_v62, %v11180_v53  ;;  %v8122_v59 = vld [vmem:[#allocation7 + $0xc8] sm:$0xf] }
 0x246   :  { %5858 = vmatmul.bf16.vlgmr.msra.gmra.mxu2 %v11128_v16 }
 0x247   :  { %5906 = vmatpush.bf16.msrb.mxu2 %v9415_v3  ;;  %v10352_v3 = vld [vmem:[#allocation7 + $0x904] sm:$0xf] }
 0x248   :  { %5879 = vmatpush.bf16.msrb.mxu0 %v9143_v61  ;;  %v9364_v61 = vld [vmem:[#allocation7 + $0xa90] sm:$0xf0]  ;;  %v9175_v14 = vor.u32 %v10352_v3, %v9172_v42  ;;  %v10115_v3 = vld [vmem:[#allocation7 + $0x194] sm:$0xf0]  ;;  %v9427_v42 = vor.u32 %v10418_v25, %v9426_v47  ;;  %v8330_v47 = vld [vmem:[#allocation7 + $0x268] sm:$0xf] }
 0x249   :  { %5893 = vmatpush.bf16.msrb.mxu1 %v9271_v36  ;;  %5753 = vmatpush.bf16.msra.mxu3 %v9523_v52  ;;  %v9079_v36 = vor.u32 %v10328_v38, %v9076_v55  ;;  %v9367_v43 = vor.u32 %v10400_v29, %v9364_v61  ;;  %v10091_v52 = vld [vmem:[#allocation7 + $0xd4] sm:$0xf0]  ;;  %v8106_v61 = vld [vmem:[#allocation7 + $0xa8] sm:$0xf] }
 0x24a   :  { %v8123_v55 = vor.u32 %v10091_v52, %v8122_v59  ;;  %v10151_v59 = vld [vmem:[#allocation7 + $0x2b4] sm:$0xf0] }
 0x24b   :  { %5907 = vmatpush.bf16.msrb.mxu2 %v9399_v34  ;;  %v9458_v34 = vld [vmem:[#allocation7 + $0xb40] sm:$0xf]  ;;  %v10143_v25 = vld [vmem:[#allocation7 + $0x274] sm:$0xf0] }
 0x24c   :  { %5880 = vmatpush.bf16.msrb.mxu0 %v9127_v63  ;;  %v9491_v63 = vor.u32 %v10434_v1, %v9490_v37  ;;  %v9459_v38 = vor.u32 %v10426_v48, %v9458_v34  ;;  %v10119_v37 = vld [vmem:[#allocation7 + $0x1b4] sm:$0xf0]  ;;  %v9300_v1 = vld [vmem:[#allocation7 + $0xa10] sm:$0xf0]  ;;  %v8202_v48 = vld [vmem:[#allocation7 + $0x168] sm:$0xf] }
 0x24d   :  { %5894 = vmatpush.bf16.msrb.mxu1 %v9255_v46  ;;  %5754 = vmatpush.bf16.msra.mxu3 %v9507_v35  ;;  %v10430_v46 = vld [vmem:[#allocation7 + $0xb6c] sm:$0xf0]  ;;  %v10087_v35 = vld [vmem:[#allocation7 + $0xb4] sm:$0xf0] }
 0x24e   :  { %v9475_v0 = vor.u32 %v10430_v46, %v9474_v60  ;;  %v8107_v20 = vor.u32 %v10087_v35, %v8106_v61  ;;  %v8516_v60 = vld [vmem:[#allocation7 + $0x3f0] sm:$0xf0]  ;;  %v8090_v46 = vld [vmem:[#allocation7 + $0x88] sm:$0xf] }
 0x24f   :  { %5908 = vmatpush.bf16.msrb.mxu2 %v9383_v27  ;;  %v9442_v27 = vld [vmem:[#allocation7 + $0xb20] sm:$0xf]  ;;  %v8519_v57 = vor.u32 %v10188_v56, %v8516_v60  ;;  %v8452_v60 = vld [vmem:[#allocation7 + $0x370] sm:$0xf0] }
 0x250   :  { %5881 = vmatpush.bf16.msrb.mxu0 %v9111_v30  ;;  %v9332_v30 = vld [vmem:[#allocation7 + $0xa50] sm:$0xf0]  ;;  %v9443_v39 = vor.u32 %v10422_v31, %v9442_v27  ;;  %v8186_v27 = vld [vmem:[#allocation7 + $0x148] sm:$0xf]  ;;  %v10107_v31 = vld [vmem:[#allocation7 + $0x154] sm:$0xf0] }
 0x251   :  { %5895 = vmatpush.bf16.msrb.mxu1 %v9239_v19  ;;  %5755 = vmatpush.bf16.msra.mxu3 %v9491_v63  ;;  %v9047_v19 = vor.u32 %v10320_v50, %v9044_v15  ;;  %v9335_v18 = vor.u32 %v10392_v7, %v9332_v30  ;;  %v10083_v50 = vld [vmem:[#allocation7 + $0x94] sm:$0xf0]  ;;  %v8218_v15 = vld [vmem:[#allocation7 + $0x188] sm:$0xf]  ;;  %v10184_v7 = vld [vmem:[#allocation7 + $0x3c4] sm:$0xf] }
 0x252   :  { %5704 = vmatmul.bf16.vlgmr.msrb.gmra.mxu3 %v11195_v10  ;;  %v8091_v40 = vor.u32 %v10083_v50, %v8090_v46  ;;  %v8219_v30 = vor.u32 %v10115_v3, %v8218_v15  ;;  %v8026_v46 = vld [vmem:[#allocation7 + $0x8] sm:$0xf]  ;;  %v10099_v3 = vld [vmem:[#allocation7 + $0x114] sm:$0xf0] }
 0x253   :  { %5909 = vmatpush.bf16.msrb.mxu2 %v9367_v43  ;;  %v10159_v43 = vld [vmem:[#allocation7 + $0x2f4] sm:$0xf0]  ;;  %v8154_v15 = vld [vmem:[#allocation7 + $0x108] sm:$0xf] }
 0x254   :  { %5882 = vmatpush.bf16.msrb.mxu0 %v9095_v28  ;;  %v8250_v28 = vld [vmem:[#allocation7 + $0x1c8] sm:$0xf] }
 0x255   :  { %5896 = vmatpush.bf16.msrb.mxu1 %v9223_v41  ;;  %v10388_v41 = vld [vmem:[#allocation7 + $0xa24] sm:$0xf]  ;;  %5756 = vmatpush.bf16.msra.mxu3 %v9475_v0  ;;  %v8251_v24 = vor.u32 %v10123_v21, %v8250_v28  ;;  %v8500_v0 = vld [vmem:[#allocation7 + $0x3d0] sm:$0xf0] }
 0x256   :  { %v9319_v29 = vor.u32 %v10388_v41, %v9316_v58  ;;  %v8503_v52 = vor.u32 %v10184_v7, %v8500_v0  ;;  %v10180_v21 = vld [vmem:[#allocation7 + $0x3a4] sm:$0xf]  ;;  %v8484_v41 = vld [vmem:[#allocation7 + $0x3b0] sm:$0xf0]  ;;  %v8058_v58 = vld [vmem:[#allocation7 + $0x48] sm:$0xf] }
 0x257   :  { %5910 = vmatpush.bf16.msrb.mxu2 %v9351_v4  ;;  %v8378_v4 = vld [vmem:[#allocation7 + $0x2c8] sm:$0xf]  ;;  %v8487_v61 = vor.u32 %v10180_v21, %v8484_v41  ;;  %v10139_v7 = vld [vmem:[#allocation7 + $0x254] sm:$0xf0] }
 0x258   :  { %5883 = vmatpush.bf16.msrb.mxu0 %v9079_v36  ;;  %v8234_v36 = vld [vmem:[#allocation7 + $0x1a8] sm:$0xf]  ;;  %v8379_v34 = vor.u32 %v10155_v51, %v8378_v4  ;;  %v10223_v51 = vld [vmem:[#allocation7 + $0x4f4] sm:$0xf0] }
 0x259   :  { %5897 = vmatpush.bf16.msrb.mxu1 %v9207_v6  ;;  %v10384_v6 = vld [vmem:[#allocation7 + $0xa04] sm:$0xf]  ;;  %5757 = vmatpush.bf16.msra.mxu3 %v9459_v38  ;;  %v8235_v63 = vor.u32 %v10119_v37, %v8234_v36  ;;  %v10075_v38 = vld [vmem:[#allocation7 + $0x54] sm:$0xf0]  ;;  %v8187_v37 = vor.u32 %v10107_v31, %v8186_v27  ;;  %v8650_v4 = vld [vmem:[#allocation7 + $0x4e8] sm:$0xf] }
 0x25a   :  { %v8059_v35 = vor.u32 %v10075_v38, %v8058_v58  ;;  %v10176_v36 = vld [vmem:[#allocation7 + $0x384] sm:$0xf]  ;;  %v8298_v21 = vld [vmem:[#allocation7 + $0x228] sm:$0xf] }
 0x25b   :  { %5911 = vmatpush.bf16.msrb.mxu2 %v9335_v18  ;;  %v8362_v18 = vld [vmem:[#allocation7 + $0x2a8] sm:$0xf]  ;;  %v10164_v38 = vld [vmem:[#allocation7 + $0x324] sm:$0xf] }
 0x25c   :  { %5884 = vmatpush.bf16.msrb.mxu0 %v9063_v5  ;;  %v9303_v5 = vor.u32 %v10384_v6, %v9300_v1  ;;  %v8468_v6 = vld [vmem:[#allocation7 + $0x390] sm:$0xf0]  ;;  %v8042_v1 = vld [vmem:[#allocation7 + $0x28] sm:$0xf] }
 0x25d   :  { %5898 = vmatpush.bf16.msrb.mxu1 %v9191_v2  ;;  %v8395_v2 = vor.u32 %v10159_v43, %v8394_v23  ;;  %5758 = vmatpush.bf16.msra.mxu3 %v9443_v39  ;;  %v10071_v39 = vld [vmem:[#allocation7 + $0x34] sm:$0xf0]  ;;  %v8170_v43 = vld [vmem:[#allocation7 + $0x128] sm:$0xf]  ;;  %v8471_v56 = vor.u32 %v10176_v36, %v8468_v6 }
 0x25e   :  { %v8282_v36 = vld [vmem:[#allocation7 + $0x208] sm:$0xf] }
 0x25f   :  { %5912 = vmatpush.bf16.msrb.mxu2 %v9319_v29  ;;  %v10147_v29 = vld [vmem:[#allocation7 + $0x294] sm:$0xf0] }
 0x260   :  { %5885 = vmatpush.bf16.msrb.mxu0 %v9047_v19  ;;  %v8074_v19 = vld [vmem:[#allocation7 + $0x68] sm:$0xf] }
 0x261   :  { %5899 = vmatpush.bf16.msrb.mxu1 %v9175_v14  ;;  %v10079_v14 = vld [vmem:[#allocation7 + $0x74] sm:$0xf0]  ;;  %5759 = vmatpush.bf16.msra.mxu3 %v9427_v42  ;;  %v8331_v42 = vor.u32 %v10143_v25, %v8330_v47  ;;  %v10316_v47 = vld [vmem:[#allocation7 + $0x7e4] sm:$0xf] }
 0x262   :  { %v8075_v28 = vor.u32 %v10079_v14, %v8074_v19  ;;  %v8155_v19 = vor.u32 %v10099_v3, %v8154_v15  ;;  %v8651_v14 = vor.u32 %v10223_v51, %v8650_v4  ;;  %v8890_v3 = vld [vmem:[#allocation7 + $0x6c8] sm:$0xf] }
 0x263   :  { %9606 = vmatmul.msk.bf16.vlgmr.msrb.gmra.mxu0 %vm10841_vm4, %v11135_v54  ;;  %5913 = vmatpush.bf16.msrb.mxu2 %v9303_v5  ;;  %v10172_v5 = vld [vmem:[#allocation7 + $0x364] sm:$0xf] }
 0x264   :  { %5934 = vmatpush.bf16.msra.mxu0 %v8139_v32  ;;  %9609 = vmatmul.msk.bf16.vlgmr.msrb.gmra.mxu1 %vm10841_vm4, %v11137_v8  ;;  %v3261_v32 = vrot.slane %v11180_v53, 1 }
 0x265   :  { %5948 = vmatpush.bf16.msra.mxu1 %v8267_v11  ;;  %v10111_v11 = vld [vmem:[#allocation7 + $0x174] sm:$0xf0]  ;;  %5808 = vmatpush.bf16.msrb.mxu3 %v8519_v57 }
 0x266   :  { %v11206_v62 = vpack.c.bf16 %v3265_v9, %v3261_v32  ;;  %9612 = vmatmul.msk.bf16.vlgmr.msrb.gmra.mxu2 %vm10841_vm4, %v11151_v49  ;;  %v8203_v53 = vor.u32 %v10111_v11, %v8202_v48  ;;  %v8778_v9 = vld [vmem:[#allocation7 + $0x5e8] sm:$0xf]  ;;  %v10255_v57 = vld [vmem:[#allocation7 + $0x5f4] sm:$0xf0]  ;;  %v10168_v32 = vld [vmem:[#allocation7 + $0x344] sm:$0xf] }
 0x267   :  { %5962 = vmatpush.bf16.msra.mxu2 %v8395_v2  ;;  %v10067_v2 = vld [vmem:[#allocation7 + $0x14] sm:$0xf0]  ;;  %v8779_v48 = vor.u32 %v10255_v57, %v8778_v9  ;;  %v10312_v9 = vld [vmem:[#allocation7 + $0x7c4] sm:$0xf] }
 0x268   :  { %5935 = vmatpush.bf16.msra.mxu0 %v8123_v55  ;;  %9583 = vmatmul.msk.bf16.vlgmr.msra.gmra.mxu3 %vm10841_vm4, %v11206_v62  ;;  %v8363_v55 = vor.u32 %v10151_v59, %v8362_v18  ;;  %v8027_v0 = vor.u32 %v10067_v2, %v8026_v46  ;;  %v8634_v18 = vld [vmem:[#allocation7 + $0x4c8] sm:$0xf]  ;;  %v10219_v59 = vld [vmem:[#allocation7 + $0x4d4] sm:$0xf0] }
 0x269   :  { %5949 = vmatpush.bf16.msra.mxu1 %v8251_v24  ;;  %v8346_v24 = vld [vmem:[#allocation7 + $0x288] sm:$0xf]  ;;  %5809 = vmatpush.bf16.msrb.mxu3 %v8503_v52  ;;  %v8635_v58 = vor.u32 %v10219_v59, %v8634_v18  ;;  %v10243_v2 = vld [vmem:[#allocation7 + $0x594] sm:$0xf0]  ;;  %v10308_v18 = vld [vmem:[#allocation7 + $0x7a4] sm:$0xf] }
 0x26a   :  { %v8347_v23 = vor.u32 %v10147_v29, %v8346_v24  ;;  %v8762_v52 = vld [vmem:[#allocation7 + $0x5c8] sm:$0xf]  ;;  %v10215_v29 = vld [vmem:[#allocation7 + $0x4b4] sm:$0xf0] }
 0x26b   :  { %5963 = vmatpush.bf16.msra.mxu2 %v8379_v34  ;;  %v8436_v34 = vld [vmem:[#allocation7 + $0x350] sm:$0xf0]  ;;  %v8618_v24 = vld [vmem:[#allocation7 + $0x4a8] sm:$0xf] }
 0x26c   :  { %5936 = vmatpush.bf16.msra.mxu0 %v8107_v20  ;;  %v10103_v20 = vld [vmem:[#allocation7 + $0x134] sm:$0xf0]  ;;  %v8439_v41 = vor.u32 %v10168_v32, %v8436_v34  ;;  %v8874_v32 = vld [vmem:[#allocation7 + $0x6a8] sm:$0xf] }
 0x26d   :  { %5950 = vmatpush.bf16.msra.mxu1 %v8235_v63  ;;  %5810 = vmatpush.bf16.msrb.mxu3 %v8487_v61  ;;  %v8043_v63 = vor.u32 %v10071_v39, %v8042_v1  ;;  %v8171_v50 = vor.u32 %v10103_v20, %v8170_v43  ;;  %v8746_v61 = vld [vmem:[#allocation7 + $0x5a8] sm:$0xf]  ;;  %v10287_v39 = vld [vmem:[#allocation7 + $0x6f4] sm:$0xf0]  ;;  %v10160_v43 = vld [vmem:[#allocation7 + $0x304] sm:$0xf] }
 0x26e   :  { %v8906_v1 = vld [vmem:[#allocation7 + $0x6e8] sm:$0xf]  ;;  %v8404_v20 = vld [vmem:[#allocation7 + $0x310] sm:$0xf0]  ;;  %v10279_v34 = vld [vmem:[#allocation7 + $0x6b4] sm:$0xf0] }
 0x26f   :  { %5964 = vmatpush.bf16.msra.mxu2 %v8363_v55  ;;  %v8420_v55 = vld [vmem:[#allocation7 + $0x330] sm:$0xf0]  ;;  %v8907_v46 = vor.u32 %v10287_v39, %v8906_v1  ;;  %v8407_v15 = vor.u32 %v10160_v43, %v8404_v20  ;;  %v10231_v1 = vld [vmem:[#allocation7 + $0x534] sm:$0xf0]  ;;  %v8842_v39 = vld [vmem:[#allocation7 + $0x668] sm:$0xf] }
 0x270   :  { %5937 = vmatpush.bf16.msra.mxu0 %v8091_v40  ;;  %v8314_v40 = vld [vmem:[#allocation7 + $0x248] sm:$0xf]  ;;  %v8423_v6 = vor.u32 %v10164_v38, %v8420_v55  ;;  %v10275_v55 = vld [vmem:[#allocation7 + $0x694] sm:$0xf0] }
 0x271   :  { %5951 = vmatpush.bf16.msra.mxu1 %v8219_v30  ;;  %5811 = vmatpush.bf16.msrb.mxu3 %v8471_v56  ;;  %v8455_v30 = vor.u32 %v10172_v5, %v8452_v60  ;;  %v8315_v11 = vor.u32 %v10139_v7, %v8314_v40  ;;  %v8602_v5 = vld [vmem:[#allocation7 + $0x488] sm:$0xf]  ;;  %v10211_v60 = vld [vmem:[#allocation7 + $0x494] sm:$0xf0]  ;;  %v9012_v40 = vld [vmem:[#allocation7 + $0x7d0] sm:$0xf0] }
 0x272   :  { %v8603_v51 = vor.u32 %v10211_v60, %v8602_v5  ;;  %v8586_v7 = vld [vmem:[#allocation7 + $0x468] sm:$0xf]  ;;  %v10195_v5 = vld [vmem:[#allocation7 + $0x414] sm:$0xf0] }
 0x273   :  { %5965 = vmatpush.bf16.msra.mxu2 %v8347_v23  ;;  %v8619_v23 = vor.u32 %v10215_v29, %v8618_v24  ;;  %v8858_v38 = vld [vmem:[#allocation7 + $0x688] sm:$0xf]  ;;  %v10304_v24 = vld [vmem:[#allocation7 + $0x784] sm:$0xf] }
 0x274   :  { %5938 = vmatpush.bf16.msra.mxu0 %v8075_v28  ;;  %v10251_v28 = vld [vmem:[#allocation7 + $0x5d4] sm:$0xf0]  ;;  %v8666_v60 = vld [vmem:[#allocation7 + $0x508] sm:$0xf] }
 0x275   :  { %5952 = vmatpush.bf16.msra.mxu1 %v8203_v53  ;;  %v10135_v53 = vld [vmem:[#allocation7 + $0x234] sm:$0xf0]  ;;  %5812 = vmatpush.bf16.msrb.mxu3 %v8455_v30  ;;  %v8763_v27 = vor.u32 %v10251_v28, %v8762_v52  ;;  %v8996_v52 = vld [vmem:[#allocation7 + $0x7b0] sm:$0xf0]  ;;  %v8570_v28 = vld [vmem:[#allocation7 + $0x448] sm:$0xf] }
 0x276   :  { %v8299_v31 = vor.u32 %v10135_v53, %v8298_v21  ;;  %v10207_v30 = vld [vmem:[#allocation7 + $0x474] sm:$0xf0]  ;;  %v8875_v53 = vor.u32 %v10279_v34, %v8874_v32  ;;  %v9146_v32 = vld [vmem:[#allocation7 + $0x8c8] sm:$0xf] }
 0x277   :  { %5966 = vmatpush.bf16.msra.mxu2 %v8331_v42  ;;  %v10283_v42 = vld [vmem:[#allocation7 + $0x6d4] sm:$0xf0] }
 0x278   :  { %5939 = vmatpush.bf16.msra.mxu0 %v8059_v35  ;;  %v10247_v35 = vld [vmem:[#allocation7 + $0x5b4] sm:$0xf0] }
 0x279   :  { %5953 = vmatpush.bf16.msra.mxu1 %v8187_v37  ;;  %v10131_v37 = vld [vmem:[#allocation7 + $0x214] sm:$0xf0]  ;;  %5813 = vmatpush.bf16.msrb.mxu3 %v8439_v41  ;;  %v8747_v25 = vor.u32 %v10247_v35, %v8746_v61  ;;  %v8698_v41 = vld [vmem:[#allocation7 + $0x548] sm:$0xf]  ;;  %v8980_v61 = vld [vmem:[#allocation7 + $0x790] sm:$0xf0] }
 0x27a   :  { %v8283_v56 = vor.u32 %v10131_v37, %v8282_v36  ;;  %v10203_v21 = vld [vmem:[#allocation7 + $0x454] sm:$0xf0]  ;;  %v8554_v35 = vld [vmem:[#allocation7 + $0x428] sm:$0xf]  ;;  %v8859_v37 = vor.u32 %v10275_v55, %v8858_v38  ;;  %v8983_v43 = vor.u32 %v10304_v24, %v8980_v61 }
 0x27b   :  { %5967 = vmatpush.bf16.msra.mxu2 %v8315_v11  ;;  %v8587_v11 = vor.u32 %v10207_v30, %v8586_v7  ;;  %v10199_v36 = vld [vmem:[#allocation7 + $0x434] sm:$0xf0]  ;;  %v10296_v30 = vld [vmem:[#allocation7 + $0x744] sm:$0xf]  ;;  %v9130_v38 = vld [vmem:[#allocation7 + $0x8a8] sm:$0xf] }
 0x27c   :  { %5940 = vmatpush.bf16.msra.mxu0 %v8043_v63  ;;  %v9028_v63 = vld [vmem:[#allocation7 + $0x7f0] sm:$0xf0]  ;;  %v8555_v20 = vor.u32 %v10199_v36, %v8554_v35  ;;  %v10347_v34 = vld [vmem:[#allocation7 + $0x8d4] sm:$0xf0]  ;;  %v8794_v24 = vld [vmem:[#allocation7 + $0x608] sm:$0xf] }
 0x27d   :  { %5954 = vmatpush.bf16.msra.mxu1 %v8171_v50  ;;  %v8730_v50 = vld [vmem:[#allocation7 + $0x588] sm:$0xf]  ;;  %5814 = vmatpush.bf16.msrb.mxu3 %v8423_v6  ;;  %v9031_v4 = vor.u32 %v10316_v47, %v9028_v63  ;;  %v10300_v47 = vld [vmem:[#allocation7 + $0x764] sm:$0xf]  ;;  %v10343_v55 = vld [vmem:[#allocation7 + $0x8b4] sm:$0xf0] }
 0x27e   :  { %v8731_v57 = vor.u32 %v10243_v2, %v8730_v50  ;;  %v8682_v6 = vld [vmem:[#allocation7 + $0x528] sm:$0xf]  ;;  %v10415_v36 = vld [vmem:[#allocation7 + $0xaf4] sm:$0xf0] }
 0x27f   :  { %5968 = vmatpush.bf16.msra.mxu2 %v8299_v31  ;;  %v8571_v31 = vor.u32 %v10203_v21, %v8570_v28  ;;  %v8683_v63 = vor.u32 %v10231_v1, %v8682_v6  ;;  %v9162_v2 = vld [vmem:[#allocation7 + $0x8e8] sm:$0xf]  ;;  %v9147_v28 = vor.u32 %v10347_v34, %v9146_v32  ;;  %v10292_v21 = vld [vmem:[#allocation7 + $0x724] sm:$0xf]  ;;  %v8916_v1 = vld [vmem:[#allocation7 + $0x710] sm:$0xf0] }
 0x280   :  { %5941 = vmatpush.bf16.msra.mxu0 %v8027_v0  ;;  %v8891_v0 = vor.u32 %v10283_v42, %v8890_v3  ;;  %v9290_v3 = vld [vmem:[#allocation7 + $0x9e8] sm:$0xf]  ;;  %v10383_v42 = vld [vmem:[#allocation7 + $0x9f4] sm:$0xf0]  ;;  %v10288_v6 = vld [vmem:[#allocation7 + $0x704] sm:$0xf] }
 0x281   :  { %5955 = vmatpush.bf16.msra.mxu1 %v8155_v19  ;;  %v8714_v19 = vld [vmem:[#allocation7 + $0x568] sm:$0xf]  ;;  %5815 = vmatpush.bf16.msrb.mxu3 %v8407_v15  ;;  %v10351_v15 = vld [vmem:[#allocation7 + $0x8f4] sm:$0xf0]  ;;  %v10436_v32 = vld [vmem:[#allocation7 + $0xba4] sm:$0xf] }
 0x282   :  { %v9163_v7 = vor.u32 %v10351_v15, %v9162_v2  ;;  %v9418_v35 = vld [vmem:[#allocation7 + $0xae8] sm:$0xf] }
 0x283   :  { %9620 = vmatmul.msk.bf16.vlgmr.msra.gmra.mxu0 %vm10775_vm2, %v11090_v13  ;;  %5969 = vmatpush.bf16.msra.mxu2 %v8283_v56  ;;  %v8538_v56 = vld [vmem:[#allocation7 + $0x408] sm:$0xf] }
 0x284   :  { %5990 = vmatpush.bf16.msrb.mxu0 %v8651_v14  ;;  %9625 = vmatmul.msk.bf16.vlgmr.msra.gmra.mxu1 %vm10775_vm2, %v11094_v22  ;;  %v10239_v14 = vld [vmem:[#allocation7 + $0x574] sm:$0xf0] }
 0x285   :  { %6004 = vmatpush.bf16.msrb.mxu1 %v8779_v48  ;;  %5864 = vmatpush.bf16.msra.mxu3 %v9031_v4  ;;  %v9015_v48 = vor.u32 %v10312_v9, %v9012_v40  ;;  %v8715_v59 = vor.u32 %v10239_v14, %v8714_v19  ;;  %v8826_v4 = vld [vmem:[#allocation7 + $0x648] sm:$0xf]  ;;  %v9291_v19 = vor.u32 %v10383_v42, %v9290_v3  ;;  %v10440_v3 = vld [vmem:[#allocation7 + $0xbc4] sm:$0xf] }
 0x286   :  { %9630 = vmatmul.msk.bf16.vlgmr.msra.gmra.mxu2 %vm10775_vm2, %v11121_v26  ;;  %9603 = vmatmul.msk.bf16.vlgmr.msrb.gmra.mxu3 %vm10775_vm2, %v11187_v45 }
 0x287   :  { %6018 = vmatpush.bf16.msrb.mxu2 %v8907_v46  ;;  %v10227_v46 = vld [vmem:[#allocation7 + $0x514] sm:$0xf0] }
 0x288   :  { %5991 = vmatpush.bf16.msrb.mxu0 %v8635_v58  ;;  %v10235_v58 = vld [vmem:[#allocation7 + $0x554] sm:$0xf0]  ;;  %v8667_v40 = vor.u32 %v10227_v46, %v8666_v60  ;;  %v8919_v60 = vor.u32 %v10288_v6, %v8916_v1  ;;  %v9402_v46 = vld [vmem:[#allocation7 + $0xac8] sm:$0xf] }
 0x289   :  { %6005 = vmatpush.bf16.msrb.mxu1 %v8763_v27  ;;  %5865 = vmatpush.bf16.msra.mxu3 %v9015_v48  ;;  %v8999_v27 = vor.u32 %v10308_v18, %v8996_v52  ;;  %v8699_v29 = vor.u32 %v10235_v58, %v8698_v41  ;;  %v9274_v48 = vld [vmem:[#allocation7 + $0x9c8] sm:$0xf] }
 0x28a   :  { %v8810_v18 = vld [vmem:[#allocation7 + $0x628] sm:$0xf] }
 0x28b   :  { %6019 = vmatpush.bf16.msrb.mxu2 %v8891_v0  ;;  %v8948_v0 = vld [vmem:[#allocation7 + $0x750] sm:$0xf0] }
 0x28c   :  { %5992 = vmatpush.bf16.msrb.mxu0 %v8619_v23  ;;  %v10271_v23 = vld [vmem:[#allocation7 + $0x674] sm:$0xf0]  ;;  %v8951_v52 = vor.u32 %v10296_v30, %v8948_v0  ;;  %v9386_v30 = vld [vmem:[#allocation7 + $0xaa8] sm:$0xf] }
 0x28d   :  { %6006 = vmatpush.bf16.msrb.mxu1 %v8747_v25  ;;  %5866 = vmatpush.bf16.msra.mxu3 %v8999_v27  ;;  %v8964_v25 = vld [vmem:[#allocation7 + $0x770] sm:$0xf0]  ;;  %v8843_v50 = vor.u32 %v10271_v23, %v8842_v39  ;;  %v9258_v27 = vld [vmem:[#allocation7 + $0x9a8] sm:$0xf]  ;;  %v10444_v39 = vld [vmem:[#allocation7 + $0xbe4] sm:$0xf] }
 0x28e   :  { %v8967_v9 = vor.u32 %v10300_v47, %v8964_v25  ;;  %v9114_v47 = vld [vmem:[#allocation7 + $0x888] sm:$0xf]  ;;  %v10339_v25 = vld [vmem:[#allocation7 + $0x894] sm:$0xf0] }
 0x28f   :  { %6020 = vmatpush.bf16.msrb.mxu2 %v8875_v53  ;;  %v8932_v53 = vld [vmem:[#allocation7 + $0x730] sm:$0xf0]  ;;  %v9115_v15 = vor.u32 %v10339_v25, %v9114_v47  ;;  %v10407_v0 = vld [vmem:[#allocation7 + $0xab4] sm:$0xf0]  ;;  %v9178_v25 = vld [vmem:[#allocation7 + $0x908] sm:$0xf] }
 0x290   :  { %5993 = vmatpush.bf16.msrb.mxu0 %v8603_v51  ;;  %v10267_v51 = vld [vmem:[#allocation7 + $0x654] sm:$0xf0]  ;;  %v8935_v61 = vor.u32 %v10292_v21, %v8932_v53  ;;  %v9370_v21 = vld [vmem:[#allocation7 + $0xa88] sm:$0xf] }
 0x291   :  { %6007 = vmatpush.bf16.msrb.mxu1 %v8731_v57  ;;  %5867 = vmatpush.bf16.msra.mxu3 %v8983_v43  ;;  %v8539_v57 = vor.u32 %v10195_v5, %v8538_v56  ;;  %v8827_v14 = vor.u32 %v10267_v51, %v8826_v4  ;;  %v9419_v56 = vor.u32 %v10415_v36, %v9418_v35  ;;  %v10371_v5 = vld [vmem:[#allocation7 + $0x994] sm:$0xf0]  ;;  %v9524_v4 = vld [vmem:[#allocation7 + $0xbd0] sm:$0xf0]  ;;  %v9098_v51 = vld [vmem:[#allocation7 + $0x868] sm:$0xf] }
 0x292   :  { %v10403_v53 = vld [vmem:[#allocation7 + $0xa94] sm:$0xf0]  ;;  %v9354_v36 = vld [vmem:[#allocation7 + $0xa68] sm:$0xf] }
 0x293   :  { %6021 = vmatpush.bf16.msrb.mxu2 %v8859_v37  ;;  %v9131_v37 = vor.u32 %v10343_v55, %v9130_v38  ;;  %v10432_v38 = vld [vmem:[#allocation7 + $0xb84] sm:$0xf]  ;;  %v10359_v35 = vld [vmem:[#allocation7 + $0x934] sm:$0xf0] }
 0x294   :  { %5994 = vmatpush.bf16.msrb.mxu0 %v8587_v11  ;;  %v10379_v11 = vld [vmem:[#allocation7 + $0x9d4] sm:$0xf0] }
 0x295   :  { %6008 = vmatpush.bf16.msrb.mxu1 %v8715_v59  ;;  %v10263_v59 = vld [vmem:[#allocation7 + $0x634] sm:$0xf0]  ;;  %5868 = vmatpush.bf16.msra.mxu3 %v8967_v9  ;;  %v9275_v41 = vor.u32 %v10379_v11, %v9274_v48  ;;  %v9508_v48 = vld [vmem:[#allocation7 + $0xbb0] sm:$0xf0]  ;;  %v9082_v11 = vld [vmem:[#allocation7 + $0x848] sm:$0xf] }
 0x296   :  { %v8811_v58 = vor.u32 %v10263_v59, %v8810_v18  ;;  %v10335_v9 = vld [vmem:[#allocation7 + $0x874] sm:$0xf0]  ;;  %v9387_v59 = vor.u32 %v10407_v0, %v9386_v30  ;;  %v10089_v30 = vld [vmem:[#allocation7 + $0xcc] sm:$0xf]  ;;  %v8124_v0 = vld [vmem:[#allocation7 + $0xd8] sm:$0xf0] }
 0x297   :  { %6022 = vmatpush.bf16.msrb.mxu2 %v8843_v50  ;;  %v10411_v50 = vld [vmem:[#allocation7 + $0xad4] sm:$0xf0] }
 0x298   :  { %5995 = vmatpush.bf16.msrb.mxu0 %v8571_v31  ;;  %v10375_v31 = vld [vmem:[#allocation7 + $0x9b4] sm:$0xf0] }
 0x299   :  { %6009 = vmatpush.bf16.msrb.mxu1 %v8699_v29  ;;  %v10259_v29 = vld [vmem:[#allocation7 + $0x614] sm:$0xf0]  ;;  %5869 = vmatpush.bf16.msra.mxu3 %v8951_v52  ;;  %v9259_v23 = vor.u32 %v10375_v31, %v9258_v27  ;;  %v9210_v52 = vld [vmem:[#allocation7 + $0x948] sm:$0xf]  ;;  %v9492_v27 = vld [vmem:[#allocation7 + $0xb90] sm:$0xf0] }
 0x29a   :  { %v8795_v43 = vor.u32 %v10259_v29, %v8794_v24  ;;  %v10331_v18 = vld [vmem:[#allocation7 + $0x854] sm:$0xf0]  ;;  %v9066_v31 = vld [vmem:[#allocation7 + $0x828] sm:$0xf]  ;;  %v9371_v29 = vor.u32 %v10403_v53, %v9370_v21  ;;  %v9495_v6 = vor.u32 %v10432_v38, %v9492_v27  ;;  %v10085_v21 = vld [vmem:[#allocation7 + $0xac] sm:$0xf] }
 0x29b   :  { %6023 = vmatpush.bf16.msrb.mxu2 %v8827_v14  ;;  %v9099_v14 = vor.u32 %v10335_v9, %v9098_v51  ;;  %v10327_v24 = vld [vmem:[#allocation7 + $0x834] sm:$0xf0]  ;;  %v10424_v9 = vld [vmem:[#allocation7 + $0xb44] sm:$0xf]  ;;  %v8108_v53 = vld [vmem:[#allocation7 + $0xb8] sm:$0xf0] }
 0x29c   :  { %5996 = vmatpush.bf16.msrb.mxu0 %v8555_v20  ;;  %v9540_v20 = vld [vmem:[#allocation7 + $0xbf0] sm:$0xf0]  ;;  %v9067_v1 = vor.u32 %v10327_v24, %v9066_v31  ;;  %v10323_v47 = vld [vmem:[#allocation7 + $0x814] sm:$0xf0]  ;;  %v9306_v38 = vld [vmem:[#allocation7 + $0xa08] sm:$0xf] }
 0x29d   :  { %6010 = vmatpush.bf16.msrb.mxu1 %v8683_v63  ;;  %v9242_v63 = vld [vmem:[#allocation7 + $0x988] sm:$0xf]  ;;  %5870 = vmatpush.bf16.msra.mxu3 %v8935_v61  ;;  %v9543_v2 = vor.u32 %v10444_v39, %v9540_v20  ;;  %v10428_v39 = vld [vmem:[#allocation7 + $0xb64] sm:$0xf]  ;;  %v10157_v31 = vld [vmem:[#allocation7 + $0x2ec] sm:$0xf] }
 0x29e   :  { %v9243_v42 = vor.u32 %v10371_v5, %v9242_v63  ;;  %v9194_v61 = vld [vmem:[#allocation7 + $0x928] sm:$0xf]  ;;  %v10093_v5 = vld [vmem:[#allocation7 + $0xec] sm:$0xf]  ;;  %v8396_v24 = vld [vmem:[#allocation7 + $0x2f8] sm:$0xf0] }
 0x29f   :  { %6024 = vmatpush.bf16.msrb.mxu2 %v8811_v58  ;;  %v9083_v58 = vor.u32 %v10331_v18, %v9082_v11  ;;  %v9195_v20 = vor.u32 %v10359_v35, %v9194_v61  ;;  %v8127_v11 = vor.u32 %v10089_v30, %v8124_v0  ;;  %v10420_v18 = vld [vmem:[#allocation7 + $0xb24] sm:$0xf]  ;;  %v9428_v35 = vld [vmem:[#allocation7 + $0xb10] sm:$0xf0]  ;;  %v8490_v0 = vld [vmem:[#allocation7 + $0x3a8] sm:$0xf] }
 0x2a0   :  { %5997 = vmatpush.bf16.msrb.mxu0 %v8539_v57  ;;  %v9403_v57 = vor.u32 %v10411_v50, %v9402_v46  ;;  %v10125_v46 = vld [vmem:[#allocation7 + $0x1ec] sm:$0xf]  ;;  %v8268_v50 = vld [vmem:[#allocation7 + $0x1f8] sm:$0xf0]  ;;  %v10416_v61 = vld [vmem:[#allocation7 + $0xb04] sm:$0xf] }
 0x2a1   :  { %6011 = vmatpush.bf16.msrb.mxu1 %v8667_v40  ;;  %v9226_v40 = vld [vmem:[#allocation7 + $0x968] sm:$0xf]  ;;  %5871 = vmatpush.bf16.msra.mxu3 %v8919_v60  ;;  %v8140_v60 = vld [vmem:[#allocation7 + $0xf8] sm:$0xf0] }
 0x2a2   :  { %v8143_v51 = vor.u32 %v10093_v5, %v8140_v60 }
 0x2a3   :  { %5998 = vmatmul.bf16.vlgmr.msrb.gmra.mxu0 %v11107_v33  ;;  %6025 = vmatpush.bf16.msrb.mxu2 %v8795_v43  ;;  %v9050_v43 = vld [vmem:[#allocation7 + $0x808] sm:$0xf] }
 0x2a4   :  { %6046 = vmatpush.bf16.msra.mxu0 %v9163_v7  ;;  %6012 = vmatmul.bf16.vlgmr.msrb.gmra.mxu1 %v11111_v44  ;;  %v10367_v7 = vld [vmem:[#allocation7 + $0x974] sm:$0xf0] }
 0x2a5   :  { %6060 = vmatpush.bf16.msra.mxu1 %v9291_v19  ;;  %5920 = vmatpush.bf16.msrb.mxu3 %v9543_v2  ;;  %v9527_v19 = vor.u32 %v10440_v3, %v9524_v4  ;;  %v9227_v34 = vor.u32 %v10367_v7, %v9226_v40  ;;  %v9338_v2 = vld [vmem:[#allocation7 + $0xa48] sm:$0xf]  ;;  %v8271_v40 = vor.u32 %v10125_v46, %v8268_v50 }
 0x2a6   :  { %6026 = vmatmul.bf16.vlgmr.msrb.gmra.mxu2 %v11128_v16  ;;  %5872 = vmatmul.bf16.vlgmr.msra.gmra.mxu3 %v11195_v10  ;;  %v8506_v46 = vld [vmem:[#allocation7 + $0x3c8] sm:$0xf] }
 0x2a7   :  { %6074 = vmatpush.bf16.msra.mxu2 %v9419_v56  ;;  %v10355_v56 = vld [vmem:[#allocation7 + $0x914] sm:$0xf0] }
 0x2a8   :  { %6047 = vmatpush.bf16.msra.mxu0 %v9147_v28  ;;  %v10363_v28 = vld [vmem:[#allocation7 + $0x954] sm:$0xf0]  ;;  %v9179_v4 = vor.u32 %v10355_v56, %v9178_v25  ;;  %v9431_v25 = vor.u32 %v10416_v61, %v9428_v35  ;;  %v10153_v56 = vld [vmem:[#allocation7 + $0x2cc] sm:$0xf]  ;;  %v8172_v61 = vld [vmem:[#allocation7 + $0x138] sm:$0xf0] }
 0x2a9   :  { %6061 = vmatpush.bf16.msra.mxu1 %v9275_v41  ;;  %5921 = vmatpush.bf16.msrb.mxu3 %v9527_v19  ;;  %v9511_v41 = vor.u32 %v10436_v32, %v9508_v48  ;;  %v9211_v55 = vor.u32 %v10363_v28, %v9210_v52  ;;  %v10121_v19 = vld [vmem:[#allocation7 + $0x1cc] sm:$0xf]  ;;  %v9322_v32 = vld [vmem:[#allocation7 + $0xa28] sm:$0xf] }
 0x2aa   :  { %v10141_v35 = vld [vmem:[#allocation7 + $0x26c] sm:$0xf] }
 0x2ab   :  { %6075 = vmatpush.bf16.msra.mxu2 %v9403_v57  ;;  %v9460_v57 = vld [vmem:[#allocation7 + $0xb50] sm:$0xf0] }
 0x2ac   :  { %6048 = vmatpush.bf16.msra.mxu0 %v9131_v37  ;;  %v10399_v37 = vld [vmem:[#allocation7 + $0xa74] sm:$0xf0]  ;;  %v9463_v48 = vor.u32 %v10424_v9, %v9460_v57  ;;  %v8204_v9 = vld [vmem:[#allocation7 + $0x178] sm:$0xf0]  ;;  %v10149_v57 = vld [vmem:[#allocation7 + $0x2ac] sm:$0xf] }
 0x2ad   :  { %6062 = vmatpush.bf16.msra.mxu1 %v9259_v23  ;;  %5922 = vmatpush.bf16.msrb.mxu3 %v9511_v41  ;;  %v9476_v23 = vld [vmem:[#allocation7 + $0xb70] sm:$0xf0]  ;;  %v9355_v63 = vor.u32 %v10399_v37, %v9354_v36  ;;  %v10117_v41 = vld [vmem:[#allocation7 + $0x1ac] sm:$0xf]  ;;  %v8522_v36 = vld [vmem:[#allocation7 + $0x3e8] sm:$0xf] }
 0x2ae   :  { %v9479_v3 = vor.u32 %v10428_v39, %v9476_v23  ;;  %v10081_v39 = vld [vmem:[#allocation7 + $0x8c] sm:$0xf]  ;;  %v8092_v23 = vld [vmem:[#allocation7 + $0x98] sm:$0xf0] }
 0x2af   :  { %6076 = vmatpush.bf16.msra.mxu2 %v9387_v59  ;;  %v9444_v59 = vld [vmem:[#allocation7 + $0xb30] sm:$0xf0]  ;;  %v8095_v60 = vor.u32 %v10081_v39, %v8092_v23  ;;  %v8458_v39 = vld [vmem:[#allocation7 + $0x368] sm:$0xf]  ;;  %v10175_v23 = vld [vmem:[#allocation7 + $0x374] sm:$0xf0] }
 0x2b0   :  { %6049 = vmatpush.bf16.msra.mxu0 %v9115_v15  ;;  %v10395_v15 = vld [vmem:[#allocation7 + $0xa54] sm:$0xf0]  ;;  %v9447_v27 = vor.u32 %v10420_v18, %v9444_v59  ;;  %v10105_v59 = vld [vmem:[#allocation7 + $0x14c] sm:$0xf] }
 0x2b1   :  { %6063 = vmatpush.bf16.msra.mxu1 %v9243_v42  ;;  %5923 = vmatpush.bf16.msrb.mxu3 %v9495_v6  ;;  %v9051_v42 = vor.u32 %v10323_v47, %v9050_v43  ;;  %v9339_v7 = vor.u32 %v10395_v15, %v9338_v2  ;;  %v8399_v43 = vor.u32 %v10157_v31, %v8396_v24  ;;  %v8220_v47 = vld [vmem:[#allocation7 + $0x198] sm:$0xf0]  ;;  %v10187_v2 = vld [vmem:[#allocation7 + $0x3d4] sm:$0xf0]  ;;  %v10077_v15 = vld [vmem:[#allocation7 + $0x6c] sm:$0xf] }
 0x2b2   :  { %v8044_v31 = vld [vmem:[#allocation7 + $0x38] sm:$0xf0] }
 0x2b3   :  { %6077 = vmatpush.bf16.msra.mxu2 %v9371_v29  ;;  %v8111_v29 = vor.u32 %v10085_v21, %v8108_v53  ;;  %v8348_v21 = vld [vmem:[#allocation7 + $0x298] sm:$0xf0] }
 0x2b4   :  { %6050 = vmatpush.bf16.msra.mxu0 %v9099_v14  ;;  %v8252_v14 = vld [vmem:[#allocation7 + $0x1d8] sm:$0xf0] }
 0x2b5   :  { %6064 = vmatpush.bf16.msra.mxu1 %v9227_v34  ;;  %v10391_v34 = vld [vmem:[#allocation7 + $0xa34] sm:$0xf0]  ;;  %5924 = vmatpush.bf16.msrb.mxu3 %v9479_v3  ;;  %v8255_v52 = vor.u32 %v10121_v19, %v8252_v14  ;;  %v8076_v3 = vld [vmem:[#allocation7 + $0x78] sm:$0xf0] }
 0x2b6   :  { %v9323_v28 = vor.u32 %v10391_v34, %v9322_v32  ;;  %v8079_v30 = vor.u32 %v10077_v15, %v8076_v3  ;;  %v10183_v14 = vld [vmem:[#allocation7 + $0x3b4] sm:$0xf0]  ;;  %v10073_v32 = vld [vmem:[#allocation7 + $0x4c] sm:$0xf]  ;;  %v8060_v34 = vld [vmem:[#allocation7 + $0x58] sm:$0xf0] }
 0x2b7   :  { %6078 = vmatpush.bf16.msra.mxu2 %v9355_v63  ;;  %v8380_v63 = vld [vmem:[#allocation7 + $0x2d8] sm:$0xf0]  ;;  %v8491_v53 = vor.u32 %v10183_v14, %v8490_v0 }
 0x2b8   :  { %6051 = vmatpush.bf16.msra.mxu0 %v9083_v58  ;;  %v8236_v58 = vld [vmem:[#allocation7 + $0x1b8] sm:$0xf0] }
 0x2b9   :  { %6065 = vmatpush.bf16.msra.mxu1 %v9211_v55  ;;  %v10387_v55 = vld [vmem:[#allocation7 + $0xa14] sm:$0xf0]  ;;  %5925 = vmatpush.bf16.msrb.mxu3 %v9463_v48  ;;  %v8239_v37 = vor.u32 %v10117_v41, %v8236_v58  ;;  %v11241_v48 = vpop.f32.mrf.mxu1  ;;  %v8063_v41 = vor.u32 %v10073_v32, %v8060_v34  ;;  %v8474_v58 = vld [vmem:[#allocation7 + $0x388] sm:$0xf]  ;;  %v8316_v15 = vld [vmem:[#allocation7 + $0x258] sm:$0xf0] }
 0x2ba   :  { %v9307_v6 = vor.u32 %v10387_v55, %v9306_v38  ;;  %v10179_v55 = vld [vmem:[#allocation7 + $0x394] sm:$0xf0]  ;;  %v10217_v32 = vld [vmem:[#allocation7 + $0x4cc] sm:$0xf]  ;;  %v8636_v34 = vld [vmem:[#allocation7 + $0x4d8] sm:$0xf0] }
 0x2bb   :  { %6079 = vmatpush.bf16.msra.mxu2 %v9339_v7  ;;  %v8507_v7 = vor.u32 %v10187_v2, %v8506_v46  ;;  %v10253_v46 = vld [vmem:[#allocation7 + $0x5ec] sm:$0xf] }
 0x2bc   :  { %6052 = vmatpush.bf16.msra.mxu0 %v9067_v1  ;;  %v10191_v1 = vld [vmem:[#allocation7 + $0x3f4] sm:$0xf0]  ;;  %v10137_v2 = vld [vmem:[#allocation7 + $0x24c] sm:$0xf] }
 0x2bd   :  { %6066 = vmatpush.bf16.msra.mxu1 %v9195_v20  ;;  %v10113_v20 = vld [vmem:[#allocation7 + $0x18c] sm:$0xf]  ;;  %5926 = vmatpush.bf16.msrb.mxu3 %v9447_v27  ;;  %v8523_v5 = vor.u32 %v10191_v1, %v8522_v36  ;;  %v8332_v36 = vld [vmem:[#allocation7 + $0x278] sm:$0xf0]  ;;  %v8319_v14 = vor.u32 %v10137_v2, %v8316_v15 }
 0x2be   :  { %v8223_v50 = vor.u32 %v10113_v20, %v8220_v47  ;;  %v10069_v27 = vld [vmem:[#allocation7 + $0x2c] sm:$0xf]  ;;  %v8028_v47 = vld [vmem:[#allocation7 + $0x18] sm:$0xf0] }
 0x2bf   :  { %6080 = vmatpush.bf16.msra.mxu2 %v9323_v28  ;;  %v10145_v28 = vld [vmem:[#allocation7 + $0x28c] sm:$0xf]  ;;  %v8047_v1 = vor.u32 %v10069_v27, %v8044_v31  ;;  %v10167_v27 = vld [vmem:[#allocation7 + $0x334] sm:$0xf0] }
 0x2c0   :  { %6053 = vmatpush.bf16.msra.mxu0 %v9051_v42  ;;  %v11236_v42 = vpop.f32.mrf.mxu0  ;;  %v8351_v24 = vor.u32 %v10145_v28, %v8348_v21  ;;  %v10133_v28 = vld [vmem:[#allocation7 + $0x22c] sm:$0xf]  ;;  %v8300_v21 = vld [vmem:[#allocation7 + $0x238] sm:$0xf0] }
 0x2c1   :  { %6067 = vmatpush.bf16.msra.mxu1 %v9179_v4  ;;  %v8383_v4 = vor.u32 %v10153_v56, %v8380_v63  ;;  %5927 = vmatpush.bf16.msrb.mxu3 %v9431_v25  ;;  %v10097_v25 = vld [vmem:[#allocation7 + $0x10c] sm:$0xf]  ;;  %v8156_v56 = vld [vmem:[#allocation7 + $0x118] sm:$0xf0]  ;;  %v8335_v63 = vor.u32 %v10141_v35, %v8332_v36  ;;  %v11250_v3 = vpop.f32.mrf.mxu1 }
 0x2c2   :  { %v8748_v35 = vld [vmem:[#allocation7 + $0x5b8] sm:$0xf0]  ;;  %v10129_v36 = vld [vmem:[#allocation7 + $0x20c] sm:$0xf] }
 0x2c3   :  { %9638 = vmatmul.msk.bf16.vlgmr.msra.gmra.mxu0 %vm10841_vm4, %v11135_v54  ;;  %6081 = vmatpush.bf16.msra.mxu2 %v9307_v6  ;;  %v8475_v6 = vor.u32 %v10179_v55, %v8474_v58  ;;  %v8426_v55 = vld [vmem:[#allocation7 + $0x328] sm:$0xf] }
 0x2c4   :  { %6102 = vmatpush.bf16.msrb.mxu0 %v8143_v51  ;;  %9641 = vmatmul.msk.bf16.vlgmr.msra.gmra.mxu1 %vm10841_vm4, %v11137_v8  ;;  %v10109_v51 = vld [vmem:[#allocation7 + $0x16c] sm:$0xf] }
 0x2c5   :  { %6116 = vmatpush.bf16.msrb.mxu1 %v8271_v40  ;;  %v8364_v40 = vld [vmem:[#allocation7 + $0x2b8] sm:$0xf0]  ;;  %5976 = vmatpush.bf16.msra.mxu3 %v8523_v5  ;;  %v8207_v19 = vor.u32 %v10109_v51, %v8204_v9  ;;  %v10221_v5 = vld [vmem:[#allocation7 + $0x4ec] sm:$0xf]  ;;  %v8459_v51 = vor.u32 %v10175_v23, %v8458_v39  ;;  %v5649_v0 = vpop.f32.mrf.mxu3 }
 0x2c6   :  { %9644 = vmatmul.msk.bf16.vlgmr.msra.gmra.mxu2 %vm10841_vm4, %v11151_v49  ;;  %9615 = vmatmul.msk.bf16.vlgmr.msrb.gmra.mxu3 %vm10841_vm4, %v11206_v62  ;;  %v8367_v18 = vor.u32 %v10149_v57, %v8364_v40  ;;  %v8159_v57 = vor.u32 %v10097_v25, %v8156_v56  ;;  %v10285_v39 = vld [vmem:[#allocation7 + $0x6ec] sm:$0xf]  ;;  %v8908_v23 = vld [vmem:[#allocation7 + $0x6f8] sm:$0xf0]  ;;  %v9034_v25 = vld [vmem:[#allocation7 + $0x7e8] sm:$0xf] }
 0x2c7   :  { %6130 = vmatpush.bf16.msrb.mxu2 %v8399_v43  ;;  %v10065_v43 = vld [vmem:[#allocation7 + $0xc] sm:$0xf]  ;;  %v8911_v15 = vor.u32 %v10285_v39, %v8908_v23  ;;  %v8860_v23 = vld [vmem:[#allocation7 + $0x698] sm:$0xf0] }
 0x2c8   :  { %6103 = vmatpush.bf16.msrb.mxu0 %v8127_v11  ;;  %v11243_v11 = vpop.f32.mrf.mxu2  ;;  %v8031_v9 = vor.u32 %v10065_v43, %v8028_v47  ;;  %v10163_v47 = vld [vmem:[#allocation7 + $0x314] sm:$0xf0]  ;;  %v10273_v39 = vld [vmem:[#allocation7 + $0x68c] sm:$0xf] }
 0x2c9   :  { %6117 = vmatpush.bf16.msrb.mxu1 %v8255_v52  ;;  %v8188_v52 = vld [vmem:[#allocation7 + $0x158] sm:$0xf0]  ;;  %5977 = vmatpush.bf16.msra.mxu3 %v8507_v7  ;;  %v8442_v7 = vld [vmem:[#allocation7 + $0x348] sm:$0xf] }
 0x2ca   :  { %v8191_v38 = vor.u32 %v10105_v59, %v8188_v52  ;;  %v5622_v59 = vadd.f32 %v11241_v48, %v11236_v42  ;;  %v8764_v52 = vld [vmem:[#allocation7 + $0x5d8] sm:$0xf0]  ;;  %v10245_v48 = vld [vmem:[#allocation7 + $0x5ac] sm:$0xf] }
 0x2cb   :  { %6131 = vmatpush.bf16.msrb.mxu2 %v8383_v4  ;;  %v8620_v42 = vld [vmem:[#allocation7 + $0x4b8] sm:$0xf0] }
 0x2cc   :  { %6104 = vmatpush.bf16.msrb.mxu0 %v8111_v29  ;;  %v10101_v29 = vld [vmem:[#allocation7 + $0x12c] sm:$0xf]  ;;  %v5636_v58 = vadd.f32 %v11243_v11, %v5622_v59  ;;  %v8284_v11 = vld [vmem:[#allocation7 + $0x218] sm:$0xf0] }
 0x2cd   :  { %6118 = vmatpush.bf16.msrb.mxu1 %v8239_v37  ;;  %v11248_v37 = vpop.f32.mrf.mxu0  ;;  %5978 = vmatpush.bf16.msra.mxu3 %v8491_v53  ;;  %v8175_v20 = vor.u32 %v10101_v29, %v8172_v61  ;;  %v10213_v29 = vld [vmem:[#allocation7 + $0x4ac] sm:$0xf] }
 0x2ce   :  { %v5650_v61 = vadd.f32 %v5649_v0, %v5636_v58  ;;  %v8623_v43 = vor.u32 %v10213_v29, %v8620_v42  ;;  %v10311_v29 = vld [vmem:[#allocation7 + $0x7b4] sm:$0xf0]  ;;  %v10201_v42 = vld [vmem:[#allocation7 + $0x44c] sm:$0xf] }
 0x2cf   :  { %6132 = vmatpush.bf16.msrb.mxu2 %v8367_v18  ;;  %v10249_v18 = vld [vmem:[#allocation7 + $0x5cc] sm:$0xf] }
 0x2d0   :  { %6105 = vmatpush.bf16.msrb.mxu0 %v8095_v60  ;;  %v8652_v60 = vld [vmem:[#allocation7 + $0x4f8] sm:$0xf0]  ;;  %v11252_v4 = vpop.f32.mrf.mxu2  ;;  %v8767_v31 = vor.u32 %v10249_v18, %v8764_v52  ;;  %v10315_v18 = vld [vmem:[#allocation7 + $0x7d4] sm:$0xf0] }
 0x2d1   :  { %6119 = vmatpush.bf16.msrb.mxu1 %v8223_v50  ;;  %v8780_v50 = vld [vmem:[#allocation7 + $0x5f8] sm:$0xf0]  ;;  %5979 = vmatpush.bf16.msra.mxu3 %v8475_v6  ;;  %v8655_v40 = vor.u32 %v10221_v5, %v8652_v60  ;;  %v5677_v6 = vpop.f32.mrf.mxu1  ;;  %v8287_v5 = vor.u32 %v10129_v36, %v8284_v11  ;;  %v10319_v60 = vld [vmem:[#allocation7 + $0x7f4] sm:$0xf0]  ;;  %v10233_v11 = vld [vmem:[#allocation7 + $0x54c] sm:$0xf] }
 0x2d2   :  { %v9035_v0 = vor.u32 %v10319_v60, %v9034_v25 }
 0x2d3   :  { %6133 = vmatpush.bf16.msrb.mxu2 %v8351_v24  ;;  %v8303_v24 = vor.u32 %v10133_v28, %v8300_v21  ;;  %v10237_v21 = vld [vmem:[#allocation7 + $0x56c] sm:$0xf] }
 0x2d4   :  { %6106 = vmatpush.bf16.msrb.mxu0 %v8079_v30  ;;  %v10171_v30 = vld [vmem:[#allocation7 + $0x354] sm:$0xf0] }
 0x2d5   :  { %6120 = vmatpush.bf16.msrb.mxu1 %v8207_v19  ;;  %v8783_v19 = vor.u32 %v10253_v46, %v8780_v50  ;;  %v5663_v53 = vpop.f32.mrf.mxu0  ;;  %5980 = vmatpush.bf16.msra.mxu3 %v8459_v51  ;;  %v10209_v46 = vld [vmem:[#allocation7 + $0x48c] sm:$0xf]  ;;  %v8604_v50 = vld [vmem:[#allocation7 + $0x498] sm:$0xf0] }
 0x2d6   :  { %v5664_v2 = vadd.f32 %v5663_v53, %v5650_v61  ;;  %v10241_v51 = vld [vmem:[#allocation7 + $0x58c] sm:$0xf]  ;;  %v8716_v53 = vld [vmem:[#allocation7 + $0x578] sm:$0xf0] }
 0x2d7   :  { %6134 = vmatpush.bf16.msrb.mxu2 %v8335_v63  ;;  %v8751_v63 = vor.u32 %v10245_v48, %v8748_v35  ;;  %v8572_v48 = vld [vmem:[#allocation7 + $0x458] sm:$0xf0] }
 0x2d8   :  { %6107 = vmatpush.bf16.msrb.mxu0 %v8063_v41  ;;  %v8443_v41 = vor.u32 %v10171_v30, %v8442_v7  ;;  %v5691_v56 = vpop.f32.mrf.mxu2  ;;  %v8892_v7 = vld [vmem:[#allocation7 + $0x6d8] sm:$0xf0]  ;;  %v5678_v52 = vadd.f32 %v5677_v6, %v5664_v2  ;;  %v10269_v2 = vld [vmem:[#allocation7 + $0x66c] sm:$0xf] }
 0x2d9   :  { %6121 = vmatpush.bf16.msrb.mxu1 %v8191_v38  ;;  %v8639_v38 = vor.u32 %v10217_v32, %v8636_v34  ;;  %v8700_v6 = vld [vmem:[#allocation7 + $0x558] sm:$0xf0] }
 0x2da   :  { %5981 = vmatpush.bf16.msra.mxu3 %v8443_v41  ;;  %v10277_v41 = vld [vmem:[#allocation7 + $0x6ac] sm:$0xf]  ;;  %v5692_v35 = vadd.f32 %v5691_v56, %v5678_v52  ;;  %v8703_v56 = vor.u32 %v10233_v11, %v8700_v6  ;;  %v9164_v52 = vld [vmem:[#allocation7 + $0x8f8] sm:$0xf0] }
 0x2db   :  { %6135 = vmatpush.bf16.msrb.mxu2 %v8319_v14  ;;  %v9018_v14 = vld [vmem:[#allocation7 + $0x7c8] sm:$0xf]  ;;  %v9148_v6 = vld [vmem:[#allocation7 + $0x8d8] sm:$0xf0] }
 0x2dc   :  { %6108 = vmatpush.bf16.msrb.mxu0 %v8047_v1  ;;  %v8427_v1 = vor.u32 %v10167_v27, %v8426_v55  ;;  %v9019_v58 = vor.u32 %v10315_v18, %v9018_v14  ;;  %v9002_v55 = vld [vmem:[#allocation7 + $0x7a8] sm:$0xf]  ;;  %v5679_v27 = vpop.f32.mrf.mxu1  ;;  %v8668_v18 = vld [vmem:[#allocation7 + $0x518] sm:$0xf0] }
 0x2dd   :  { %6122 = vmatpush.bf16.msrb.mxu1 %v8175_v20  ;;  %v8410_v20 = vld [vmem:[#allocation7 + $0x308] sm:$0xf]  ;;  %v5665_v32 = vpop.f32.mrf.mxu0 }
 0x2de   :  { %5982 = vmatpush.bf16.msra.mxu3 %v8427_v1 }
 0x2df   :  { %6136 = vmatpush.bf16.msrb.mxu2 %v8303_v24  ;;  %v8719_v24 = vor.u32 %v10237_v21, %v8716_v53  ;;  %v9292_v53 = vld [vmem:[#allocation7 + $0x9f8] sm:$0xf0] }
 0x2e0   :  { %6109 = vmatpush.bf16.msrb.mxu0 %v8031_v9  ;;  %v8732_v9 = vld [vmem:[#allocation7 + $0x598] sm:$0xf0]  ;;  %v5693_v1 = vpop.f32.mrf.mxu2 }
 0x2e1   :  { %6123 = vmatpush.bf16.msrb.mxu1 %v8159_v57  ;;  %v8411_v57 = vor.u32 %v10163_v47, %v8410_v20  ;;  %v8735_v34 = vor.u32 %v10241_v51, %v8732_v9  ;;  %v8575_v20 = vor.u32 %v10201_v42, %v8572_v48  ;;  %v8986_v47 = vld [vmem:[#allocation7 + $0x788] sm:$0xf]  ;;  %v10299_v48 = vld [vmem:[#allocation7 + $0x754] sm:$0xf0] }
 0x2e3   :  { %9652 = vmatmul.msk.bf16.vlgmr.msrb.gmra.mxu0 %vm10775_vm2, %v11090_v13  ;;  %v5651_v13 = vpop.f32.mrf.mxu3  ;;  %6137 = vmatpush.bf16.msrb.mxu2 %v8287_v5  ;;  %v8556_v5 = vld [vmem:[#allocation7 + $0x438] sm:$0xf0] }
 0x2e4   :  { %6158 = vmatpush.bf16.msra.mxu0 %v8655_v40  ;;  %9657 = vmatmul.msk.bf16.vlgmr.msrb.gmra.mxu1 %vm10775_vm2, %v11094_v22  ;;  %v5624_v22 = vadd.f32 %v11250_v3, %v11248_v37  ;;  %v10281_v40 = vld [vmem:[#allocation7 + $0x6cc] sm:$0xf]  ;;  %v8588_v3 = vld [vmem:[#allocation7 + $0x478] sm:$0xf0] }
 0x2e5   :  { %6172 = vmatpush.bf16.msra.mxu1 %v8783_v19  ;;  %v8607_v19 = vor.u32 %v10209_v46, %v8604_v50  ;;  %v10205_v37 = vld [vmem:[#allocation7 + $0x46c] sm:$0xf]  ;;  %v8895_v28 = vor.u32 %v10281_v40, %v8892_v7  ;;  %5983 = vmatpush.bf16.msra.mxu3 %v8411_v57  ;;  %v5719_v25 = vpop.f32.mrf.mxu0  ;;  %v8863_v46 = vor.u32 %v10273_v39, %v8860_v23  ;;  %v8970_v40 = vld [vmem:[#allocation7 + $0x768] sm:$0xf]  ;;  %v10303_v7 = vld [vmem:[#allocation7 + $0x774] sm:$0xf0] }
 0x2e6   :  { %v5638_v30 = vadd.f32 %v11252_v4, %v5624_v22  ;;  %v8876_v4 = vld [vmem:[#allocation7 + $0x6b8] sm:$0xf0]  ;;  %9662 = vmatmul.msk.bf16.vlgmr.msrb.gmra.mxu2 %vm10775_vm2, %v11121_v26  ;;  %v9003_v26 = vor.u32 %v10311_v29, %v9002_v55  ;;  %v10229_v50 = vld [vmem:[#allocation7 + $0x52c] sm:$0xf]  ;;  %v8971_v21 = vor.u32 %v10303_v7, %v8970_v40  ;;  %v11272_v29 = vld [vmem:[#allocation11] sm:$0xf] }
 0x2e7   :  { %6186 = vmatpush.bf16.msra.mxu2 %v8911_v15  ;;  %v8879_v36 = vor.u32 %v10277_v41, %v8876_v4  ;;  %v8684_v22 = vld [vmem:[#allocation7 + $0x538] sm:$0xf0]  ;;  %v10265_v41 = vld [vmem:[#allocation7 + $0x64c] sm:$0xf] }
 0x2e8   :  { %6159 = vmatpush.bf16.msra.mxu0 %v8639_v38  ;;  %v5652_v59 = vadd.f32 %v5651_v13, %v5638_v30  ;;  %v8591_v38 = vor.u32 %v10205_v37, %v8588_v3  ;;  %9635 = vmatmul.msk.bf16.vlgmr.msra.gmra.mxu3 %vm10775_vm2, %v11187_v45  ;;  %v10307_v13 = vld [vmem:[#allocation7 + $0x794] sm:$0xf0]  ;;  %v8844_v15 = vld [vmem:[#allocation7 + $0x678] sm:$0xf0]  ;;  %v10193_v30 = vld [vmem:[#allocation7 + $0x40c] sm:$0xf]  ;;  %v8687_v14 = vor.u32 %v10229_v50, %v8684_v22 }
 0x2e9   :  { %6173 = vmatpush.bf16.msra.mxu1 %v8767_v31  ;;  %6032 = vmatpush.bf16.msrb.mxu3 %v9035_v0  ;;  %v8987_v9 = vor.u32 %v10307_v13, %v8986_v47  ;;  %v5733_v0 = vpop.f32.mrf.mxu1  ;;  %v8847_v3 = vor.u32 %v10269_v2, %v8844_v15  ;;  %v8828_v4 = vld [vmem:[#allocation7 + $0x658] sm:$0xf0]  ;;  %v10341_v15 = vld [vmem:[#allocation7 + $0x8ac] sm:$0xf] }
 0x2ea   :  { %v5666_v61 = vadd.f32 %v5665_v32, %v5652_v59  ;;  %v8540_v32 = vld [vmem:[#allocation7 + $0x418] sm:$0xf0]  ;;  %v10349_v59 = vld [vmem:[#allocation7 + $0x8ec] sm:$0xf]  ;;  %v8831_v11 = vor.u32 %v10265_v41, %v8828_v4 }
 0x2eb   :  { %v5705_v31 = vpop.f32.mrf.mxu3  ;;  %6187 = vmatpush.bf16.msra.mxu2 %v8895_v28  ;;  %v10381_v28 = vld [vmem:[#allocation7 + $0x9ec] sm:$0xf]  ;;  %v9167_v42 = vor.u32 %v10349_v59, %v9164_v52  ;;  %v9276_v23 = vld [vmem:[#allocation7 + $0x9d8] sm:$0xf0]  ;;  %v9546_v59 = vld [vmem:[#allocation7 + $0xbe8] sm:$0xf] }
 0x2ec   :  { %6160 = vmatpush.bf16.msra.mxu0 %v8623_v43  ;;  %v5706_v43 = vadd.f32 %v5705_v31, %v5692_v35  ;;  %v5680_v60 = vadd.f32 %v5679_v27, %v5666_v61  ;;  %v8954_v27 = vld [vmem:[#allocation7 + $0x748] sm:$0xf]  ;;  %v5747_v31 = vpop.f32.mrf.mxu2  ;;  %v10345_v61 = vld [vmem:[#allocation7 + $0x8cc] sm:$0xf]  ;;  %v9260_v40 = vld [vmem:[#allocation7 + $0x9b8] sm:$0xf0] }
 0x2ed   :  { %6174 = vmatpush.bf16.msra.mxu1 %v8751_v63  ;;  %6033 = vmatpush.bf16.msrb.mxu3 %v9019_v58  ;;  %v10197_v63 = vld [vmem:[#allocation7 + $0x42c] sm:$0xf]  ;;  %v5721_v39 = vpop.f32.mrf.mxu0  ;;  %v9116_v41 = vld [vmem:[#allocation7 + $0x898] sm:$0xf0] }
 0x2ee   :  { %v5720_v51 = vadd.f32 %v5719_v25, %v5706_v43  ;;  %v8559_v57 = vor.u32 %v10197_v63, %v8556_v5  ;;  %v5694_v37 = vadd.f32 %v5693_v1, %v5680_v60  ;;  %v11274_v35 = vld [vmem:[#allocation13] sm:$0xf]  ;;  %v6272_v25 = vperm.slane %v11272_v29, 0  ;;  %v8938_v60 = vld [vmem:[#allocation7 + $0x728] sm:$0xf] }
 0x2ef   :  { %6188 = vmatpush.bf16.msra.mxu2 %v8879_v36  ;;  %v9295_v36 = vor.u32 %v10381_v28, %v9292_v53  ;;  %v10377_v1 = vld [vmem:[#allocation7 + $0x9cc] sm:$0xf]  ;;  %v6290_v63 = vperm.slane %v11274_v35, 0  ;;  %v9151_v5 = vor.u32 %v10345_v61, %v9148_v6  ;;  %v9530_v6 = vld [vmem:[#allocation7 + $0xbc8] sm:$0xf] }
 0x2f0   :  { %6161 = vmatpush.bf16.msra.mxu0 %v8607_v19  ;;  %v5734_v55 = vadd.f32 %v5733_v0, %v5720_v51  ;;  %v10261_v43 = vld [vmem:[#allocation7 + $0x62c] sm:$0xf]  ;;  %v9279_v22 = vor.u32 %v10377_v1, %v9276_v23  ;;  %v9132_v51 = vld [vmem:[#allocation7 + $0x8b8] sm:$0xf0]  ;;  %v10443_v1 = vld [vmem:[#allocation7 + $0xbd4] sm:$0xf0] }
 0x2f1   :  { %6175 = vmatpush.bf16.msra.mxu1 %v8735_v34  ;;  %6034 = vmatpush.bf16.msrb.mxu3 %v9003_v26  ;;  %v10225_v34 = vld [vmem:[#allocation7 + $0x50c] sm:$0xf]  ;;  %v8812_v26 = vld [vmem:[#allocation7 + $0x638] sm:$0xf0] }
 0x2f2   :  { %v5748_v47 = vadd.f32 %v5747_v31, %v5734_v55  ;;  %v8815_v2 = vor.u32 %v10261_v43, %v8812_v26  ;;  %v10257_v7 = vld [vmem:[#allocation7 + $0x60c] sm:$0xf]  ;;  %v10462_v55 = vld [vmem:[#allocation2] sm:$0xff] }
 0x2f3   :  { %v5707_v19 = vpop.f32.mrf.mxu3  ;;  %6189 = vmatpush.bf16.msra.mxu2 %v8863_v46  ;;  %v10295_v46 = vld [vmem:[#allocation7 + $0x734] sm:$0xf0]  ;;  %v10337_v53 = vld [vmem:[#allocation7 + $0x88c] sm:$0xf] }
 0x2f4   :  { %6162 = vmatpush.bf16.msra.mxu0 %v8591_v38  ;;  %v5708_v58 = vadd.f32 %v5707_v19, %v5694_v37  ;;  %v8543_v38 = vor.u32 %v10193_v30, %v8540_v32  ;;  %v8796_v30 = vld [vmem:[#allocation7 + $0x618] sm:$0xf0]  ;;  %v8939_v19 = vor.u32 %v10295_v46, %v8938_v60  ;;  %v10413_v32 = vld [vmem:[#allocation7 + $0xaec] sm:$0xf]  ;;  %v8922_v37 = vld [vmem:[#allocation7 + $0x708] sm:$0xf] }
 0x2f5   :  { %6176 = vmatpush.bf16.msra.mxu1 %v8719_v24  ;;  %6035 = vmatpush.bf16.msrb.mxu3 %v8987_v9  ;;  %v8671_v24 = vor.u32 %v10225_v34, %v8668_v18  ;;  %v10373_v9 = vld [vmem:[#allocation7 + $0x9ac] sm:$0xf]  ;;  %v9420_v34 = vld [vmem:[#allocation7 + $0xaf8] sm:$0xf0]  ;;  %v9135_v18 = vor.u32 %v10341_v15, %v9132_v51  ;;  %v8799_v28 = vor.u32 %v10257_v7, %v8796_v30 }
 0x2f6   :  { %v9263_v52 = vor.u32 %v10373_v9, %v9260_v40  ;;  %v9423_v4 = vor.u32 %v10413_v32, %v9420_v34  ;;  %v10333_v26 = vld [vmem:[#allocation7 + $0x86c] sm:$0xf]  ;;  %v9388_v46 = vld [vmem:[#allocation7 + $0xab8] sm:$0xf0]  ;;  %v10439_v9 = vld [vmem:[#allocation7 + $0xbb4] sm:$0xf0] }
 0x2f7   :  { %6190 = vmatpush.bf16.msra.mxu2 %v8847_v3  ;;  %v10291_v3 = vld [vmem:[#allocation7 + $0x714] sm:$0xf0]  ;;  %v10405_v60 = vld [vmem:[#allocation7 + $0xaac] sm:$0xf]  ;;  %v9084_v40 = vld [vmem:[#allocation7 + $0x858] sm:$0xf0] }
 0x2f8   :  { %6163 = vmatpush.bf16.msra.mxu0 %v8575_v20  ;;  %v5722_v20 = vadd.f32 %v5721_v39, %v5708_v58  ;;  %v10369_v58 = vld [vmem:[#allocation7 + $0x98c] sm:$0xf]  ;;  %v9212_v30 = vld [vmem:[#allocation7 + $0x958] sm:$0xf0] }
 0x2f9   :  { %6177 = vmatpush.bf16.msra.mxu1 %v8703_v56  ;;  %6036 = vmatpush.bf16.msrb.mxu3 %v8971_v21  ;;  %v8955_v56 = vor.u32 %v10299_v48, %v8954_v27  ;;  %v10447_v21 = vld [vmem:[#allocation7 + $0xbf4] sm:$0xf0]  ;;  %v9404_v48 = vld [vmem:[#allocation7 + $0xad8] sm:$0xf0]  ;;  %v10361_v7 = vld [vmem:[#allocation7 + $0x94c] sm:$0xf] }
 0x2fa   :  { %v9372_v32 = vld [vmem:[#allocation7 + $0xa98] sm:$0xf0] }
 0x2fb   :  { %v5761_v13 = vpop.f32.mrf.mxu3  ;;  %6191 = vmatpush.bf16.msra.mxu2 %v8831_v11  ;;  %v9119_v11 = vor.u32 %v10337_v53, %v9116_v41  ;;  %v10397_v53 = vld [vmem:[#allocation7 + $0xa6c] sm:$0xf]  ;;  %v9356_v41 = vld [vmem:[#allocation7 + $0xa78] sm:$0xf0] }
 0x2fc   :  { %6164 = vmatpush.bf16.msra.mxu0 %v8559_v57  ;;  %v5762_v50 = vadd.f32 %v5761_v13, %v5748_v47  ;;  %v5735_v57 = vpop.f32.mrf.mxu1  ;;  %v9228_v13 = vld [vmem:[#allocation7 + $0x978] sm:$0xf0] }
 0x2fd   :  { %6178 = vmatpush.bf16.msra.mxu1 %v8687_v14  ;;  %6037 = vmatpush.bf16.msrb.mxu3 %v8955_v56  ;;  %v5736_v14 = vadd.f32 %v5735_v57, %v5722_v20  ;;  %v9100_v20 = vld [vmem:[#allocation7 + $0x878] sm:$0xf0]  ;;  %v10365_v56 = vld [vmem:[#allocation7 + $0x96c] sm:$0xf] }
 0x2fe   :  { %v6280_v0 = vmul.f32 %v6272_v25, %v5762_v50  ;;  %v9531_v50 = vor.u32 %v10443_v1, %v9530_v6  ;;  %v9231_v51 = vor.u32 %v10365_v56, %v9228_v13  ;;  %v10329_v57 = vld [vmem:[#allocation7 + $0x84c] sm:$0xf]  ;;  %v9450_v56 = vld [vmem:[#allocation7 + $0xb28] sm:$0xf]  ;;  %v10423_v13 = vld [vmem:[#allocation7 + $0xb34] sm:$0xf0] }
 0x2ff   :  { %6192 = vmatpush.bf16.msra.mxu2 %v8815_v2  ;;  %v9514_v2 = vld [vmem:[#allocation7 + $0xba8] sm:$0xf]  ;;  %v9087_v34 = vor.u32 %v10329_v57, %v9084_v40 }
 0x300   :  { %6165 = vmatpush.bf16.msra.mxu0 %v8543_v38  ;;  %v9244_v38 = vld [vmem:[#allocation7 + $0x998] sm:$0xf0] }
 0x301   :  { %6179 = vmatpush.bf16.msra.mxu1 %v8671_v24  ;;  %6038 = vmatpush.bf16.msrb.mxu3 %v8939_v19  ;;  %v8923_v24 = vor.u32 %v10291_v3, %v8922_v37  ;;  %v9247_v43 = vor.u32 %v10369_v58, %v9244_v38  ;;  %v9215_v3 = vor.u32 %v10361_v7, %v9212_v30  ;;  %v9482_v58 = vld [vmem:[#allocation7 + $0xb68] sm:$0xf]  ;;  %v5775_v7 = vpop.f32.mrf.mxu0  ;;  %v10181_v30 = vld [vmem:[#allocation7 + $0x3ac] sm:$0xf] }
 0x303   :  { %6166 = vmatmul.bf16.vlgmr.msra.gmra.mxu0 %v11107_v33  ;;  %v6298_v33 = vadd.f32 %v6290_v63, %v6280_v0  ;;  %v5763_v61 = vpop.f32.mrf.mxu3  ;;  %6193 = vmatpush.bf16.msra.mxu2 %v8799_v28  ;;  %v10463_v0 = vld [vmem:[#allocation2 + $0x20] sm:$0xff]  ;;  %v10357_v28 = vld [vmem:[#allocation7 + $0x92c] sm:$0xf] }
 0x304   :  { %6214 = vmatpush.bf16.msrb.mxu0 %v9167_v42  ;;  %6180 = vmatmul.bf16.vlgmr.msra.gmra.mxu1 %v11111_v44  ;;  %v5749_v44 = vpop.f32.mrf.mxu2  ;;  %v10409_v42 = vld [vmem:[#allocation7 + $0xacc] sm:$0xf] }
 0x305   :  { %6228 = vmatpush.bf16.msrb.mxu1 %v9295_v36  ;;  %v6306_v27 = vadd.f32 %v10462_v55, %v6298_v33  ;;  %v5750_v31 = vadd.f32 %v5749_v44, %v5736_v14  ;;  %v9547_v36 = vor.u32 %v10447_v21, %v9546_v59  ;;  %v9407_v47 = vor.u32 %v10409_v42, %v9404_v48  ;;  %v10401_v14 = vld [vmem:[#allocation7 + $0xa8c] sm:$0xf]  ;;  %v9068_v33 = vld [vmem:[#allocation7 + $0x838] sm:$0xf0]  ;;  %v10431_v55 = vld [vmem:[#allocation7 + $0xb74] sm:$0xf0] }
 0x306   :  { %6039 = vmatpush.bf16.msrb.mxu3 %v8923_v24  ;;  %6194 = vmatmul.bf16.vlgmr.msra.gmra.mxu2 %v11128_v16  ;;  %v10435_v16 = vld [vmem:[#allocation7 + $0xb94] sm:$0xf0]  ;;  %v10325_v59 = vld [vmem:[#allocation7 + $0x82c] sm:$0xf]  ;;  %v9196_v21 = vld [vmem:[#allocation7 + $0x938] sm:$0xf0]  ;;  %v9359_v24 = vor.u32 %v10397_v53, %v9356_v41 }
 0x307   :  { %v6314_v39 = vmax.f32 %v6306_v27, 0.0  ;;  %v5764_v23 = vadd.f32 %v5763_v61, %v5750_v31  ;;  %6242 = vmatpush.bf16.msrb.mxu2 %v9423_v4  ;;  %v9071_v4 = vor.u32 %v10325_v59, %v9068_v33  ;;  %v9199_v38 = vor.u32 %v10357_v28, %v9196_v21  ;;  %v10321_v27 = vld [vmem:[#allocation7 + $0x80c] sm:$0xf]  ;;  %v9052_v31 = vld [vmem:[#allocation7 + $0x818] sm:$0xf0] }
 0x308   :  { %6215 = vmatpush.bf16.msrb.mxu0 %v9151_v5  ;;  %v10353_v42 = vld [vmem:[#allocation7 + $0x90c] sm:$0xf]  ;;  %v9180_v48 = vld [vmem:[#allocation7 + $0x918] sm:$0xf0]  ;;  %v9055_v6 = vor.u32 %v10321_v27, %v9052_v31 }
 0x309   :  { %6229 = vmatpush.bf16.msrb.mxu1 %v9279_v22  ;;  %6322 = vst [vmem:[#allocation14] sm:$0xff] %v6314_v39  ;;  %v6284_v5 = vmul.f32 %v6272_v25, %v5764_v23  ;;  %v9103_v22 = vor.u32 %v10333_v26, %v9100_v20  ;;  %6040 = vmatmul.bf16.vlgmr.msrb.gmra.mxu3 %v11195_v10  ;;  %v10393_v61 = vld [vmem:[#allocation7 + $0xa4c] sm:$0xf]  ;;  %v9466_v39 = vld [vmem:[#allocation7 + $0xb48] sm:$0xf] }
 0x30a   :  { %6088 = vmatpush.bf16.msra.mxu3 %v9547_v36  ;;  %v9391_v25 = vor.u32 %v10405_v60, %v9388_v46  ;;  %v9340_v36 = vld [vmem:[#allocation7 + $0xa58] sm:$0xf0]  ;;  %v9183_v1 = vor.u32 %v10353_v42, %v9180_v48  ;;  %v10427_v23 = vld [vmem:[#allocation7 + $0xb54] sm:$0xf0]  ;;  %v10389_v26 = vld [vmem:[#allocation7 + $0xa2c] sm:$0xf] }
 0x30b   :  { %v6302_v15 = vadd.f32 %v6290_v63, %v6284_v5  ;;  %6243 = vmatpush.bf16.msrb.mxu2 %v9407_v47  ;;  %v9515_v63 = vor.u32 %v10439_v9, %v9514_v2  ;;  %v9324_v20 = vld [vmem:[#allocation7 + $0xa38] sm:$0xf0]  ;;  %v9467_v47 = vor.u32 %v10427_v23, %v9466_v39  ;;  %v10385_v60 = vld [vmem:[#allocation7 + $0xa0c] sm:$0xf]  ;;  %v10419_v2 = vld [vmem:[#allocation7 + $0xb14] sm:$0xf0]  ;;  %v5817_v59 = vpop.f32.mrf.mxu3 }
 0x30c   :  { %6216 = vmatpush.bf16.msrb.mxu0 %v9135_v18  ;;  %v9498_v18 = vld [vmem:[#allocation7 + $0xb88] sm:$0xf]  ;;  %v9327_v5 = vor.u32 %v10389_v26, %v9324_v20  ;;  %v9308_v46 = vld [vmem:[#allocation7 + $0xa18] sm:$0xf0]  ;;  %v10161_v42 = vld [vmem:[#allocation7 + $0x30c] sm:$0xf] }
 0x30d   :  { %6230 = vmatpush.bf16.msrb.mxu1 %v9263_v52  ;;  %v6310_v19 = vadd.f32 %v10463_v0, %v6302_v15  ;;  %v9375_v52 = vor.u32 %v10401_v14, %v9372_v32  ;;  %v9499_v44 = vor.u32 %v10435_v16, %v9498_v18  ;;  %v9311_v15 = vor.u32 %v10385_v60, %v9308_v46  ;;  %v8524_v9 = vld [vmem:[#allocation7 + $0x3f8] sm:$0xf0]  ;;  %v10177_v32 = vld [vmem:[#allocation7 + $0x38c] sm:$0xf]  ;;  %v5777_v18 = vpop.f32.mrf.mxu0 }
 0x30e   :  { %6089 = vmatpush.bf16.msra.mxu3 %v9531_v50  ;;  %v9451_v50 = vor.u32 %v10423_v13, %v9450_v56  ;;  %v8492_v0 = vld [vmem:[#allocation7 + $0x3b8] sm:$0xf0]  ;;  %v10313_v20 = vld [vmem:[#allocation7 + $0x7cc] sm:$0xf] }
 0x30f   :  { %v6318_v37 = vmax.f32 %v6310_v19, 0.0  ;;  %6244 = vmatpush.bf16.msrb.mxu2 %v9391_v25  ;;  %v10185_v25 = vld [vmem:[#allocation7 + $0x3cc] sm:$0xf]  ;;  %v5789_v19 = vpop.f32.mrf.mxu1  ;;  %v8495_v14 = vor.u32 %v10181_v30, %v8492_v0  ;;  %v8444_v28 = vld [vmem:[#allocation7 + $0x358] sm:$0xf0] }
 0x310   :  { %6217 = vmatpush.bf16.msrb.mxu0 %v9119_v11  ;;  %v9483_v11 = vor.u32 %v10431_v55, %v9482_v58  ;;  %v5790_v21 = vadd.f32 %v5789_v19, %v5775_v7  ;;  %v10165_v58 = vld [vmem:[#allocation7 + $0x32c] sm:$0xf]  ;;  %v8412_v48 = vld [vmem:[#allocation7 + $0x318] sm:$0xf0] }
 0x311   :  { %6231 = vmatpush.bf16.msrb.mxu1 %v9247_v43  ;;  %6326 = vst [vmem:[#allocation14 + $0x20] sm:$0xff] %v6318_v37  ;;  %v9343_v43 = vor.u32 %v10393_v61, %v9340_v36  ;;  %v10173_v37 = vld [vmem:[#allocation7 + $0x36c] sm:$0xf]  ;;  %v9036_v36 = vld [vmem:[#allocation7 + $0x7f8] sm:$0xf0]  ;;  %v8415_v39 = vor.u32 %v10161_v42, %v8412_v48 }
 0x312   :  { %6090 = vmatpush.bf16.msra.mxu3 %v9515_v63  ;;  %v8476_v63 = vld [vmem:[#allocation7 + $0x398] sm:$0xf0]  ;;  %v10317_v61 = vld [vmem:[#allocation7 + $0x7ec] sm:$0xf] }
 0x313   :  { %6245 = vmatpush.bf16.msrb.mxu2 %v9375_v52  ;;  %v8479_v16 = vor.u32 %v10177_v32, %v8476_v63  ;;  %v10169_v52 = vld [vmem:[#allocation7 + $0x34c] sm:$0xf]  ;;  %v5819_v31 = vpop.f32.mrf.mxu3  ;;  %v8972_v32 = vld [vmem:[#allocation7 + $0x778] sm:$0xf0] }
 0x314   :  { %6218 = vmatpush.bf16.msrb.mxu0 %v9103_v22  ;;  %v9434_v22 = vld [vmem:[#allocation7 + $0xb08] sm:$0xf]  ;;  %v10445_v42 = vld [vmem:[#allocation7 + $0xbec] sm:$0xf]  ;;  %v9548_v48 = vld [vmem:[#allocation7 + $0xbf8] sm:$0xf0] }
 0x315   :  { %6232 = vmatpush.bf16.msrb.mxu1 %v9231_v51  ;;  %v10189_v51 = vld [vmem:[#allocation7 + $0x3ec] sm:$0xf]  ;;  %v9435_v57 = vor.u32 %v10419_v2, %v9434_v22  ;;  %v5831_v41 = vpop.f32.mrf.mxu0  ;;  %v9004_v22 = vld [vmem:[#allocation7 + $0x7b8] sm:$0xf0] }
 0x316   :  { %6091 = vmatpush.bf16.msra.mxu3 %v9499_v44  ;;  %v8527_v40 = vor.u32 %v10189_v51, %v8524_v9  ;;  %v8447_v44 = vor.u32 %v10169_v52, %v8444_v28 }
 0x317   :  { %6246 = vmatpush.bf16.msrb.mxu2 %v9359_v24 }
 0x318   :  { %6219 = vmatpush.bf16.msrb.mxu0 %v9087_v34  ;;  %v5803_v34 = vpop.f32.mrf.mxu2 }
 0x319   :  { %6233 = vmatpush.bf16.msrb.mxu1 %v9215_v3  ;;  %v8460_v3 = vld [vmem:[#allocation7 + $0x378] sm:$0xf0] }
 0x31a   :  { %6092 = vmatpush.bf16.msra.mxu3 %v9483_v11  ;;  %v8463_v33 = vor.u32 %v10173_v37, %v8460_v3  ;;  %v8956_v37 = vld [vmem:[#allocation7 + $0x758] sm:$0xf0] }
 0x31b   :  { %6247 = vmatpush.bf16.msrb.mxu2 %v9343_v43  ;;  %v9039_v43 = vor.u32 %v10317_v61, %v9036_v36  ;;  %v10464_v36 = vld [vmem:[#allocation2 + $0x8] sm:$0xff] }
 0x31c   :  { %6220 = vmatpush.bf16.msrb.mxu0 %v9071_v4  ;;  %v5804_v4 = vadd.f32 %v5803_v34, %v5790_v21  ;;  %v10293_v21 = vld [vmem:[#allocation7 + $0x72c] sm:$0xf] }
 0x31d   :  { %6234 = vmatpush.bf16.msrb.mxu1 %v9199_v38  ;;  %v8428_v38 = vld [vmem:[#allocation7 + $0x338] sm:$0xf0]  ;;  %v5833_v26 = vpop.f32.mrf.mxu0 }
 0x31e   :  { %6093 = vmatpush.bf16.msra.mxu3 %v9467_v47  ;;  %v5818_v55 = vadd.f32 %v5817_v59, %v5804_v4  ;;  %v8431_v24 = vor.u32 %v10165_v58, %v8428_v38  ;;  %v9020_v47 = vld [vmem:[#allocation7 + $0x7d8] sm:$0xf0] }
 0x31f   :  { %6248 = vmatpush.bf16.msrb.mxu2 %v9327_v5  ;;  %v9023_v60 = vor.u32 %v10313_v20, %v9020_v47  ;;  %v10441_v20 = vld [vmem:[#allocation7 + $0xbcc] sm:$0xf]  ;;  %v9532_v47 = vld [vmem:[#allocation7 + $0xbd8] sm:$0xf0] }
 0x320   :  { %6221 = vmatpush.bf16.msrb.mxu0 %v9055_v6  ;;  %v5805_v53 = vpop.f32.mrf.mxu2  ;;  %v5832_v6 = vadd.f32 %v5831_v41, %v5818_v55 }
 0x321   :  { %6235 = vmatpush.bf16.msrb.mxu1 %v9183_v1 }
 0x322   :  { %6094 = vmatpush.bf16.msra.mxu3 %v9451_v50  ;;  %v10309_v50 = vld [vmem:[#allocation7 + $0x7ac] sm:$0xf] }
 0x323   :  { %9670 = vmatmul.msk.bf16.vlgmr.msrb.gmra.mxu0 %vm10841_vm4, %v11135_v54  ;;  %6249 = vmatpush.bf16.msrb.mxu2 %v9311_v15  ;;  %v8508_v54 = vld [vmem:[#allocation7 + $0x3d8] sm:$0xf0]  ;;  %v9007_v9 = vor.u32 %v10309_v50, %v9004_v22  ;;  %v10465_v50 = vld [vmem:[#allocation2 + $0x28] sm:$0xff] }
 0x324   :  { %9673 = vmatmul.msk.bf16.vlgmr.msrb.gmra.mxu1 %vm10841_vm4, %v11137_v8  ;;  %v8511_v8 = vor.u32 %v10185_v25, %v8508_v54  ;;  %v10305_v25 = vld [vmem:[#allocation7 + $0x78c] sm:$0xf]  ;;  %v8988_v54 = vld [vmem:[#allocation7 + $0x798] sm:$0xf0] }
 0x325   :  { %v8991_v30 = vor.u32 %v10305_v25, %v8988_v54  ;;  %v9484_v25 = vld [vmem:[#allocation7 + $0xb78] sm:$0xf0] }
 0x326   :  { %6095 = vmatpush.bf16.msra.mxu3 %v9435_v57  ;;  %9676 = vmatmul.msk.bf16.vlgmr.msrb.gmra.mxu2 %vm10841_vm4, %v11151_v49  ;;  %v5791_v49 = vpop.f32.mrf.mxu1 }
 0x327   :  { %v5792_v11 = vadd.f32 %v5791_v49, %v5777_v18 }
 0x328   :  { %v5859_v1 = vpop.f32.mrf.mxu2 }
 0x329   :  { %9647 = vmatmul.msk.bf16.vlgmr.msra.gmra.mxu3 %vm10841_vm4, %v11206_v62  ;;  %v5806_v23 = vadd.f32 %v5805_v53, %v5792_v11  ;;  %v5873_v5 = vpop.f32.mrf.mxu3  ;;  %v8940_v53 = vld [vmem:[#allocation7 + $0x738] sm:$0xf0] }
 0x32a   :  { %6144 = vmatpush.bf16.msrb.mxu3 %v8527_v40  ;;  %v5887_v40 = vpop.f32.mrf.mxu0  ;;  %v8943_v38 = vor.u32 %v10293_v21, %v8940_v53 }
 0x32b   :  { %v5820_v56 = vadd.f32 %v5819_v31, %v5806_v23  ;;  %v8924_v31 = vld [vmem:[#allocation7 + $0x718] sm:$0xf0]  ;;  %v9551_v23 = vor.u32 %v10445_v42, %v9548_v48 }
 0x32d   :  { %v5834_v2 = vadd.f32 %v5833_v26, %v5820_v56 }
 0x32e   :  { %6145 = vmatpush.bf16.msrb.mxu3 %v8511_v8  ;;  %v5845_v27 = vpop.f32.mrf.mxu1 }
 0x32f   :  { %v5846_v13 = vadd.f32 %v5845_v27, %v5832_v6  ;;  %v10289_v27 = vld [vmem:[#allocation7 + $0x70c] sm:$0xf] }
 0x330   :  { %v5861_v57 = vpop.f32.mrf.mxu2 }
 0x331   :  { %v5860_v15 = vadd.f32 %v5859_v1, %v5846_v13  ;;  %v5875_v19 = vpop.f32.mrf.mxu3  ;;  %v8927_v1 = vor.u32 %v10289_v27, %v8924_v31  ;;  %v9535_v13 = vor.u32 %v10441_v20, %v9532_v47 }
 0x332   :  { %6146 = vmatpush.bf16.msrb.mxu3 %v8495_v14  ;;  %v10301_v14 = vld [vmem:[#allocation7 + $0x76c] sm:$0xf]  ;;  %v5889_v3 = vpop.f32.mrf.mxu0 }
 0x333   :  { %v5874_v51 = vadd.f32 %v5873_v5, %v5860_v15  ;;  %v8975_v12 = vor.u32 %v10301_v14, %v8972_v32  ;;  %v10417_v14 = vld [vmem:[#allocation7 + $0xb0c] sm:$0xf]  ;;  %v9436_v32 = vld [vmem:[#allocation7 + $0xb18] sm:$0xf0] }
 0x335   :  { %v5888_v8 = vadd.f32 %v5887_v40, %v5874_v51  ;;  %v10433_v51 = vld [vmem:[#allocation7 + $0xb8c] sm:$0xf] }
 0x336   :  { %6147 = vmatpush.bf16.msrb.mxu3 %v8479_v16  ;;  %v5847_v46 = vpop.f32.mrf.mxu1  ;;  %v10297_v16 = vld [vmem:[#allocation7 + $0x74c] sm:$0xf] }
 0x337   :  { %v5848_v7 = vadd.f32 %v5847_v46, %v5834_v2  ;;  %v8959_v52 = vor.u32 %v10297_v16, %v8956_v37  ;;  %v9516_v46 = vld [vmem:[#allocation7 + $0xbb8] sm:$0xf0]  ;;  %v10429_v40 = vld [vmem:[#allocation7 + $0xb6c] sm:$0xf] }
 0x338   :  { %v5915_v18 = vpop.f32.mrf.mxu2  ;;  %v9487_v54 = vor.u32 %v10429_v40, %v9484_v25 }
 0x339   :  { %v5862_v63 = vadd.f32 %v5861_v57, %v5848_v7  ;;  %v10425_v7 = vld [vmem:[#allocation7 + $0xb4c] sm:$0xf] }
 0x33a   :  { %6148 = vmatpush.bf16.msrb.mxu3 %v8463_v33  ;;  %v6273_v33 = vperm.slane %v11272_v29, 1 }
 0x33b   :  { %v5876_v34 = vadd.f32 %v5875_v19, %v5862_v63  ;;  %v9439_v63 = vor.u32 %v10417_v14, %v9436_v32 }
 0x33d   :  { %v5890_v59 = vadd.f32 %v5889_v3, %v5876_v34  ;;  %v5943_v34 = vpop.f32.mrf.mxu0 }
 0x33e   :  { %6149 = vmatpush.bf16.msrb.mxu3 %v8447_v44  ;;  %v5901_v0 = vpop.f32.mrf.mxu1  ;;  %v6291_v44 = vperm.slane %v11274_v35, 1 }
 0x340   :  { %v5917_v61 = vpop.f32.mrf.mxu2 }
 0x342   :  { %6150 = vmatpush.bf16.msrb.mxu3 %v8431_v24 }
 0x346   :  { %6151 = vmatpush.bf16.msrb.mxu3 %v8415_v39  ;;  %v5903_v4 = vpop.f32.mrf.mxu1 }
 0x347   :  { %v5904_v55 = vadd.f32 %v5903_v4, %v5890_v59 }
 0x349   :  { %9667 = vmatmul.msk.bf16.vlgmr.msrb.gmra.mxu3 %vm10775_vm2, %v11187_v45  ;;  %v5902_v45 = vadd.f32 %v5901_v0, %v5888_v8  ;;  %v5929_v28 = vpop.f32.mrf.mxu3  ;;  %v5918_v6 = vadd.f32 %v5917_v61, %v5904_v55  ;;  %v9468_v8 = vld [vmem:[#allocation7 + $0xb58] sm:$0xf0]  ;;  %v10421_v0 = vld [vmem:[#allocation7 + $0xb2c] sm:$0xf] }
 0x34a   :  { %6200 = vmatpush.bf16.msra.mxu3 %v9039_v43 }
 0x34b   :  { %v5916_v49 = vadd.f32 %v5915_v18, %v5902_v45  ;;  %v5971_v45 = vpop.f32.mrf.mxu2  ;;  %v5945_v18 = vpop.f32.mrf.mxu0 }
 0x34d   :  { %v5930_v41 = vadd.f32 %v5929_v28, %v5916_v49 }
 0x34e   :  { %6201 = vmatpush.bf16.msra.mxu3 %v9023_v60  ;;  %v10437_v60 = vld [vmem:[#allocation7 + $0xbac] sm:$0xf] }
 0x34f   :  { %v6281_v58 = vmul.f32 %v6273_v33, %v5930_v41  ;;  %v9519_v2 = vor.u32 %v10437_v60, %v9516_v46  ;;  %v6292_v60 = vperm.slane %v11274_v35, 2 }
 0x351   :  { %v6299_v24 = vadd.f32 %v6291_v44, %v6281_v58  ;;  %v5931_v39 = vpop.f32.mrf.mxu3 }
 0x352   :  { %6202 = vmatpush.bf16.msra.mxu3 %v9007_v9  ;;  %v5932_v26 = vadd.f32 %v5931_v39, %v5918_v6  ;;  %v9500_v9 = vld [vmem:[#allocation7 + $0xb98] sm:$0xf0] }
 0x353   :  { %v6307_v11 = vadd.f32 %v10464_v36, %v6299_v24  ;;  %v9503_v57 = vor.u32 %v10433_v51, %v9500_v9  ;;  %v5973_v59 = vpop.f32.mrf.mxu2  ;;  %v5999_v49 = vpop.f32.mrf.mxu0  ;;  %v10466_v51 = vld [vmem:[#allocation2 + $0x10] sm:$0xff] }
 0x354   :  { %v6285_v56 = vmul.f32 %v6273_v33, %v5932_v26 }
 0x355   :  { %v6315_v43 = vmax.f32 %v6307_v11, 0.0 }
 0x356   :  { %6203 = vmatpush.bf16.msra.mxu3 %v8991_v30  ;;  %v6303_v5 = vadd.f32 %v6291_v44, %v6285_v56  ;;  %v9471_v30 = vor.u32 %v10425_v7, %v9468_v8  ;;  %v6274_v56 = vperm.slane %v11272_v29, 2 }
 0x357   :  { %6323 = vst [vmem:[#allocation14 + $0x8] sm:$0xff] %v6315_v43 }
 0x358   :  { %v6311_v22 = vadd.f32 %v10465_v50, %v6303_v5 }
 0x35a   :  { %6204 = vmatpush.bf16.msra.mxu3 %v8975_v12  ;;  %v6319_v15 = vmax.f32 %v6311_v22, 0.0  ;;  %v5957_v12 = vpop.f32.mrf.mxu1 }
 0x35b   :  { %v5958_v3 = vadd.f32 %v5957_v12, %v5943_v34  ;;  %v6027_v44 = vpop.f32.mrf.mxu2  ;;  %v6001_v58 = vpop.f32.mrf.mxu0 }
 0x35c   :  { %6327 = vst [vmem:[#allocation14 + $0x28] sm:$0xff] %v6319_v15 }
 0x35d   :  { %v5972_v33 = vadd.f32 %v5971_v45, %v5958_v3 }
 0x35e   :  { %6205 = vmatpush.bf16.msra.mxu3 %v8959_v52 }
 0x362   :  { %6206 = vmatpush.bf16.msra.mxu3 %v8943_v38  ;;  %v5959_v37 = vpop.f32.mrf.mxu1 }
 0x363   :  { %v5960_v53 = vadd.f32 %v5959_v37, %v5945_v18  ;;  %v6029_v42 = vpop.f32.mrf.mxu2  ;;  %v6055_v48 = vpop.f32.mrf.mxu0 }
 0x365   :  { %v5974_v4 = vadd.f32 %v5973_v59, %v5960_v53 }
 0x366   :  { %6207 = vmatpush.bf16.msra.mxu3 %v8927_v1 }
 0x369   :  { %6208 = vmatmul.bf16.vlgmr.msra.gmra.mxu3 %v11195_v10  ;;  %v9452_v10 = vld [vmem:[#allocation7 + $0xb38] sm:$0xf0] }
 0x36a   :  { %6256 = vmatpush.bf16.msrb.mxu3 %v9551_v23  ;;  %v9455_v19 = vor.u32 %v10421_v0, %v9452_v10  ;;  %v6013_v28 = vpop.f32.mrf.mxu1 }
 0x36b   :  { %v5985_v16 = vpop.f32.mrf.mxu3  ;;  %v6083_v43 = vpop.f32.mrf.mxu2 }
 0x36c   :  { %v5986_v52 = vadd.f32 %v5985_v16, %v5972_v33  ;;  %v6057_v26 = vpop.f32.mrf.mxu0 }
 0x36e   :  { %6257 = vmatpush.bf16.msrb.mxu3 %v9535_v13  ;;  %v6000_v41 = vadd.f32 %v5999_v49, %v5986_v52 }
 0x370   :  { %v6014_v55 = vadd.f32 %v6013_v28, %v6000_v41 }
 0x372   :  { %6258 = vmatpush.bf16.msrb.mxu3 %v9519_v2  ;;  %v6028_v31 = vadd.f32 %v6027_v44, %v6014_v55 }
 0x373   :  { %v5987_v21 = vpop.f32.mrf.mxu3  ;;  %v6085_v15 = vpop.f32.mrf.mxu2 }
 0x374   :  { %v5988_v38 = vadd.f32 %v5987_v21, %v5974_v4 }
 0x376   :  { %6259 = vmatpush.bf16.msrb.mxu3 %v9503_v57  ;;  %v6002_v27 = vadd.f32 %v6001_v58, %v5988_v38 }
 0x37a   :  { %6260 = vmatpush.bf16.msrb.mxu3 %v9487_v54 }
 0x37b   :  { %v6139_v32 = vpop.f32.mrf.mxu2 }
 0x37e   :  { %6261 = vmatpush.bf16.msrb.mxu3 %v9471_v30  ;;  %v10467_v30 = vld [vmem:[#allocation2 + $0x30] sm:$0xff] }
 0x382   :  { %6262 = vmatpush.bf16.msrb.mxu3 %v9455_v19  ;;  %v6111_v19 = vpop.f32.mrf.mxu0 }
 0x383   :  { %v6141_v18 = vpop.f32.mrf.mxu2 }
 0x386   :  { %6263 = vmatpush.bf16.msrb.mxu3 %v9439_v63 }
 0x389   :  { %9679 = vmatmul.msk.bf16.vlgmr.msrb.gmra.mxu3 %vm10841_vm4, %v11206_v62  ;;  %v6015_v62 = vpop.f32.mrf.mxu1 }
 0x38a   :  { %v6016_v61 = vadd.f32 %v6015_v62, %v6002_v27  ;;  %v6113_v63 = vpop.f32.mrf.mxu0 }
 0x38b   :  { %v6195_v28 = vpop.f32.mrf.mxu2 }
 0x38c   :  { %v6041_v17 = vpop.f32.mrf.mxu3  ;;  %v6030_v1 = vadd.f32 %v6029_v42, %v6016_v61 }
 0x38d   :  { %v6042_v24 = vadd.f32 %v6041_v17, %v6028_v31 }
 0x38f   :  { %v6056_v36 = vadd.f32 %v6055_v48, %v6042_v24 }
 0x391   :  { %v6069_v11 = vpop.f32.mrf.mxu1 }
 0x392   :  { %v6070_v23 = vadd.f32 %v6069_v11, %v6056_v36  ;;  %v6167_v16 = vpop.f32.mrf.mxu0 }
 0x393   :  { %v6197_v62 = vpop.f32.mrf.mxu2 }
 0x394   :  { %v6043_v6 = vpop.f32.mrf.mxu3  ;;  %v6084_v47 = vadd.f32 %v6083_v43, %v6070_v23  ;;  %v6275_v43 = vperm.slane %v11272_v29, 3  ;;  %v10469_v29 = vld [vmem:[#allocation2 + $0x38] sm:$0xff] }
 0x395   :  { %v6044_v39 = vadd.f32 %v6043_v6, %v6030_v1 }
 0x397   :  { %v6058_v20 = vadd.f32 %v6057_v26, %v6044_v39 }
 0x399   :  { %v6071_v46 = vpop.f32.mrf.mxu1 }
 0x39a   :  { %v6072_v22 = vadd.f32 %v6071_v46, %v6058_v20  ;;  %v6169_v53 = vpop.f32.mrf.mxu0 }
 0x39c   :  { %v6086_v57 = vadd.f32 %v6085_v15, %v6072_v22 }
 0x3a1   :  { %v6125_v14 = vpop.f32.mrf.mxu1 }
 0x3a2   :  { %v6126_v45 = vadd.f32 %v6125_v14, %v6111_v19  ;;  %v6223_v27 = vpop.f32.mrf.mxu0 }
 0x3a4   :  { %v6140_v37 = vadd.f32 %v6139_v32, %v6126_v45 }
 0x3a9   :  { %v6127_v12 = vpop.f32.mrf.mxu1  ;;  %v6251_v6 = vpop.f32.mrf.mxu2 }
 0x3aa   :  { %v6128_v33 = vadd.f32 %v6127_v12, %v6113_v63  ;;  %v6225_v1 = vpop.f32.mrf.mxu0 }
 0x3ac   :  { %v6097_v13 = vpop.f32.mrf.mxu3  ;;  %v6142_v21 = vadd.f32 %v6141_v18, %v6128_v33 }
 0x3ad   :  { %v6098_v5 = vadd.f32 %v6097_v13, %v6084_v47  ;;  %v6293_v47 = vperm.slane %v11274_v35, 3 }
 0x3af   :  { %v6282_v50 = vmul.f32 %v6274_v56, %v6098_v5 }
 0x3b1   :  { %v6300_v2 = vadd.f32 %v6292_v60, %v6282_v50  ;;  %v6181_v59 = vpop.f32.mrf.mxu1  ;;  %v6253_v46 = vpop.f32.mrf.mxu2  ;;  %v10468_v50 = vld [vmem:[#allocation2 + $0x18] sm:$0xff] }
 0x3b3   :  { %v6308_v9 = vadd.f32 %v10466_v51, %v6300_v2 }
 0x3b4   :  { %v6099_v40 = vpop.f32.mrf.mxu3 }
 0x3b5   :  { %v6316_v25 = vmax.f32 %v6308_v9, 0.0  ;;  %v6100_v54 = vadd.f32 %v6099_v40, %v6086_v57 }
 0x3b7   :  { %6324 = vst [vmem:[#allocation14 + $0x10] sm:$0xff] %v6316_v25  ;;  %v6286_v7 = vmul.f32 %v6274_v56, %v6100_v54 }
 0x3b9   :  { %v6304_v8 = vadd.f32 %v6292_v60, %v6286_v7  ;;  %v6183_v58 = vpop.f32.mrf.mxu1 }
 0x3bb   :  { %v6312_v0 = vadd.f32 %v10467_v30, %v6304_v8 }
 0x3bd   :  { %v6320_v10 = vmax.f32 %v6312_v0, 0.0 }
 0x3bf   :  { %6328 = vst [vmem:[#allocation14 + $0x30] sm:$0xff] %v6320_v10 }
 0x3c1   :  { %v6237_v42 = vpop.f32.mrf.mxu1 }
 0x3c9   :  { %v6239_v56 = vpop.f32.mrf.mxu1 }
 0x3cc   :  { %v6153_v34 = vpop.f32.mrf.mxu3 }
 0x3cd   :  { %v6154_v3 = vadd.f32 %v6153_v34, %v6140_v37 }
 0x3cf   :  { %v6168_v52 = vadd.f32 %v6167_v16, %v6154_v3 }
 0x3d1   :  { %v6182_v44 = vadd.f32 %v6181_v59, %v6168_v52 }
 0x3d3   :  { %v6196_v55 = vadd.f32 %v6195_v28, %v6182_v44 }
 0x3d4   :  { %v6155_v49 = vpop.f32.mrf.mxu3 }
 0x3d5   :  { %v6156_v41 = vadd.f32 %v6155_v49, %v6142_v21 }
 0x3d7   :  { %v6170_v38 = vadd.f32 %v6169_v53, %v6156_v41 }
 0x3d9   :  { %v6184_v31 = vadd.f32 %v6183_v58, %v6170_v38 }
 0x3db   :  { %v6198_v61 = vadd.f32 %v6197_v62, %v6184_v31 }
 0x3ec   :  { %v6209_v4 = vpop.f32.mrf.mxu3 }
 0x3ed   :  { %v6210_v17 = vadd.f32 %v6209_v4, %v6196_v55 }
 0x3ef   :  { %v6224_v24 = vadd.f32 %v6223_v27, %v6210_v17 }
 0x3f1   :  { %v6238_v11 = vadd.f32 %v6237_v42, %v6224_v24 }
 0x3f3   :  { %v6252_v23 = vadd.f32 %v6251_v6, %v6238_v11 }
 0x3f4   :  { %v6211_v48 = vpop.f32.mrf.mxu3 }
 0x3f5   :  { %v6212_v36 = vadd.f32 %v6211_v48, %v6198_v61 }
 0x3f7   :  { %v6226_v39 = vadd.f32 %v6225_v1, %v6212_v36 }
 0x3f9   :  { %v6240_v5 = vadd.f32 %v6239_v56, %v6226_v39 }
 0x3fb   :  { %v6254_v2 = vadd.f32 %v6253_v46, %v6240_v5 }
 0x40c   :  { %v6265_v26 = vpop.f32.mrf.mxu3 }
 0x40d   :  { %v6266_v20 = vadd.f32 %v6265_v26, %v6252_v23 }
 0x40f   :  { %v6283_v13 = vmul.f32 %v6275_v43, %v6266_v20 }
 0x411   :  { %v6301_v60 = vadd.f32 %v6293_v47, %v6283_v13 }
 0x413   :  { %v6309_v22 = vadd.f32 %v10468_v50, %v6301_v60 }
 0x414   :  { %v6267_v15 = vpop.f32.mrf.mxu3 }
 0x415   :  { %v6317_v51 = vmax.f32 %v6309_v22, 0.0  ;;  %v6268_v9 = vadd.f32 %v6267_v15, %v6254_v2 }
 0x417   :  { %6325 = vst [vmem:[#allocation14 + $0x18] sm:$0xff] %v6317_v51  ;;  %v6287_v57 = vmul.f32 %v6275_v43, %v6268_v9 }
 0x419   :  { %v6305_v40 = vadd.f32 %v6293_v47, %v6287_v57 }
 0x41b   :  { %v6313_v35 = vadd.f32 %v10469_v29, %v6305_v40 }
 0x41d   :  { %v6321_v25 = vmax.f32 %v6313_v35, 0.0 }
 0x41f   :  { %6329 = vst [vmem:[#allocation14 + $0x38] sm:$0xff] %v6321_v25 }
 0x420   :  { %6342 = dma.vmem_to_hbm [thread:$0]  %s6335_s6, 1024, %s6337_s1, [#allocation4], %s10678_s21, %s10678_s21, %s10679_s22  }
 0x421   :  { %10670 = dma.done.wait [#allocation4], 1024  }
 0x422   :  { %10671 = vsyncadd [#allocation4], 4294966272 }
 0x423   :  { %6347 = vsyncpa [#allocation3], 1 }
 0x424   :  { %6348 = vsyncpa [#allocation6], 1 }
 0x425   :  { %6349 = vsyncpa [#allocation9], 1 }
 0x426   :  { %6350 = vsyncpa [#allocation12], 1 }
 0x427   :  { %6351 = vsyncpa [#allocation4], 1 }

</bundles_post_ra>
